<compile_context>
chip_gen: v6e
topology: v6e:2x2x1
jax: 0.10.0
libtpu: 0.0.40
codegen_flags: <defaults>
</compile_context>

<pallas_src>
import functools

import jax
import jax.numpy as jnp
from jax.experimental import pallas as pl
from jax.experimental.pallas import tpu as pltpu


_PARAM_ORDER = ("wq", "wk", "wv", "wm", "n1w", "n1b", "w1a", "w1b", "w2", "n2w", "n2b")
_N_LAYER_PARAMS = len(_PARAM_ORDER)


# ----------------------------------------------------------------------------------
# In-kernel helpers (operate on f32 values already loaded from VMEM refs).
# ----------------------------------------------------------------------------------
def _mm(x3, w):
    """(B, T, Cin) @ (Cin, Cout) -> (B, T, Cout) as a single 2-D MXU matmul."""
    B, T, Cin = x3.shape
    y = jnp.dot(x3.reshape(B * T, Cin), w, preferred_element_type=jnp.float32)
    return y.reshape(B, T, w.shape[1])


def _layer_norm(x, w, b, eps):
    mu = jnp.mean(x, axis=-1, keepdims=True)
    var = jnp.mean(jnp.square(x - mu), axis=-1, keepdims=True)
    return (x - mu) * jax.lax.rsqrt(var + eps) * w + b


def _transformer_layer(x, src, params, head_mask, *, eps_attn, eps_ln):
    """One TransformerLayer forward.

    x:         (B, L, C)  query / residual stream
    src:       (B, S, C)  key / value source
    head_mask: (C, C)     block-diagonal mask, 1 where both channels share a head.
    """
    wq, wk, wv, wm, n1w, n1b, w1a, w1b, w2, n2w, n2b = params
    S = src.shape[1]

    # --- Q/K/V projections (bias-free, as in the module) ---
    q = _mm(x, wq)
    k = _mm(src, wk)
    v = _mm(src, wv)

    # feature map: elu(t) + 1  ==  t + 1 if t > 0 else exp(t)
    qf = jnp.where(q > 0, q + 1.0, jnp.exp(q))
    kf = jnp.where(k > 0, k + 1.0, jnp.exp(k))

    # --- LinearAttention, all heads fused via the block-diagonal mask ---
    # TODO(synk): optional q_mask / kv_mask padding path not implemented (forward uses None).
    inv_s = 1.0 / float(S)
    kv = jnp.einsum("bsc,bsd->bcd", kf, v * inv_s,
                    preferred_element_type=jnp.float32)          # (B, C, C)
    kv = kv * head_mask[None]                                    # zero cross-head blocks
    ksum = jnp.sum(kf, axis=1, keepdims=True)                    # (B, 1, C)
    zden = _mm(qf * ksum, head_mask) + eps_attn                  # per-head Z, broadcast over head
    zinv = pl.reciprocal(zden, approx=True)                      # EUP reciprocal
    message = jnp.einsum("blc,bcd->bld", qf, kv,
                         preferred_element_type=jnp.float32) * zinv * float(S)

    # --- merge projection + LayerNorm1 ---
    message = _mm(message, wm)
    message = _layer_norm(message, n1w, n1b, eps_ln)

    # --- MLP on concat([x, message]) : the concat is folded into two matmuls ---
    hdn = _mm(x, w1a) + _mm(message, w1b)                        # (B, L, 2C)
    hdn = jnp.maximum(hdn, 0.0)
    out = _mm(hdn, w2)                                           # (B, L, C)

    # --- LayerNorm2 + residual ---
    out = _layer_norm(out, n2w, n2b, eps_ln)
    return x + out


# ----------------------------------------------------------------------------------
# Fused kernel: whole LocalFeatureTransformer layer stack for one batch block.
# ----------------------------------------------------------------------------------
def _fused_stack_kernel(*refs, layer_names, eps_attn=1e-6, eps_ln=1e-5):
    fi_ref, fp_ref, hm_ref = refs[0], refs[1], refs[2]
    out_i_ref, out_p_ref = refs[-2], refs[-1]
    w_refs = refs[3:-2]

    head_mask = hm_ref[...]                         # (C, C) f32
    fi = fi_ref[...].astype(jnp.float32)            # (Bb, L, C)
    fp = fp_ref[...].astype(jnp.float32)            # (Bb, S, C)

    idx = 0

    def next_params():
        nonlocal idx
        p = tuple(w_refs[idx + j][...] for j in range(_N_LAYER_PARAMS))
        idx += _N_LAYER_PARAMS
        return p

    for name in layer_names:
        if name == "self":
            p_img = next_params()
            p_pt = next_params()
            fi = _transformer_layer(fi, fi, p_img, head_mask,
                                    eps_attn=eps_attn, eps_ln=eps_ln)
            fp = _transformer_layer(fp, fp, p_pt, head_mask,
                                    eps_attn=eps_attn, eps_ln=eps_ln)
        elif name == "cross":
            p = next_params()
            fi = _transformer_layer(fi, fp, p, head_mask,
                                    eps_attn=eps_attn, eps_ln=eps_ln)
            fp = _transformer_layer(fp, fi, p, head_mask,
                                    eps_attn=eps_attn, eps_ln=eps_ln)
        else:
            raise KeyError(name)

    out_i_ref[...] = fi.astype(out_i_ref.dtype)
    out_p_ref[...] = fp.astype(out_p_ref.dtype)


# ----------------------------------------------------------------------------------
# LocalFeatureTransformer.forward — ONE pallas_call for the full stack.
# ----------------------------------------------------------------------------------
def local_feature_transformer(feat_image, feat_point, layers, layer_names, nhead,
                              pose_image=None, pose_point=None, batch_block=1):
    # TODO(synk): mask0 / mask1 optional padding masks not implemented (forward passes None).
    if pose_image is not None and len(layer_names) > 0:
        feat_image = feat_image + pose_image
        feat_point = feat_point + pose_point
    if not layer_names:
        return feat_image, feat_point

    N, L, C = feat_image.shape
    Np, S, Cp = feat_point.shape
    assert Np == N and Cp == C and C % nhead == 0

    Bb = max(1, min(batch_block, N))
    assert N % Bb == 0, "batch_block must divide the batch size"

    # Block-diagonal per-head mask (compile-time constant).
    D = C // nhead
    hidx = jnp.arange(C, dtype=jnp.int32) // D
    head_mask = (hidx[:, None] == hidx[None, :]).astype(jnp.float32)

    # Flatten all layer parameters in the exact order the kernel consumes them.
    flat_params = []
    for layer, name in zip(layers, layer_names):
        if name == "self":
            for p in layer:
                flat_params += [p[k] for k in _PARAM_ORDER]
        elif name == "cross":
            flat_params += [layer[k] for k in _PARAM_ORDER]
        else:
            raise KeyError(name)

    # Weights + head mask: whole array resident in VMEM (no blocking / double buffering).
    vmem_whole = pl.BlockSpec(memory_space=pltpu.MemorySpace.VMEM)

    kernel = functools.partial(_fused_stack_kernel, layer_names=tuple(layer_names))

    out_image, out_point = pl.pallas_call(
        kernel,
        out_shape=(
            jax.ShapeDtypeStruct((N, L, C), feat_image.dtype),
            jax.ShapeDtypeStruct((N, S, C), feat_point.dtype),
        ),
        grid=(N // Bb,),
        in_specs=[
            pl.BlockSpec((Bb, L, C), lambda b: (b, 0, 0)),
            pl.BlockSpec((Bb, S, C), lambda b: (b, 0, 0)),
        ] + [vmem_whole] * (1 + len(flat_params)),
        out_specs=(
            pl.BlockSpec((Bb, L, C), lambda b: (b, 0, 0)),
            pl.BlockSpec((Bb, S, C), lambda b: (b, 0, 0)),
        ),
        compiler_params=pltpu.CompilerParams(dimension_semantics=("parallel",)),
    )(feat_image, feat_point, head_mask, *flat_params)
    return out_image, out_point


# ----------------------------------------------------------------------------------
# Parameter init (deterministic, xavier_uniform for dim>1 params like the module does).
# ----------------------------------------------------------------------------------
def _xavier_uniform(key, shape):
    fan_in, fan_out = shape
    limit = (6.0 / (fan_in + fan_out)) ** 0.5
    return jax.random.uniform(key, shape, jnp.float32, -limit, limit)


def init_layer_params(key, d_model):
    C = d_model
    keys = jax.random.split(key, 7)
    w1 = _xavier_uniform(keys[4], (2 * C, 2 * C))
    return {
        "wq": _xavier_uniform(keys[0], (C, C)),
        "wk": _xavier_uniform(keys[1], (C, C)),
        "wv": _xavier_uniform(keys[2], (C, C)),
        "wm": _xavier_uniform(keys[3], (C, C)),
        "n1w": jnp.ones((1, C), jnp.float32),
        "n1b": jnp.zeros((1, C), jnp.float32),
        "w1a": w1[:C, :],          # concat([x, message]) @ W1  ==  x@w1a + message@w1b
        "w1b": w1[C:, :],
        "w2": _xavier_uniform(keys[5], (2 * C, C)),
        "n2w": jnp.ones((1, C), jnp.float32),
        "n2b": jnp.zeros((1, C), jnp.float32),
    }


def init_local_feature_transformer(key, d_model, layer_names):
    layers = []
    for name in layer_names:
        key, k0, k1 = jax.random.split(key, 3)
        if name == "self":
            layers.append((init_layer_params(k0, d_model),
                           init_layer_params(k1, d_model)))
        elif name == "cross":
            layers.append(init_layer_params(k0, d_model))
        else:
            raise KeyError(name)
    return layers


# ----------------------------------------------------------------------------------
if __name__ == "__main__":
    # config: {'d_model': 32, 'nhead': 4, 'layer_names': ['self', 'cross'], 'attention': 'linear'}
    # TODO(synk): attention='full' variant (softmax FullAttention) not implemented; 'linear' only.
    d_model, nhead = 32, 4
    layer_names = ["self", "cross"]
    N, L, S = 2, 16, 8

    key = jax.random.PRNGKey(0)
    k_img, k_pt, k_params = jax.random.split(key, 3)
    feat_image = jax.random.normal(k_img, (N, L, d_model), jnp.float32)
    feat_point = jax.random.normal(k_pt, (N, S, d_model), jnp.float32)

    layers = init_local_feature_transformer(k_params, d_model, layer_names)

    out_image, out_point = local_feature_transformer(
        feat_image, feat_point, layers, layer_names, nhead)
    jax.block_until_ready((out_image, out_point))

    assert out_image.shape == (N, L, d_model)
    assert out_point.shape == (N, S, d_model)
    assert out_image.dtype == feat_image.dtype
    print("KERNEL_OK")
</pallas_src>

<mosaic_0001>
module attributes {stable_mosaic.version = 11 : i64} {
  func.func @_fused_stack_kernel(%arg0: i32, %arg1: memref<1x16x32xf32, #tpu.memory_space<vmem>>, %arg2: memref<1x8x32xf32, #tpu.memory_space<vmem>>, %arg3: memref<32x32xf32, #tpu.memory_space<vmem>>, %arg4: memref<32x32xf32, #tpu.memory_space<vmem>>, %arg5: memref<32x32xf32, #tpu.memory_space<vmem>>, %arg6: memref<32x32xf32, #tpu.memory_space<vmem>>, %arg7: memref<32x32xf32, #tpu.memory_space<vmem>>, %arg8: memref<1x32xf32, #tpu.memory_space<vmem>>, %arg9: memref<1x32xf32, #tpu.memory_space<vmem>>, %arg10: memref<32x64xf32, #tpu.memory_space<vmem>>, %arg11: memref<32x64xf32, #tpu.memory_space<vmem>>, %arg12: memref<64x32xf32, #tpu.memory_space<vmem>>, %arg13: memref<1x32xf32, #tpu.memory_space<vmem>>, %arg14: memref<1x32xf32, #tpu.memory_space<vmem>>, %arg15: memref<32x32xf32, #tpu.memory_space<vmem>>, %arg16: memref<32x32xf32, #tpu.memory_space<vmem>>, %arg17: memref<32x32xf32, #tpu.memory_space<vmem>>, %arg18: memref<32x32xf32, #tpu.memory_space<vmem>>, %arg19: memref<1x32xf32, #tpu.memory_space<vmem>>, %arg20: memref<1x32xf32, #tpu.memory_space<vmem>>, %arg21: memref<32x64xf32, #tpu.memory_space<vmem>>, %arg22: memref<32x64xf32, #tpu.memory_space<vmem>>, %arg23: memref<64x32xf32, #tpu.memory_space<vmem>>, %arg24: memref<1x32xf32, #tpu.memory_space<vmem>>, %arg25: memref<1x32xf32, #tpu.memory_space<vmem>>, %arg26: memref<32x32xf32, #tpu.memory_space<vmem>>, %arg27: memref<32x32xf32, #tpu.memory_space<vmem>>, %arg28: memref<32x32xf32, #tpu.memory_space<vmem>>, %arg29: memref<32x32xf32, #tpu.memory_space<vmem>>, %arg30: memref<1x32xf32, #tpu.memory_space<vmem>>, %arg31: memref<1x32xf32, #tpu.memory_space<vmem>>, %arg32: memref<32x64xf32, #tpu.memory_space<vmem>>, %arg33: memref<32x64xf32, #tpu.memory_space<vmem>>, %arg34: memref<64x32xf32, #tpu.memory_space<vmem>>, %arg35: memref<1x32xf32, #tpu.memory_space<vmem>>, %arg36: memref<1x32xf32, #tpu.memory_space<vmem>>, %arg37: memref<1x16x32xf32, #tpu.memory_space<vmem>>, %arg38: memref<1x8x32xf32, #tpu.memory_space<vmem>>) attributes {dimension_semantics = [#tpu.dimension_semantics<parallel>], iteration_bounds = array<i64: 2>, scalar_prefetch = 0 : i64, scratch_operands = 0 : i64, tpu.core_type = #tpu.core_type<tc>, window_params = [{transform_indices = @transform_0, window_bounds = array<i64: 1, 16, 32>}, {transform_indices = @transform_1, window_bounds = array<i64: 1, 8, 32>}, {pipeline_mode = #tpu.pipeline_mode<synchronous>, transform_indices = @transform_2, window_bounds = array<i64: 32, 32>}, {pipeline_mode = #tpu.pipeline_mode<synchronous>, transform_indices = @transform_3, window_bounds = array<i64: 32, 32>}, {pipeline_mode = #tpu.pipeline_mode<synchronous>, transform_indices = @transform_4, window_bounds = array<i64: 32, 32>}, {pipeline_mode = #tpu.pipeline_mode<synchronous>, transform_indices = @transform_5, window_bounds = array<i64: 32, 32>}, {pipeline_mode = #tpu.pipeline_mode<synchronous>, transform_indices = @transform_6, window_bounds = array<i64: 32, 32>}, {pipeline_mode = #tpu.pipeline_mode<synchronous>, transform_indices = @transform_7, window_bounds = array<i64: 1, 32>}, {pipeline_mode = #tpu.pipeline_mode<synchronous>, transform_indices = @transform_8, window_bounds = array<i64: 1, 32>}, {pipeline_mode = #tpu.pipeline_mode<synchronous>, transform_indices = @transform_9, window_bounds = array<i64: 32, 64>}, {pipeline_mode = #tpu.pipeline_mode<synchronous>, transform_indices = @transform_10, window_bounds = array<i64: 32, 64>}, {pipeline_mode = #tpu.pipeline_mode<synchronous>, transform_indices = @transform_11, window_bounds = array<i64: 64, 32>}, {pipeline_mode = #tpu.pipeline_mode<synchronous>, transform_indices = @transform_12, window_bounds = array<i64: 1, 32>}, {pipeline_mode = #tpu.pipeline_mode<synchronous>, transform_indices = @transform_13, window_bounds = array<i64: 1, 32>}, {pipeline_mode = #tpu.pipeline_mode<synchronous>, transform_indices = @transform_14, window_bounds = array<i64: 32, 32>}, {pipeline_mode = #tpu.pipeline_mode<synchronous>, transform_indices = @transform_15, window_bounds = array<i64: 32, 32>}, {pipeline_mode = #tpu.pipeline_mode<synchronous>, transform_indices = @transform_16, window_bounds = array<i64: 32, 32>}, {pipeline_mode = #tpu.pipeline_mode<synchronous>, transform_indices = @transform_17, window_bounds = array<i64: 32, 32>}, {pipeline_mode = #tpu.pipeline_mode<synchronous>, transform_indices = @transform_18, window_bounds = array<i64: 1, 32>}, {pipeline_mode = #tpu.pipeline_mode<synchronous>, transform_indices = @transform_19, window_bounds = array<i64: 1, 32>}, {pipeline_mode = #tpu.pipeline_mode<synchronous>, transform_indices = @transform_20, window_bounds = array<i64: 32, 64>}, {pipeline_mode = #tpu.pipeline_mode<synchronous>, transform_indices = @transform_21, window_bounds = array<i64: 32, 64>}, {pipeline_mode = #tpu.pipeline_mode<synchronous>, transform_indices = @transform_22, window_bounds = array<i64: 64, 32>}, {pipeline_mode = #tpu.pipeline_mode<synchronous>, transform_indices = @transform_23, window_bounds = array<i64: 1, 32>}, {pipeline_mode = #tpu.pipeline_mode<synchronous>, transform_indices = @transform_24, window_bounds = array<i64: 1, 32>}, {pipeline_mode = #tpu.pipeline_mode<synchronous>, transform_indices = @transform_25, window_bounds = array<i64: 32, 32>}, {pipeline_mode = #tpu.pipeline_mode<synchronous>, transform_indices = @transform_26, window_bounds = array<i64: 32, 32>}, {pipeline_mode = #tpu.pipeline_mode<synchronous>, transform_indices = @transform_27, window_bounds = array<i64: 32, 32>}, {pipeline_mode = #tpu.pipeline_mode<synchronous>, transform_indices = @transform_28, window_bounds = array<i64: 32, 32>}, {pipeline_mode = #tpu.pipeline_mode<synchronous>, transform_indices = @transform_29, window_bounds = array<i64: 1, 32>}, {pipeline_mode = #tpu.pipeline_mode<synchronous>, transform_indices = @transform_30, window_bounds = array<i64: 1, 32>}, {pipeline_mode = #tpu.pipeline_mode<synchronous>, transform_indices = @transform_31, window_bounds = array<i64: 32, 64>}, {pipeline_mode = #tpu.pipeline_mode<synchronous>, transform_indices = @transform_32, window_bounds = array<i64: 32, 64>}, {pipeline_mode = #tpu.pipeline_mode<synchronous>, transform_indices = @transform_33, window_bounds = array<i64: 64, 32>}, {pipeline_mode = #tpu.pipeline_mode<synchronous>, transform_indices = @transform_34, window_bounds = array<i64: 1, 32>}, {pipeline_mode = #tpu.pipeline_mode<synchronous>, transform_indices = @transform_35, window_bounds = array<i64: 1, 32>}, {transform_indices = @transform_36, window_bounds = array<i64: 1, 16, 32>}, {transform_indices = @transform_37, window_bounds = array<i64: 1, 8, 32>}]} {
    %c0 = arith.constant 0 : index
    %c0_0 = arith.constant 0 : index
    %0 = vector.load %arg3[%c0, %c0_0] : memref<32x32xf32, #tpu.memory_space<vmem>>, vector<32x32xf32>
    %c0_1 = arith.constant 0 : index
    %c0_2 = arith.constant 0 : index
    %c0_3 = arith.constant 0 : index
    %1 = vector.load %arg1[%c0_1, %c0_2, %c0_3] : memref<1x16x32xf32, #tpu.memory_space<vmem>>, vector<1x16x32xf32>
    %c0_4 = arith.constant 0 : index
    %c0_5 = arith.constant 0 : index
    %c0_6 = arith.constant 0 : index
    %2 = vector.load %arg2[%c0_4, %c0_5, %c0_6] : memref<1x8x32xf32, #tpu.memory_space<vmem>>, vector<1x8x32xf32>
    %c0_7 = arith.constant 0 : index
    %c0_8 = arith.constant 0 : index
    %3 = vector.load %arg4[%c0_7, %c0_8] : memref<32x32xf32, #tpu.memory_space<vmem>>, vector<32x32xf32>
    %c0_9 = arith.constant 0 : index
    %c0_10 = arith.constant 0 : index
    %4 = vector.load %arg5[%c0_9, %c0_10] : memref<32x32xf32, #tpu.memory_space<vmem>>, vector<32x32xf32>
    %c0_11 = arith.constant 0 : index
    %c0_12 = arith.constant 0 : index
    %5 = vector.load %arg6[%c0_11, %c0_12] : memref<32x32xf32, #tpu.memory_space<vmem>>, vector<32x32xf32>
    %c0_13 = arith.constant 0 : index
    %c0_14 = arith.constant 0 : index
    %6 = vector.load %arg7[%c0_13, %c0_14] : memref<32x32xf32, #tpu.memory_space<vmem>>, vector<32x32xf32>
    %c0_15 = arith.constant 0 : index
    %c0_16 = arith.constant 0 : index
    %7 = vector.load %arg8[%c0_15, %c0_16] : memref<1x32xf32, #tpu.memory_space<vmem>>, vector<1x32xf32>
    %c0_17 = arith.constant 0 : index
    %c0_18 = arith.constant 0 : index
    %8 = vector.load %arg9[%c0_17, %c0_18] : memref<1x32xf32, #tpu.memory_space<vmem>>, vector<1x32xf32>
    %c0_19 = arith.constant 0 : index
    %c0_20 = arith.constant 0 : index
    %9 = vector.load %arg10[%c0_19, %c0_20] : memref<32x64xf32, #tpu.memory_space<vmem>>, vector<32x64xf32>
    %c0_21 = arith.constant 0 : index
    %c0_22 = arith.constant 0 : index
    %10 = vector.load %arg11[%c0_21, %c0_22] : memref<32x64xf32, #tpu.memory_space<vmem>>, vector<32x64xf32>
    %c0_23 = arith.constant 0 : index
    %c0_24 = arith.constant 0 : index
    %11 = vector.load %arg12[%c0_23, %c0_24] : memref<64x32xf32, #tpu.memory_space<vmem>>, vector<64x32xf32>
    %c0_25 = arith.constant 0 : index
    %c0_26 = arith.constant 0 : index
    %12 = vector.load %arg13[%c0_25, %c0_26] : memref<1x32xf32, #tpu.memory_space<vmem>>, vector<1x32xf32>
    %c0_27 = arith.constant 0 : index
    %c0_28 = arith.constant 0 : index
    %13 = vector.load %arg14[%c0_27, %c0_28] : memref<1x32xf32, #tpu.memory_space<vmem>>, vector<1x32xf32>
    %c0_29 = arith.constant 0 : index
    %c0_30 = arith.constant 0 : index
    %14 = vector.load %arg15[%c0_29, %c0_30] : memref<32x32xf32, #tpu.memory_space<vmem>>, vector<32x32xf32>
    %c0_31 = arith.constant 0 : index
    %c0_32 = arith.constant 0 : index
    %15 = vector.load %arg16[%c0_31, %c0_32] : memref<32x32xf32, #tpu.memory_space<vmem>>, vector<32x32xf32>
    %c0_33 = arith.constant 0 : index
    %c0_34 = arith.constant 0 : index
    %16 = vector.load %arg17[%c0_33, %c0_34] : memref<32x32xf32, #tpu.memory_space<vmem>>, vector<32x32xf32>
    %c0_35 = arith.constant 0 : index
    %c0_36 = arith.constant 0 : index
    %17 = vector.load %arg18[%c0_35, %c0_36] : memref<32x32xf32, #tpu.memory_space<vmem>>, vector<32x32xf32>
    %c0_37 = arith.constant 0 : index
    %c0_38 = arith.constant 0 : index
    %18 = vector.load %arg19[%c0_37, %c0_38] : memref<1x32xf32, #tpu.memory_space<vmem>>, vector<1x32xf32>
    %c0_39 = arith.constant 0 : index
    %c0_40 = arith.constant 0 : index
    %19 = vector.load %arg20[%c0_39, %c0_40] : memref<1x32xf32, #tpu.memory_space<vmem>>, vector<1x32xf32>
    %c0_41 = arith.constant 0 : index
    %c0_42 = arith.constant 0 : index
    %20 = vector.load %arg21[%c0_41, %c0_42] : memref<32x64xf32, #tpu.memory_space<vmem>>, vector<32x64xf32>
    %c0_43 = arith.constant 0 : index
    %c0_44 = arith.constant 0 : index
    %21 = vector.load %arg22[%c0_43, %c0_44] : memref<32x64xf32, #tpu.memory_space<vmem>>, vector<32x64xf32>
    %c0_45 = arith.constant 0 : index
    %c0_46 = arith.constant 0 : index
    %22 = vector.load %arg23[%c0_45, %c0_46] : memref<64x32xf32, #tpu.memory_space<vmem>>, vector<64x32xf32>
    %c0_47 = arith.constant 0 : index
    %c0_48 = arith.constant 0 : index
    %23 = vector.load %arg24[%c0_47, %c0_48] : memref<1x32xf32, #tpu.memory_space<vmem>>, vector<1x32xf32>
    %c0_49 = arith.constant 0 : index
    %c0_50 = arith.constant 0 : index
    %24 = vector.load %arg25[%c0_49, %c0_50] : memref<1x32xf32, #tpu.memory_space<vmem>>, vector<1x32xf32>
    %25 = vector.shape_cast %1 : vector<1x16x32xf32> to vector<16x32xf32>
    %cst = arith.constant dense<0.000000e+00> : vector<16x32xf32>
    %26 = tpu.matmul %25, %3, %cst {dimension_numbers = #tpu.dot_dimension_numbers<[1], [0], [0], [1], [0, 0, 1, 1], [], []>} : vector<16x32xf32>, vector<32x32xf32>, vector<16x32xf32> -> vector<16x32xf32>
    %27 = vector.shape_cast %26 : vector<16x32xf32> to vector<1x16x32xf32>
    %28 = vector.shape_cast %1 : vector<1x16x32xf32> to vector<16x32xf32>
    %cst_51 = arith.constant dense<0.000000e+00> : vector<16x32xf32>
    %29 = tpu.matmul %28, %4, %cst_51 {dimension_numbers = #tpu.dot_dimension_numbers<[1], [0], [0], [1], [0, 0, 1, 1], [], []>} : vector<16x32xf32>, vector<32x32xf32>, vector<16x32xf32> -> vector<16x32xf32>
    %30 = vector.shape_cast %29 : vector<16x32xf32> to vector<1x16x32xf32>
    %31 = vector.shape_cast %1 : vector<1x16x32xf32> to vector<16x32xf32>
    %cst_52 = arith.constant dense<0.000000e+00> : vector<16x32xf32>
    %32 = tpu.matmul %31, %5, %cst_52 {dimension_numbers = #tpu.dot_dimension_numbers<[1], [0], [0], [1], [0, 0, 1, 1], [], []>} : vector<16x32xf32>, vector<32x32xf32>, vector<16x32xf32> -> vector<16x32xf32>
    %33 = vector.shape_cast %32 : vector<16x32xf32> to vector<1x16x32xf32>
    %cst_53 = arith.constant 0.000000e+00 : f32
    %34 = vector.broadcast %cst_53 : f32 to vector<1x16x32xf32>
    %35 = arith.cmpf ogt, %27, %34 : vector<1x16x32xf32>
    %cst_54 = arith.constant 1.000000e+00 : f32
    %36 = vector.broadcast %cst_54 : f32 to vector<1x16x32xf32>
    %37 = arith.addf %27, %36 : vector<1x16x32xf32>
    %38 = math.exp %27 : vector<1x16x32xf32>
    %39 = arith.select %35, %37, %38 : vector<1x16x32xi1>, vector<1x16x32xf32>
    %cst_55 = arith.constant 0.000000e+00 : f32
    %40 = vector.broadcast %cst_55 : f32 to vector<1x16x32xf32>
    %41 = arith.cmpf ogt, %30, %40 : vector<1x16x32xf32>
    %cst_56 = arith.constant 1.000000e+00 : f32
    %42 = vector.broadcast %cst_56 : f32 to vector<1x16x32xf32>
    %43 = arith.addf %30, %42 : vector<1x16x32xf32>
    %44 = math.exp %30 : vector<1x16x32xf32>
    %45 = arith.select %41, %43, %44 : vector<1x16x32xi1>, vector<1x16x32xf32>
    %cst_57 = arith.constant 6.250000e-02 : f32
    %46 = vector.broadcast %cst_57 : f32 to vector<1x16x32xf32>
    %47 = arith.mulf %33, %46 : vector<1x16x32xf32>
    "tpu.trace_start"() <{level = 10 : i32, message = "bsc,bsd->bcd"}> : () -> ()
    %cst_58 = arith.constant dense<0.000000e+00> : vector<1x32x32xf32>
    %48 = tpu.matmul %45, %47, %cst_58 {dimension_numbers = #tpu.dot_dimension_numbers<[1], [1], [2], [2], [0, 0, 0, 2, 1, 2], [0], [0]>} : vector<1x16x32xf32>, vector<1x16x32xf32>, vector<1x32x32xf32> -> vector<1x32x32xf32>
    "tpu.trace_stop"() : () -> ()
    %49 = vector.shape_cast %0 : vector<32x32xf32> to vector<1x32x32xf32>
    %50 = arith.mulf %48, %49 : vector<1x32x32xf32>
    %cst_59 = arith.constant dense<0.000000e+00> : vector<1x32xf32>
    %51 = vector.multi_reduction <add>, %45, %cst_59 [1] : vector<1x16x32xf32> to vector<1x32xf32>
    %52 = vector.shape_cast %51 : vector<1x32xf32> to vector<1x1x32xf32>
    %53 = vector.broadcast %52 : vector<1x1x32xf32> to vector<1x16x32xf32>
    %54 = arith.mulf %39, %53 : vector<1x16x32xf32>
    %55 = vector.shape_cast %54 : vector<1x16x32xf32> to vector<16x32xf32>
    %cst_60 = arith.constant dense<0.000000e+00> : vector<16x32xf32>
    %56 = tpu.matmul %55, %0, %cst_60 {dimension_numbers = #tpu.dot_dimension_numbers<[1], [0], [0], [1], [0, 0, 1, 1], [], []>} : vector<16x32xf32>, vector<32x32xf32>, vector<16x32xf32> -> vector<16x32xf32>
    %57 = vector.shape_cast %56 : vector<16x32xf32> to vector<1x16x32xf32>
    %cst_61 = arith.constant 9.99999997E-7 : f32
    %58 = vector.broadcast %cst_61 : f32 to vector<1x16x32xf32>
    %59 = arith.addf %57, %58 : vector<1x16x32xf32>
    %60 = tpu.reciprocal %59 {approx = true} : vector<1x16x32xf32> -> vector<1x16x32xf32>
    "tpu.trace_start"() <{level = 10 : i32, message = "blc,bcd->bld"}> : () -> ()
    %cst_62 = arith.constant dense<0.000000e+00> : vector<1x16x32xf32>
    %61 = tpu.matmul %39, %50, %cst_62 {dimension_numbers = #tpu.dot_dimension_numbers<[2], [1], [1], [2], [0, 0, 0, 1, 1, 2], [0], [0]>} : vector<1x16x32xf32>, vector<1x32x32xf32>, vector<1x16x32xf32> -> vector<1x16x32xf32>
    "tpu.trace_stop"() : () -> ()
    %62 = arith.mulf %61, %60 : vector<1x16x32xf32>
    %cst_63 = arith.constant 1.600000e+01 : f32
    %63 = vector.broadcast %cst_63 : f32 to vector<1x16x32xf32>
    %64 = arith.mulf %62, %63 : vector<1x16x32xf32>
    %65 = vector.shape_cast %64 : vector<1x16x32xf32> to vector<16x32xf32>
    %cst_64 = arith.constant dense<0.000000e+00> : vector<16x32xf32>
    %66 = tpu.matmul %65, %6, %cst_64 {dimension_numbers = #tpu.dot_dimension_numbers<[1], [0], [0], [1], [0, 0, 1, 1], [], []>} : vector<16x32xf32>, vector<32x32xf32>, vector<16x32xf32> -> vector<16x32xf32>
    %67 = vector.shape_cast %66 : vector<16x32xf32> to vector<1x16x32xf32>
    %cst_65 = arith.constant dense<0.000000e+00> : vector<1x16xf32>
    %68 = vector.multi_reduction <add>, %67, %cst_65 [2] : vector<1x16x32xf32> to vector<1x16xf32>
    %69 = vector.shape_cast %68 : vector<1x16xf32> to vector<1x16x1xf32>
    %cst_66 = arith.constant 3.200000e+01 : f32
    %70 = vector.broadcast %cst_66 : f32 to vector<1x16x1xf32>
    %71 = arith.divf %69, %70 : vector<1x16x1xf32>
    %72 = vector.broadcast %71 : vector<1x16x1xf32> to vector<1x16x32xf32>
    %73 = arith.subf %67, %72 : vector<1x16x32xf32>
    %74 = arith.mulf %73, %73 : vector<1x16x32xf32>
    %cst_67 = arith.constant dense<0.000000e+00> : vector<1x16xf32>
    %75 = vector.multi_reduction <add>, %74, %cst_67 [2] : vector<1x16x32xf32> to vector<1x16xf32>
    %76 = vector.shape_cast %75 : vector<1x16xf32> to vector<1x16x1xf32>
    %cst_68 = arith.constant 3.200000e+01 : f32
    %77 = vector.broadcast %cst_68 : f32 to vector<1x16x1xf32>
    %78 = arith.divf %76, %77 : vector<1x16x1xf32>
    %79 = vector.broadcast %71 : vector<1x16x1xf32> to vector<1x16x32xf32>
    %80 = arith.subf %67, %79 : vector<1x16x32xf32>
    %cst_69 = arith.constant 9.99999974E-6 : f32
    %81 = vector.broadcast %cst_69 : f32 to vector<1x16x1xf32>
    %82 = arith.addf %78, %81 : vector<1x16x1xf32>
    %83 = math.rsqrt %82 : vector<1x16x1xf32>
    %84 = vector.broadcast %83 : vector<1x16x1xf32> to vector<1x16x32xf32>
    %85 = arith.mulf %80, %84 : vector<1x16x32xf32>
    %86 = vector.shape_cast %7 : vector<1x32xf32> to vector<1x1x32xf32>
    %87 = vector.broadcast %86 : vector<1x1x32xf32> to vector<1x16x32xf32>
    %88 = arith.mulf %85, %87 : vector<1x16x32xf32>
    %89 = vector.shape_cast %8 : vector<1x32xf32> to vector<1x1x32xf32>
    %90 = vector.broadcast %89 : vector<1x1x32xf32> to vector<1x16x32xf32>
    %91 = arith.addf %88, %90 : vector<1x16x32xf32>
    %92 = vector.shape_cast %1 : vector<1x16x32xf32> to vector<16x32xf32>
    %cst_70 = arith.constant dense<0.000000e+00> : vector<16x64xf32>
    %93 = tpu.matmul %92, %9, %cst_70 {dimension_numbers = #tpu.dot_dimension_numbers<[1], [0], [0], [1], [0, 0, 1, 1], [], []>} : vector<16x32xf32>, vector<32x64xf32>, vector<16x64xf32> -> vector<16x64xf32>
    %94 = vector.shape_cast %93 : vector<16x64xf32> to vector<1x16x64xf32>
    %95 = vector.shape_cast %91 : vector<1x16x32xf32> to vector<16x32xf32>
    %cst_71 = arith.constant dense<0.000000e+00> : vector<16x64xf32>
    %96 = tpu.matmul %95, %10, %cst_71 {dimension_numbers = #tpu.dot_dimension_numbers<[1], [0], [0], [1], [0, 0, 1, 1], [], []>} : vector<16x32xf32>, vector<32x64xf32>, vector<16x64xf32> -> vector<16x64xf32>
    %97 = vector.shape_cast %96 : vector<16x64xf32> to vector<1x16x64xf32>
    %98 = arith.addf %94, %97 : vector<1x16x64xf32>
    %cst_72 = arith.constant 0.000000e+00 : f32
    %99 = vector.broadcast %cst_72 : f32 to vector<1x16x64xf32>
    %100 = arith.maximumf %98, %99 : vector<1x16x64xf32>
    %101 = vector.shape_cast %100 : vector<1x16x64xf32> to vector<16x64xf32>
    %cst_73 = arith.constant dense<0.000000e+00> : vector<16x32xf32>
    %102 = tpu.matmul %101, %11, %cst_73 {dimension_numbers = #tpu.dot_dimension_numbers<[1], [0], [0], [1], [0, 0, 1, 1], [], []>} : vector<16x64xf32>, vector<64x32xf32>, vector<16x32xf32> -> vector<16x32xf32>
    %103 = vector.shape_cast %102 : vector<16x32xf32> to vector<1x16x32xf32>
    %cst_74 = arith.constant dense<0.000000e+00> : vector<1x16xf32>
    %104 = vector.multi_reduction <add>, %103, %cst_74 [2] : vector<1x16x32xf32> to vector<1x16xf32>
    %105 = vector.shape_cast %104 : vector<1x16xf32> to vector<1x16x1xf32>
    %cst_75 = arith.constant 3.200000e+01 : f32
    %106 = vector.broadcast %cst_75 : f32 to vector<1x16x1xf32>
    %107 = arith.divf %105, %106 : vector<1x16x1xf32>
    %108 = vector.broadcast %107 : vector<1x16x1xf32> to vector<1x16x32xf32>
    %109 = arith.subf %103, %108 : vector<1x16x32xf32>
    %110 = arith.mulf %109, %109 : vector<1x16x32xf32>
    %cst_76 = arith.constant dense<0.000000e+00> : vector<1x16xf32>
    %111 = vector.multi_reduction <add>, %110, %cst_76 [2] : vector<1x16x32xf32> to vector<1x16xf32>
    %112 = vector.shape_cast %111 : vector<1x16xf32> to vector<1x16x1xf32>
    %cst_77 = arith.constant 3.200000e+01 : f32
    %113 = vector.broadcast %cst_77 : f32 to vector<1x16x1xf32>
    %114 = arith.divf %112, %113 : vector<1x16x1xf32>
    %115 = vector.broadcast %107 : vector<1x16x1xf32> to vector<1x16x32xf32>
    %116 = arith.subf %103, %115 : vector<1x16x32xf32>
    %cst_78 = arith.constant 9.99999974E-6 : f32
    %117 = vector.broadcast %cst_78 : f32 to vector<1x16x1xf32>
    %118 = arith.addf %114, %117 : vector<1x16x1xf32>
    %119 = math.rsqrt %118 : vector<1x16x1xf32>
    %120 = vector.broadcast %119 : vector<1x16x1xf32> to vector<1x16x32xf32>
    %121 = arith.mulf %116, %120 : vector<1x16x32xf32>
    %122 = vector.shape_cast %12 : vector<1x32xf32> to vector<1x1x32xf32>
    %123 = vector.broadcast %122 : vector<1x1x32xf32> to vector<1x16x32xf32>
    %124 = arith.mulf %121, %123 : vector<1x16x32xf32>
    %125 = vector.shape_cast %13 : vector<1x32xf32> to vector<1x1x32xf32>
    %126 = vector.broadcast %125 : vector<1x1x32xf32> to vector<1x16x32xf32>
    %127 = arith.addf %124, %126 : vector<1x16x32xf32>
    %128 = arith.addf %1, %127 : vector<1x16x32xf32>
    %129 = vector.shape_cast %2 : vector<1x8x32xf32> to vector<8x32xf32>
    %cst_79 = arith.constant dense<0.000000e+00> : vector<8x32xf32>
    %130 = tpu.matmul %129, %14, %cst_79 {dimension_numbers = #tpu.dot_dimension_numbers<[1], [0], [0], [1], [0, 0, 1, 1], [], []>} : vector<8x32xf32>, vector<32x32xf32>, vector<8x32xf32> -> vector<8x32xf32>
    %131 = vector.shape_cast %130 : vector<8x32xf32> to vector<1x8x32xf32>
    %132 = vector.shape_cast %2 : vector<1x8x32xf32> to vector<8x32xf32>
    %cst_80 = arith.constant dense<0.000000e+00> : vector<8x32xf32>
    %133 = tpu.matmul %132, %15, %cst_80 {dimension_numbers = #tpu.dot_dimension_numbers<[1], [0], [0], [1], [0, 0, 1, 1], [], []>} : vector<8x32xf32>, vector<32x32xf32>, vector<8x32xf32> -> vector<8x32xf32>
    %134 = vector.shape_cast %133 : vector<8x32xf32> to vector<1x8x32xf32>
    %135 = vector.shape_cast %2 : vector<1x8x32xf32> to vector<8x32xf32>
    %cst_81 = arith.constant dense<0.000000e+00> : vector<8x32xf32>
    %136 = tpu.matmul %135, %16, %cst_81 {dimension_numbers = #tpu.dot_dimension_numbers<[1], [0], [0], [1], [0, 0, 1, 1], [], []>} : vector<8x32xf32>, vector<32x32xf32>, vector<8x32xf32> -> vector<8x32xf32>
    %137 = vector.shape_cast %136 : vector<8x32xf32> to vector<1x8x32xf32>
    %cst_82 = arith.constant 0.000000e+00 : f32
    %138 = vector.broadcast %cst_82 : f32 to vector<1x8x32xf32>
    %139 = arith.cmpf ogt, %131, %138 : vector<1x8x32xf32>
    %cst_83 = arith.constant 1.000000e+00 : f32
    %140 = vector.broadcast %cst_83 : f32 to vector<1x8x32xf32>
    %141 = arith.addf %131, %140 : vector<1x8x32xf32>
    %142 = math.exp %131 : vector<1x8x32xf32>
    %143 = arith.select %139, %141, %142 : vector<1x8x32xi1>, vector<1x8x32xf32>
    %cst_84 = arith.constant 0.000000e+00 : f32
    %144 = vector.broadcast %cst_84 : f32 to vector<1x8x32xf32>
    %145 = arith.cmpf ogt, %134, %144 : vector<1x8x32xf32>
    %cst_85 = arith.constant 1.000000e+00 : f32
    %146 = vector.broadcast %cst_85 : f32 to vector<1x8x32xf32>
    %147 = arith.addf %134, %146 : vector<1x8x32xf32>
    %148 = math.exp %134 : vector<1x8x32xf32>
    %149 = arith.select %145, %147, %148 : vector<1x8x32xi1>, vector<1x8x32xf32>
    %cst_86 = arith.constant 1.250000e-01 : f32
    %150 = vector.broadcast %cst_86 : f32 to vector<1x8x32xf32>
    %151 = arith.mulf %137, %150 : vector<1x8x32xf32>
    "tpu.trace_start"() <{level = 10 : i32, message = "bsc,bsd->bcd"}> : () -> ()
    %cst_87 = arith.constant dense<0.000000e+00> : vector<1x32x32xf32>
    %152 = tpu.matmul %149, %151, %cst_87 {dimension_numbers = #tpu.dot_dimension_numbers<[1], [1], [2], [2], [0, 0, 0, 2, 1, 2], [0], [0]>} : vector<1x8x32xf32>, vector<1x8x32xf32>, vector<1x32x32xf32> -> vector<1x32x32xf32>
    "tpu.trace_stop"() : () -> ()
    %153 = vector.shape_cast %0 : vector<32x32xf32> to vector<1x32x32xf32>
    %154 = arith.mulf %152, %153 : vector<1x32x32xf32>
    %cst_88 = arith.constant dense<0.000000e+00> : vector<1x32xf32>
    %155 = vector.multi_reduction <add>, %149, %cst_88 [1] : vector<1x8x32xf32> to vector<1x32xf32>
    %156 = vector.shape_cast %155 : vector<1x32xf32> to vector<1x1x32xf32>
    %157 = vector.broadcast %156 : vector<1x1x32xf32> to vector<1x8x32xf32>
    %158 = arith.mulf %143, %157 : vector<1x8x32xf32>
    %159 = vector.shape_cast %158 : vector<1x8x32xf32> to vector<8x32xf32>
    %cst_89 = arith.constant dense<0.000000e+00> : vector<8x32xf32>
    %160 = tpu.matmul %159, %0, %cst_89 {dimension_numbers = #tpu.dot_dimension_numbers<[1], [0], [0], [1], [0, 0, 1, 1], [], []>} : vector<8x32xf32>, vector<32x32xf32>, vector<8x32xf32> -> vector<8x32xf32>
    %161 = vector.shape_cast %160 : vector<8x32xf32> to vector<1x8x32xf32>
    %cst_90 = arith.constant 9.99999997E-7 : f32
    %162 = vector.broadcast %cst_90 : f32 to vector<1x8x32xf32>
    %163 = arith.addf %161, %162 : vector<1x8x32xf32>
    %164 = tpu.reciprocal %163 {approx = true} : vector<1x8x32xf32> -> vector<1x8x32xf32>
    "tpu.trace_start"() <{level = 10 : i32, message = "blc,bcd->bld"}> : () -> ()
    %cst_91 = arith.constant dense<0.000000e+00> : vector<1x8x32xf32>
    %165 = tpu.matmul %143, %154, %cst_91 {dimension_numbers = #tpu.dot_dimension_numbers<[2], [1], [1], [2], [0, 0, 0, 1, 1, 2], [0], [0]>} : vector<1x8x32xf32>, vector<1x32x32xf32>, vector<1x8x32xf32> -> vector<1x8x32xf32>
    "tpu.trace_stop"() : () -> ()
    %166 = arith.mulf %165, %164 : vector<1x8x32xf32>
    %cst_92 = arith.constant 8.000000e+00 : f32
    %167 = vector.broadcast %cst_92 : f32 to vector<1x8x32xf32>
    %168 = arith.mulf %166, %167 : vector<1x8x32xf32>
    %169 = vector.shape_cast %168 : vector<1x8x32xf32> to vector<8x32xf32>
    %cst_93 = arith.constant dense<0.000000e+00> : vector<8x32xf32>
    %170 = tpu.matmul %169, %17, %cst_93 {dimension_numbers = #tpu.dot_dimension_numbers<[1], [0], [0], [1], [0, 0, 1, 1], [], []>} : vector<8x32xf32>, vector<32x32xf32>, vector<8x32xf32> -> vector<8x32xf32>
    %171 = vector.shape_cast %170 : vector<8x32xf32> to vector<1x8x32xf32>
    %cst_94 = arith.constant dense<0.000000e+00> : vector<1x8xf32>
    %172 = vector.multi_reduction <add>, %171, %cst_94 [2] : vector<1x8x32xf32> to vector<1x8xf32>
    %173 = vector.shape_cast %172 : vector<1x8xf32> to vector<1x8x1xf32>
    %cst_95 = arith.constant 3.200000e+01 : f32
    %174 = vector.broadcast %cst_95 : f32 to vector<1x8x1xf32>
    %175 = arith.divf %173, %174 : vector<1x8x1xf32>
    %176 = vector.broadcast %175 : vector<1x8x1xf32> to vector<1x8x32xf32>
    %177 = arith.subf %171, %176 : vector<1x8x32xf32>
    %178 = arith.mulf %177, %177 : vector<1x8x32xf32>
    %cst_96 = arith.constant dense<0.000000e+00> : vector<1x8xf32>
    %179 = vector.multi_reduction <add>, %178, %cst_96 [2] : vector<1x8x32xf32> to vector<1x8xf32>
    %180 = vector.shape_cast %179 : vector<1x8xf32> to vector<1x8x1xf32>
    %cst_97 = arith.constant 3.200000e+01 : f32
    %181 = vector.broadcast %cst_97 : f32 to vector<1x8x1xf32>
    %182 = arith.divf %180, %181 : vector<1x8x1xf32>
    %183 = vector.broadcast %175 : vector<1x8x1xf32> to vector<1x8x32xf32>
    %184 = arith.subf %171, %183 : vector<1x8x32xf32>
    %cst_98 = arith.constant 9.99999974E-6 : f32
    %185 = vector.broadcast %cst_98 : f32 to vector<1x8x1xf32>
    %186 = arith.addf %182, %185 : vector<1x8x1xf32>
    %187 = math.rsqrt %186 : vector<1x8x1xf32>
    %188 = vector.broadcast %187 : vector<1x8x1xf32> to vector<1x8x32xf32>
    %189 = arith.mulf %184, %188 : vector<1x8x32xf32>
    %190 = vector.shape_cast %18 : vector<1x32xf32> to vector<1x1x32xf32>
    %191 = vector.broadcast %190 : vector<1x1x32xf32> to vector<1x8x32xf32>
    %192 = arith.mulf %189, %191 : vector<1x8x32xf32>
    %193 = vector.shape_cast %19 : vector<1x32xf32> to vector<1x1x32xf32>
    %194 = vector.broadcast %193 : vector<1x1x32xf32> to vector<1x8x32xf32>
    %195 = arith.addf %192, %194 : vector<1x8x32xf32>
    %196 = vector.shape_cast %2 : vector<1x8x32xf32> to vector<8x32xf32>
    %cst_99 = arith.constant dense<0.000000e+00> : vector<8x64xf32>
    %197 = tpu.matmul %196, %20, %cst_99 {dimension_numbers = #tpu.dot_dimension_numbers<[1], [0], [0], [1], [0, 0, 1, 1], [], []>} : vector<8x32xf32>, vector<32x64xf32>, vector<8x64xf32> -> vector<8x64xf32>
    %198 = vector.shape_cast %197 : vector<8x64xf32> to vector<1x8x64xf32>
    %199 = vector.shape_cast %195 : vector<1x8x32xf32> to vector<8x32xf32>
    %cst_100 = arith.constant dense<0.000000e+00> : vector<8x64xf32>
    %200 = tpu.matmul %199, %21, %cst_100 {dimension_numbers = #tpu.dot_dimension_numbers<[1], [0], [0], [1], [0, 0, 1, 1], [], []>} : vector<8x32xf32>, vector<32x64xf32>, vector<8x64xf32> -> vector<8x64xf32>
    %201 = vector.shape_cast %200 : vector<8x64xf32> to vector<1x8x64xf32>
    %202 = arith.addf %198, %201 : vector<1x8x64xf32>
    %cst_101 = arith.constant 0.000000e+00 : f32
    %203 = vector.broadcast %cst_101 : f32 to vector<1x8x64xf32>
    %204 = arith.maximumf %202, %203 : vector<1x8x64xf32>
    %205 = vector.shape_cast %204 : vector<1x8x64xf32> to vector<8x64xf32>
    %cst_102 = arith.constant dense<0.000000e+00> : vector<8x32xf32>
    %206 = tpu.matmul %205, %22, %cst_102 {dimension_numbers = #tpu.dot_dimension_numbers<[1], [0], [0], [1], [0, 0, 1, 1], [], []>} : vector<8x64xf32>, vector<64x32xf32>, vector<8x32xf32> -> vector<8x32xf32>
    %207 = vector.shape_cast %206 : vector<8x32xf32> to vector<1x8x32xf32>
    %cst_103 = arith.constant dense<0.000000e+00> : vector<1x8xf32>
    %208 = vector.multi_reduction <add>, %207, %cst_103 [2] : vector<1x8x32xf32> to vector<1x8xf32>
    %209 = vector.shape_cast %208 : vector<1x8xf32> to vector<1x8x1xf32>
    %cst_104 = arith.constant 3.200000e+01 : f32
    %210 = vector.broadcast %cst_104 : f32 to vector<1x8x1xf32>
    %211 = arith.divf %209, %210 : vector<1x8x1xf32>
    %212 = vector.broadcast %211 : vector<1x8x1xf32> to vector<1x8x32xf32>
    %213 = arith.subf %207, %212 : vector<1x8x32xf32>
    %214 = arith.mulf %213, %213 : vector<1x8x32xf32>
    %cst_105 = arith.constant dense<0.000000e+00> : vector<1x8xf32>
    %215 = vector.multi_reduction <add>, %214, %cst_105 [2] : vector<1x8x32xf32> to vector<1x8xf32>
    %216 = vector.shape_cast %215 : vector<1x8xf32> to vector<1x8x1xf32>
    %cst_106 = arith.constant 3.200000e+01 : f32
    %217 = vector.broadcast %cst_106 : f32 to vector<1x8x1xf32>
    %218 = arith.divf %216, %217 : vector<1x8x1xf32>
    %219 = vector.broadcast %211 : vector<1x8x1xf32> to vector<1x8x32xf32>
    %220 = arith.subf %207, %219 : vector<1x8x32xf32>
    %cst_107 = arith.constant 9.99999974E-6 : f32
    %221 = vector.broadcast %cst_107 : f32 to vector<1x8x1xf32>
    %222 = arith.addf %218, %221 : vector<1x8x1xf32>
    %223 = math.rsqrt %222 : vector<1x8x1xf32>
    %224 = vector.broadcast %223 : vector<1x8x1xf32> to vector<1x8x32xf32>
    %225 = arith.mulf %220, %224 : vector<1x8x32xf32>
    %226 = vector.shape_cast %23 : vector<1x32xf32> to vector<1x1x32xf32>
    %227 = vector.broadcast %226 : vector<1x1x32xf32> to vector<1x8x32xf32>
    %228 = arith.mulf %225, %227 : vector<1x8x32xf32>
    %229 = vector.shape_cast %24 : vector<1x32xf32> to vector<1x1x32xf32>
    %230 = vector.broadcast %229 : vector<1x1x32xf32> to vector<1x8x32xf32>
    %231 = arith.addf %228, %230 : vector<1x8x32xf32>
    %232 = arith.addf %2, %231 : vector<1x8x32xf32>
    %c0_108 = arith.constant 0 : index
    %c0_109 = arith.constant 0 : index
    %233 = vector.load %arg26[%c0_108, %c0_109] : memref<32x32xf32, #tpu.memory_space<vmem>>, vector<32x32xf32>
    %c0_110 = arith.constant 0 : index
    %c0_111 = arith.constant 0 : index
    %234 = vector.load %arg27[%c0_110, %c0_111] : memref<32x32xf32, #tpu.memory_space<vmem>>, vector<32x32xf32>
    %c0_112 = arith.constant 0 : index
    %c0_113 = arith.constant 0 : index
    %235 = vector.load %arg28[%c0_112, %c0_113] : memref<32x32xf32, #tpu.memory_space<vmem>>, vector<32x32xf32>
    %c0_114 = arith.constant 0 : index
    %c0_115 = arith.constant 0 : index
    %236 = vector.load %arg29[%c0_114, %c0_115] : memref<32x32xf32, #tpu.memory_space<vmem>>, vector<32x32xf32>
    %c0_116 = arith.constant 0 : index
    %c0_117 = arith.constant 0 : index
    %237 = vector.load %arg30[%c0_116, %c0_117] : memref<1x32xf32, #tpu.memory_space<vmem>>, vector<1x32xf32>
    %c0_118 = arith.constant 0 : index
    %c0_119 = arith.constant 0 : index
    %238 = vector.load %arg31[%c0_118, %c0_119] : memref<1x32xf32, #tpu.memory_space<vmem>>, vector<1x32xf32>
    %c0_120 = arith.constant 0 : index
    %c0_121 = arith.constant 0 : index
    %239 = vector.load %arg32[%c0_120, %c0_121] : memref<32x64xf32, #tpu.memory_space<vmem>>, vector<32x64xf32>
    %c0_122 = arith.constant 0 : index
    %c0_123 = arith.constant 0 : index
    %240 = vector.load %arg33[%c0_122, %c0_123] : memref<32x64xf32, #tpu.memory_space<vmem>>, vector<32x64xf32>
    %c0_124 = arith.constant 0 : index
    %c0_125 = arith.constant 0 : index
    %241 = vector.load %arg34[%c0_124, %c0_125] : memref<64x32xf32, #tpu.memory_space<vmem>>, vector<64x32xf32>
    %c0_126 = arith.constant 0 : index
    %c0_127 = arith.constant 0 : index
    %242 = vector.load %arg35[%c0_126, %c0_127] : memref<1x32xf32, #tpu.memory_space<vmem>>, vector<1x32xf32>
    %c0_128 = arith.constant 0 : index
    %c0_129 = arith.constant 0 : index
    %243 = vector.load %arg36[%c0_128, %c0_129] : memref<1x32xf32, #tpu.memory_space<vmem>>, vector<1x32xf32>
    %244 = vector.shape_cast %128 : vector<1x16x32xf32> to vector<16x32xf32>
    %cst_130 = arith.constant dense<0.000000e+00> : vector<16x32xf32>
    %245 = tpu.matmul %244, %233, %cst_130 {dimension_numbers = #tpu.dot_dimension_numbers<[1], [0], [0], [1], [0, 0, 1, 1], [], []>} : vector<16x32xf32>, vector<32x32xf32>, vector<16x32xf32> -> vector<16x32xf32>
    %246 = vector.shape_cast %245 : vector<16x32xf32> to vector<1x16x32xf32>
    %247 = vector.shape_cast %232 : vector<1x8x32xf32> to vector<8x32xf32>
    %cst_131 = arith.constant dense<0.000000e+00> : vector<8x32xf32>
    %248 = tpu.matmul %247, %234, %cst_131 {dimension_numbers = #tpu.dot_dimension_numbers<[1], [0], [0], [1], [0, 0, 1, 1], [], []>} : vector<8x32xf32>, vector<32x32xf32>, vector<8x32xf32> -> vector<8x32xf32>
    %249 = vector.shape_cast %248 : vector<8x32xf32> to vector<1x8x32xf32>
    %250 = vector.shape_cast %232 : vector<1x8x32xf32> to vector<8x32xf32>
    %cst_132 = arith.constant dense<0.000000e+00> : vector<8x32xf32>
    %251 = tpu.matmul %250, %235, %cst_132 {dimension_numbers = #tpu.dot_dimension_numbers<[1], [0], [0], [1], [0, 0, 1, 1], [], []>} : vector<8x32xf32>, vector<32x32xf32>, vector<8x32xf32> -> vector<8x32xf32>
    %252 = vector.shape_cast %251 : vector<8x32xf32> to vector<1x8x32xf32>
    %cst_133 = arith.constant 0.000000e+00 : f32
    %253 = vector.broadcast %cst_133 : f32 to vector<1x16x32xf32>
    %254 = arith.cmpf ogt, %246, %253 : vector<1x16x32xf32>
    %cst_134 = arith.constant 1.000000e+00 : f32
    %255 = vector.broadcast %cst_134 : f32 to vector<1x16x32xf32>
    %256 = arith.addf %246, %255 : vector<1x16x32xf32>
    %257 = math.exp %246 : vector<1x16x32xf32>
    %258 = arith.select %254, %256, %257 : vector<1x16x32xi1>, vector<1x16x32xf32>
    %cst_135 = arith.constant 0.000000e+00 : f32
    %259 = vector.broadcast %cst_135 : f32 to vector<1x8x32xf32>
    %260 = arith.cmpf ogt, %249, %259 : vector<1x8x32xf32>
    %cst_136 = arith.constant 1.000000e+00 : f32
    %261 = vector.broadcast %cst_136 : f32 to vector<1x8x32xf32>
    %262 = arith.addf %249, %261 : vector<1x8x32xf32>
    %263 = math.exp %249 : vector<1x8x32xf32>
    %264 = arith.select %260, %262, %263 : vector<1x8x32xi1>, vector<1x8x32xf32>
    %cst_137 = arith.constant 1.250000e-01 : f32
    %265 = vector.broadcast %cst_137 : f32 to vector<1x8x32xf32>
    %266 = arith.mulf %252, %265 : vector<1x8x32xf32>
    "tpu.trace_start"() <{level = 10 : i32, message = "bsc,bsd->bcd"}> : () -> ()
    %cst_138 = arith.constant dense<0.000000e+00> : vector<1x32x32xf32>
    %267 = tpu.matmul %264, %266, %cst_138 {dimension_numbers = #tpu.dot_dimension_numbers<[1], [1], [2], [2], [0, 0, 0, 2, 1, 2], [0], [0]>} : vector<1x8x32xf32>, vector<1x8x32xf32>, vector<1x32x32xf32> -> vector<1x32x32xf32>
    "tpu.trace_stop"() : () -> ()
    %268 = vector.shape_cast %0 : vector<32x32xf32> to vector<1x32x32xf32>
    %269 = arith.mulf %267, %268 : vector<1x32x32xf32>
    %cst_139 = arith.constant dense<0.000000e+00> : vector<1x32xf32>
    %270 = vector.multi_reduction <add>, %264, %cst_139 [1] : vector<1x8x32xf32> to vector<1x32xf32>
    %271 = vector.shape_cast %270 : vector<1x32xf32> to vector<1x1x32xf32>
    %272 = vector.broadcast %271 : vector<1x1x32xf32> to vector<1x16x32xf32>
    %273 = arith.mulf %258, %272 : vector<1x16x32xf32>
    %274 = vector.shape_cast %273 : vector<1x16x32xf32> to vector<16x32xf32>
    %cst_140 = arith.constant dense<0.000000e+00> : vector<16x32xf32>
    %275 = tpu.matmul %274, %0, %cst_140 {dimension_numbers = #tpu.dot_dimension_numbers<[1], [0], [0], [1], [0, 0, 1, 1], [], []>} : vector<16x32xf32>, vector<32x32xf32>, vector<16x32xf32> -> vector<16x32xf32>
    %276 = vector.shape_cast %275 : vector<16x32xf32> to vector<1x16x32xf32>
    %cst_141 = arith.constant 9.99999997E-7 : f32
    %277 = vector.broadcast %cst_141 : f32 to vector<1x16x32xf32>
    %278 = arith.addf %276, %277 : vector<1x16x32xf32>
    %279 = tpu.reciprocal %278 {approx = true} : vector<1x16x32xf32> -> vector<1x16x32xf32>
    "tpu.trace_start"() <{level = 10 : i32, message = "blc,bcd->bld"}> : () -> ()
    %cst_142 = arith.constant dense<0.000000e+00> : vector<1x16x32xf32>
    %280 = tpu.matmul %258, %269, %cst_142 {dimension_numbers = #tpu.dot_dimension_numbers<[2], [1], [1], [2], [0, 0, 0, 1, 1, 2], [0], [0]>} : vector<1x16x32xf32>, vector<1x32x32xf32>, vector<1x16x32xf32> -> vector<1x16x32xf32>
    "tpu.trace_stop"() : () -> ()
    %281 = arith.mulf %280, %279 : vector<1x16x32xf32>
    %cst_143 = arith.constant 8.000000e+00 : f32
    %282 = vector.broadcast %cst_143 : f32 to vector<1x16x32xf32>
    %283 = arith.mulf %281, %282 : vector<1x16x32xf32>
    %284 = vector.shape_cast %283 : vector<1x16x32xf32> to vector<16x32xf32>
    %cst_144 = arith.constant dense<0.000000e+00> : vector<16x32xf32>
    %285 = tpu.matmul %284, %236, %cst_144 {dimension_numbers = #tpu.dot_dimension_numbers<[1], [0], [0], [1], [0, 0, 1, 1], [], []>} : vector<16x32xf32>, vector<32x32xf32>, vector<16x32xf32> -> vector<16x32xf32>
    %286 = vector.shape_cast %285 : vector<16x32xf32> to vector<1x16x32xf32>
    %cst_145 = arith.constant dense<0.000000e+00> : vector<1x16xf32>
    %287 = vector.multi_reduction <add>, %286, %cst_145 [2] : vector<1x16x32xf32> to vector<1x16xf32>
    %288 = vector.shape_cast %287 : vector<1x16xf32> to vector<1x16x1xf32>
    %cst_146 = arith.constant 3.200000e+01 : f32
    %289 = vector.broadcast %cst_146 : f32 to vector<1x16x1xf32>
    %290 = arith.divf %288, %289 : vector<1x16x1xf32>
    %291 = vector.broadcast %290 : vector<1x16x1xf32> to vector<1x16x32xf32>
    %292 = arith.subf %286, %291 : vector<1x16x32xf32>
    %293 = arith.mulf %292, %292 : vector<1x16x32xf32>
    %cst_147 = arith.constant dense<0.000000e+00> : vector<1x16xf32>
    %294 = vector.multi_reduction <add>, %293, %cst_147 [2] : vector<1x16x32xf32> to vector<1x16xf32>
    %295 = vector.shape_cast %294 : vector<1x16xf32> to vector<1x16x1xf32>
    %cst_148 = arith.constant 3.200000e+01 : f32
    %296 = vector.broadcast %cst_148 : f32 to vector<1x16x1xf32>
    %297 = arith.divf %295, %296 : vector<1x16x1xf32>
    %298 = vector.broadcast %290 : vector<1x16x1xf32> to vector<1x16x32xf32>
    %299 = arith.subf %286, %298 : vector<1x16x32xf32>
    %cst_149 = arith.constant 9.99999974E-6 : f32
    %300 = vector.broadcast %cst_149 : f32 to vector<1x16x1xf32>
    %301 = arith.addf %297, %300 : vector<1x16x1xf32>
    %302 = math.rsqrt %301 : vector<1x16x1xf32>
    %303 = vector.broadcast %302 : vector<1x16x1xf32> to vector<1x16x32xf32>
    %304 = arith.mulf %299, %303 : vector<1x16x32xf32>
    %305 = vector.shape_cast %237 : vector<1x32xf32> to vector<1x1x32xf32>
    %306 = vector.broadcast %305 : vector<1x1x32xf32> to vector<1x16x32xf32>
    %307 = arith.mulf %304, %306 : vector<1x16x32xf32>
    %308 = vector.shape_cast %238 : vector<1x32xf32> to vector<1x1x32xf32>
    %309 = vector.broadcast %308 : vector<1x1x32xf32> to vector<1x16x32xf32>
    %310 = arith.addf %307, %309 : vector<1x16x32xf32>
    %311 = vector.shape_cast %128 : vector<1x16x32xf32> to vector<16x32xf32>
    %cst_150 = arith.constant dense<0.000000e+00> : vector<16x64xf32>
    %312 = tpu.matmul %311, %239, %cst_150 {dimension_numbers = #tpu.dot_dimension_numbers<[1], [0], [0], [1], [0, 0, 1, 1], [], []>} : vector<16x32xf32>, vector<32x64xf32>, vector<16x64xf32> -> vector<16x64xf32>
    %313 = vector.shape_cast %312 : vector<16x64xf32> to vector<1x16x64xf32>
    %314 = vector.shape_cast %310 : vector<1x16x32xf32> to vector<16x32xf32>
    %cst_151 = arith.constant dense<0.000000e+00> : vector<16x64xf32>
    %315 = tpu.matmul %314, %240, %cst_151 {dimension_numbers = #tpu.dot_dimension_numbers<[1], [0], [0], [1], [0, 0, 1, 1], [], []>} : vector<16x32xf32>, vector<32x64xf32>, vector<16x64xf32> -> vector<16x64xf32>
    %316 = vector.shape_cast %315 : vector<16x64xf32> to vector<1x16x64xf32>
    %317 = arith.addf %313, %316 : vector<1x16x64xf32>
    %cst_152 = arith.constant 0.000000e+00 : f32
    %318 = vector.broadcast %cst_152 : f32 to vector<1x16x64xf32>
    %319 = arith.maximumf %317, %318 : vector<1x16x64xf32>
    %320 = vector.shape_cast %319 : vector<1x16x64xf32> to vector<16x64xf32>
    %cst_153 = arith.constant dense<0.000000e+00> : vector<16x32xf32>
    %321 = tpu.matmul %320, %241, %cst_153 {dimension_numbers = #tpu.dot_dimension_numbers<[1], [0], [0], [1], [0, 0, 1, 1], [], []>} : vector<16x64xf32>, vector<64x32xf32>, vector<16x32xf32> -> vector<16x32xf32>
    %322 = vector.shape_cast %321 : vector<16x32xf32> to vector<1x16x32xf32>
    %cst_154 = arith.constant dense<0.000000e+00> : vector<1x16xf32>
    %323 = vector.multi_reduction <add>, %322, %cst_154 [2] : vector<1x16x32xf32> to vector<1x16xf32>
    %324 = vector.shape_cast %323 : vector<1x16xf32> to vector<1x16x1xf32>
    %cst_155 = arith.constant 3.200000e+01 : f32
    %325 = vector.broadcast %cst_155 : f32 to vector<1x16x1xf32>
    %326 = arith.divf %324, %325 : vector<1x16x1xf32>
    %327 = vector.broadcast %326 : vector<1x16x1xf32> to vector<1x16x32xf32>
    %328 = arith.subf %322, %327 : vector<1x16x32xf32>
    %329 = arith.mulf %328, %328 : vector<1x16x32xf32>
    %cst_156 = arith.constant dense<0.000000e+00> : vector<1x16xf32>
    %330 = vector.multi_reduction <add>, %329, %cst_156 [2] : vector<1x16x32xf32> to vector<1x16xf32>
    %331 = vector.shape_cast %330 : vector<1x16xf32> to vector<1x16x1xf32>
    %cst_157 = arith.constant 3.200000e+01 : f32
    %332 = vector.broadcast %cst_157 : f32 to vector<1x16x1xf32>
    %333 = arith.divf %331, %332 : vector<1x16x1xf32>
    %334 = vector.broadcast %326 : vector<1x16x1xf32> to vector<1x16x32xf32>
    %335 = arith.subf %322, %334 : vector<1x16x32xf32>
    %cst_158 = arith.constant 9.99999974E-6 : f32
    %336 = vector.broadcast %cst_158 : f32 to vector<1x16x1xf32>
    %337 = arith.addf %333, %336 : vector<1x16x1xf32>
    %338 = math.rsqrt %337 : vector<1x16x1xf32>
    %339 = vector.broadcast %338 : vector<1x16x1xf32> to vector<1x16x32xf32>
    %340 = arith.mulf %335, %339 : vector<1x16x32xf32>
    %341 = vector.shape_cast %242 : vector<1x32xf32> to vector<1x1x32xf32>
    %342 = vector.broadcast %341 : vector<1x1x32xf32> to vector<1x16x32xf32>
    %343 = arith.mulf %340, %342 : vector<1x16x32xf32>
    %344 = vector.shape_cast %243 : vector<1x32xf32> to vector<1x1x32xf32>
    %345 = vector.broadcast %344 : vector<1x1x32xf32> to vector<1x16x32xf32>
    %346 = arith.addf %343, %345 : vector<1x16x32xf32>
    %347 = arith.addf %128, %346 : vector<1x16x32xf32>
    %348 = vector.shape_cast %232 : vector<1x8x32xf32> to vector<8x32xf32>
    %cst_159 = arith.constant dense<0.000000e+00> : vector<8x32xf32>
    %349 = tpu.matmul %348, %233, %cst_159 {dimension_numbers = #tpu.dot_dimension_numbers<[1], [0], [0], [1], [0, 0, 1, 1], [], []>} : vector<8x32xf32>, vector<32x32xf32>, vector<8x32xf32> -> vector<8x32xf32>
    %350 = vector.shape_cast %349 : vector<8x32xf32> to vector<1x8x32xf32>
    %351 = vector.shape_cast %347 : vector<1x16x32xf32> to vector<16x32xf32>
    %cst_160 = arith.constant dense<0.000000e+00> : vector<16x32xf32>
    %352 = tpu.matmul %351, %234, %cst_160 {dimension_numbers = #tpu.dot_dimension_numbers<[1], [0], [0], [1], [0, 0, 1, 1], [], []>} : vector<16x32xf32>, vector<32x32xf32>, vector<16x32xf32> -> vector<16x32xf32>
    %353 = vector.shape_cast %352 : vector<16x32xf32> to vector<1x16x32xf32>
    %354 = vector.shape_cast %347 : vector<1x16x32xf32> to vector<16x32xf32>
    %cst_161 = arith.constant dense<0.000000e+00> : vector<16x32xf32>
    %355 = tpu.matmul %354, %235, %cst_161 {dimension_numbers = #tpu.dot_dimension_numbers<[1], [0], [0], [1], [0, 0, 1, 1], [], []>} : vector<16x32xf32>, vector<32x32xf32>, vector<16x32xf32> -> vector<16x32xf32>
    %356 = vector.shape_cast %355 : vector<16x32xf32> to vector<1x16x32xf32>
    %cst_162 = arith.constant 0.000000e+00 : f32
    %357 = vector.broadcast %cst_162 : f32 to vector<1x8x32xf32>
    %358 = arith.cmpf ogt, %350, %357 : vector<1x8x32xf32>
    %cst_163 = arith.constant 1.000000e+00 : f32
    %359 = vector.broadcast %cst_163 : f32 to vector<1x8x32xf32>
    %360 = arith.addf %350, %359 : vector<1x8x32xf32>
    %361 = math.exp %350 : vector<1x8x32xf32>
    %362 = arith.select %358, %360, %361 : vector<1x8x32xi1>, vector<1x8x32xf32>
    %cst_164 = arith.constant 0.000000e+00 : f32
    %363 = vector.broadcast %cst_164 : f32 to vector<1x16x32xf32>
    %364 = arith.cmpf ogt, %353, %363 : vector<1x16x32xf32>
    %cst_165 = arith.constant 1.000000e+00 : f32
    %365 = vector.broadcast %cst_165 : f32 to vector<1x16x32xf32>
    %366 = arith.addf %353, %365 : vector<1x16x32xf32>
    %367 = math.exp %353 : vector<1x16x32xf32>
    %368 = arith.select %364, %366, %367 : vector<1x16x32xi1>, vector<1x16x32xf32>
    %cst_166 = arith.constant 6.250000e-02 : f32
    %369 = vector.broadcast %cst_166 : f32 to vector<1x16x32xf32>
    %370 = arith.mulf %356, %369 : vector<1x16x32xf32>
    "tpu.trace_start"() <{level = 10 : i32, message = "bsc,bsd->bcd"}> : () -> ()
    %cst_167 = arith.constant dense<0.000000e+00> : vector<1x32x32xf32>
    %371 = tpu.matmul %368, %370, %cst_167 {dimension_numbers = #tpu.dot_dimension_numbers<[1], [1], [2], [2], [0, 0, 0, 2, 1, 2], [0], [0]>} : vector<1x16x32xf32>, vector<1x16x32xf32>, vector<1x32x32xf32> -> vector<1x32x32xf32>
    "tpu.trace_stop"() : () -> ()
    %372 = vector.shape_cast %0 : vector<32x32xf32> to vector<1x32x32xf32>
    %373 = arith.mulf %371, %372 : vector<1x32x32xf32>
    %cst_168 = arith.constant dense<0.000000e+00> : vector<1x32xf32>
    %374 = vector.multi_reduction <add>, %368, %cst_168 [1] : vector<1x16x32xf32> to vector<1x32xf32>
    %375 = vector.shape_cast %374 : vector<1x32xf32> to vector<1x1x32xf32>
    %376 = vector.broadcast %375 : vector<1x1x32xf32> to vector<1x8x32xf32>
    %377 = arith.mulf %362, %376 : vector<1x8x32xf32>
    %378 = vector.shape_cast %377 : vector<1x8x32xf32> to vector<8x32xf32>
    %cst_169 = arith.constant dense<0.000000e+00> : vector<8x32xf32>
    %379 = tpu.matmul %378, %0, %cst_169 {dimension_numbers = #tpu.dot_dimension_numbers<[1], [0], [0], [1], [0, 0, 1, 1], [], []>} : vector<8x32xf32>, vector<32x32xf32>, vector<8x32xf32> -> vector<8x32xf32>
    %380 = vector.shape_cast %379 : vector<8x32xf32> to vector<1x8x32xf32>
    %cst_170 = arith.constant 9.99999997E-7 : f32
    %381 = vector.broadcast %cst_170 : f32 to vector<1x8x32xf32>
    %382 = arith.addf %380, %381 : vector<1x8x32xf32>
    %383 = tpu.reciprocal %382 {approx = true} : vector<1x8x32xf32> -> vector<1x8x32xf32>
    "tpu.trace_start"() <{level = 10 : i32, message = "blc,bcd->bld"}> : () -> ()
    %cst_171 = arith.constant dense<0.000000e+00> : vector<1x8x32xf32>
    %384 = tpu.matmul %362, %373, %cst_171 {dimension_numbers = #tpu.dot_dimension_numbers<[2], [1], [1], [2], [0, 0, 0, 1, 1, 2], [0], [0]>} : vector<1x8x32xf32>, vector<1x32x32xf32>, vector<1x8x32xf32> -> vector<1x8x32xf32>
    "tpu.trace_stop"() : () -> ()
    %385 = arith.mulf %384, %383 : vector<1x8x32xf32>
    %cst_172 = arith.constant 1.600000e+01 : f32
    %386 = vector.broadcast %cst_172 : f32 to vector<1x8x32xf32>
    %387 = arith.mulf %385, %386 : vector<1x8x32xf32>
    %388 = vector.shape_cast %387 : vector<1x8x32xf32> to vector<8x32xf32>
    %cst_173 = arith.constant dense<0.000000e+00> : vector<8x32xf32>
    %389 = tpu.matmul %388, %236, %cst_173 {dimension_numbers = #tpu.dot_dimension_numbers<[1], [0], [0], [1], [0, 0, 1, 1], [], []>} : vector<8x32xf32>, vector<32x32xf32>, vector<8x32xf32> -> vector<8x32xf32>
    %390 = vector.shape_cast %389 : vector<8x32xf32> to vector<1x8x32xf32>
    %cst_174 = arith.constant dense<0.000000e+00> : vector<1x8xf32>
    %391 = vector.multi_reduction <add>, %390, %cst_174 [2] : vector<1x8x32xf32> to vector<1x8xf32>
    %392 = vector.shape_cast %391 : vector<1x8xf32> to vector<1x8x1xf32>
    %cst_175 = arith.constant 3.200000e+01 : f32
    %393 = vector.broadcast %cst_175 : f32 to vector<1x8x1xf32>
    %394 = arith.divf %392, %393 : vector<1x8x1xf32>
    %395 = vector.broadcast %394 : vector<1x8x1xf32> to vector<1x8x32xf32>
    %396 = arith.subf %390, %395 : vector<1x8x32xf32>
    %397 = arith.mulf %396, %396 : vector<1x8x32xf32>
    %cst_176 = arith.constant dense<0.000000e+00> : vector<1x8xf32>
    %398 = vector.multi_reduction <add>, %397, %cst_176 [2] : vector<1x8x32xf32> to vector<1x8xf32>
    %399 = vector.shape_cast %398 : vector<1x8xf32> to vector<1x8x1xf32>
    %cst_177 = arith.constant 3.200000e+01 : f32
    %400 = vector.broadcast %cst_177 : f32 to vector<1x8x1xf32>
    %401 = arith.divf %399, %400 : vector<1x8x1xf32>
    %402 = vector.broadcast %394 : vector<1x8x1xf32> to vector<1x8x32xf32>
    %403 = arith.subf %390, %402 : vector<1x8x32xf32>
    %cst_178 = arith.constant 9.99999974E-6 : f32
    %404 = vector.broadcast %cst_178 : f32 to vector<1x8x1xf32>
    %405 = arith.addf %401, %404 : vector<1x8x1xf32>
    %406 = math.rsqrt %405 : vector<1x8x1xf32>
    %407 = vector.broadcast %406 : vector<1x8x1xf32> to vector<1x8x32xf32>
    %408 = arith.mulf %403, %407 : vector<1x8x32xf32>
    %409 = vector.shape_cast %237 : vector<1x32xf32> to vector<1x1x32xf32>
    %410 = vector.broadcast %409 : vector<1x1x32xf32> to vector<1x8x32xf32>
    %411 = arith.mulf %408, %410 : vector<1x8x32xf32>
    %412 = vector.shape_cast %238 : vector<1x32xf32> to vector<1x1x32xf32>
    %413 = vector.broadcast %412 : vector<1x1x32xf32> to vector<1x8x32xf32>
    %414 = arith.addf %411, %413 : vector<1x8x32xf32>
    %415 = vector.shape_cast %232 : vector<1x8x32xf32> to vector<8x32xf32>
    %cst_179 = arith.constant dense<0.000000e+00> : vector<8x64xf32>
    %416 = tpu.matmul %415, %239, %cst_179 {dimension_numbers = #tpu.dot_dimension_numbers<[1], [0], [0], [1], [0, 0, 1, 1], [], []>} : vector<8x32xf32>, vector<32x64xf32>, vector<8x64xf32> -> vector<8x64xf32>
    %417 = vector.shape_cast %416 : vector<8x64xf32> to vector<1x8x64xf32>
    %418 = vector.shape_cast %414 : vector<1x8x32xf32> to vector<8x32xf32>
    %cst_180 = arith.constant dense<0.000000e+00> : vector<8x64xf32>
    %419 = tpu.matmul %418, %240, %cst_180 {dimension_numbers = #tpu.dot_dimension_numbers<[1], [0], [0], [1], [0, 0, 1, 1], [], []>} : vector<8x32xf32>, vector<32x64xf32>, vector<8x64xf32> -> vector<8x64xf32>
    %420 = vector.shape_cast %419 : vector<8x64xf32> to vector<1x8x64xf32>
    %421 = arith.addf %417, %420 : vector<1x8x64xf32>
    %cst_181 = arith.constant 0.000000e+00 : f32
    %422 = vector.broadcast %cst_181 : f32 to vector<1x8x64xf32>
    %423 = arith.maximumf %421, %422 : vector<1x8x64xf32>
    %424 = vector.shape_cast %423 : vector<1x8x64xf32> to vector<8x64xf32>
    %cst_182 = arith.constant dense<0.000000e+00> : vector<8x32xf32>
    %425 = tpu.matmul %424, %241, %cst_182 {dimension_numbers = #tpu.dot_dimension_numbers<[1], [0], [0], [1], [0, 0, 1, 1], [], []>} : vector<8x64xf32>, vector<64x32xf32>, vector<8x32xf32> -> vector<8x32xf32>
    %426 = vector.shape_cast %425 : vector<8x32xf32> to vector<1x8x32xf32>
    %cst_183 = arith.constant dense<0.000000e+00> : vector<1x8xf32>
    %427 = vector.multi_reduction <add>, %426, %cst_183 [2] : vector<1x8x32xf32> to vector<1x8xf32>
    %428 = vector.shape_cast %427 : vector<1x8xf32> to vector<1x8x1xf32>
    %cst_184 = arith.constant 3.200000e+01 : f32
    %429 = vector.broadcast %cst_184 : f32 to vector<1x8x1xf32>
    %430 = arith.divf %428, %429 : vector<1x8x1xf32>
    %431 = vector.broadcast %430 : vector<1x8x1xf32> to vector<1x8x32xf32>
    %432 = arith.subf %426, %431 : vector<1x8x32xf32>
    %433 = arith.mulf %432, %432 : vector<1x8x32xf32>
    %cst_185 = arith.constant dense<0.000000e+00> : vector<1x8xf32>
    %434 = vector.multi_reduction <add>, %433, %cst_185 [2] : vector<1x8x32xf32> to vector<1x8xf32>
    %435 = vector.shape_cast %434 : vector<1x8xf32> to vector<1x8x1xf32>
    %cst_186 = arith.constant 3.200000e+01 : f32
    %436 = vector.broadcast %cst_186 : f32 to vector<1x8x1xf32>
    %437 = arith.divf %435, %436 : vector<1x8x1xf32>
    %438 = vector.broadcast %430 : vector<1x8x1xf32> to vector<1x8x32xf32>
    %439 = arith.subf %426, %438 : vector<1x8x32xf32>
    %cst_187 = arith.constant 9.99999974E-6 : f32
    %440 = vector.broadcast %cst_187 : f32 to vector<1x8x1xf32>
    %441 = arith.addf %437, %440 : vector<1x8x1xf32>
    %442 = math.rsqrt %441 : vector<1x8x1xf32>
    %443 = vector.broadcast %442 : vector<1x8x1xf32> to vector<1x8x32xf32>
    %444 = arith.mulf %439, %443 : vector<1x8x32xf32>
    %445 = vector.shape_cast %242 : vector<1x32xf32> to vector<1x1x32xf32>
    %446 = vector.broadcast %445 : vector<1x1x32xf32> to vector<1x8x32xf32>
    %447 = arith.mulf %444, %446 : vector<1x8x32xf32>
    %448 = vector.shape_cast %243 : vector<1x32xf32> to vector<1x1x32xf32>
    %449 = vector.broadcast %448 : vector<1x1x32xf32> to vector<1x8x32xf32>
    %450 = arith.addf %447, %449 : vector<1x8x32xf32>
    %451 = arith.addf %232, %450 : vector<1x8x32xf32>
    %c0_188 = arith.constant 0 : index
    %c0_189 = arith.constant 0 : index
    %c0_190 = arith.constant 0 : index
    %452 = vector.load %arg37[%c0_188, %c0_189, %c0_190] : memref<1x16x32xf32, #tpu.memory_space<vmem>>, vector<1x16x32xf32>
    tpu.vector_store %arg37[%c0_188, %c0_189, %c0_190], %347 {strides = array<i32>} : memref<1x16x32xf32, #tpu.memory_space<vmem>>, vector<1x16x32xf32>,
    %c0_191 = arith.constant 0 : index
    %c0_192 = arith.constant 0 : index
    %c0_193 = arith.constant 0 : index
    %453 = vector.load %arg38[%c0_191, %c0_192, %c0_193] : memref<1x8x32xf32, #tpu.memory_space<vmem>>, vector<1x8x32xf32>
    tpu.vector_store %arg38[%c0_191, %c0_192, %c0_193], %451 {strides = array<i32>} : memref<1x8x32xf32, #tpu.memory_space<vmem>>, vector<1x8x32xf32>,
    return
  }
  func.func @transform_0(%arg0: i32) -> (i32, i32, i32) {
    %c0_i32 = arith.constant 0 : i32
    %c0_i32_0 = arith.constant 0 : i32
    %c0_i32_1 = arith.constant 0 : i32
    return %arg0, %c0_i32, %c0_i32_0 : i32, i32, i32
  }
  func.func @transform_1(%arg0: i32) -> (i32, i32, i32) {
    %c0_i32 = arith.constant 0 : i32
    %c0_i32_0 = arith.constant 0 : i32
    %c0_i32_1 = arith.constant 0 : i32
    return %arg0, %c0_i32, %c0_i32_0 : i32, i32, i32
  }
  func.func @transform_2(%arg0: i32) -> (i32, i32) {
    %c0_i32 = arith.constant 0 : i32
    %c0_i32_0 = arith.constant 0 : i32
    %c0_i32_1 = arith.constant 0 : i32
    return %c0_i32, %c0_i32_0 : i32, i32
  }
  func.func @transform_3(%arg0: i32) -> (i32, i32) {
    %c0_i32 = arith.constant 0 : i32
    %c0_i32_0 = arith.constant 0 : i32
    %c0_i32_1 = arith.constant 0 : i32
    return %c0_i32, %c0_i32_0 : i32, i32
  }
  func.func @transform_4(%arg0: i32) -> (i32, i32) {
    %c0_i32 = arith.constant 0 : i32
    %c0_i32_0 = arith.constant 0 : i32
    %c0_i32_1 = arith.constant 0 : i32
    return %c0_i32, %c0_i32_0 : i32, i32
  }
  func.func @transform_5(%arg0: i32) -> (i32, i32) {
    %c0_i32 = arith.constant 0 : i32
    %c0_i32_0 = arith.constant 0 : i32
    %c0_i32_1 = arith.constant 0 : i32
    return %c0_i32, %c0_i32_0 : i32, i32
  }
  func.func @transform_6(%arg0: i32) -> (i32, i32) {
    %c0_i32 = arith.constant 0 : i32
    %c0_i32_0 = arith.constant 0 : i32
    %c0_i32_1 = arith.constant 0 : i32
    return %c0_i32, %c0_i32_0 : i32, i32
  }
  func.func @transform_7(%arg0: i32) -> (i32, i32) {
    %c0_i32 = arith.constant 0 : i32
    %c0_i32_0 = arith.constant 0 : i32
    %c0_i32_1 = arith.constant 0 : i32
    return %c0_i32, %c0_i32_0 : i32, i32
  }
  func.func @transform_8(%arg0: i32) -> (i32, i32) {
    %c0_i32 = arith.constant 0 : i32
    %c0_i32_0 = arith.constant 0 : i32
    %c0_i32_1 = arith.constant 0 : i32
    return %c0_i32, %c0_i32_0 : i32, i32
  }
  func.func @transform_9(%arg0: i32) -> (i32, i32) {
    %c0_i32 = arith.constant 0 : i32
    %c0_i32_0 = arith.constant 0 : i32
    %c0_i32_1 = arith.constant 0 : i32
    return %c0_i32, %c0_i32_0 : i32, i32
  }
  func.func @transform_10(%arg0: i32) -> (i32, i32) {
    %c0_i32 = arith.constant 0 : i32
    %c0_i32_0 = arith.constant 0 : i32
    %c0_i32_1 = arith.constant 0 : i32
    return %c0_i32, %c0_i32_0 : i32, i32
  }
  func.func @transform_11(%arg0: i32) -> (i32, i32) {
    %c0_i32 = arith.constant 0 : i32
    %c0_i32_0 = arith.constant 0 : i32
    %c0_i32_1 = arith.constant 0 : i32
    return %c0_i32, %c0_i32_0 : i32, i32
  }
  func.func @transform_12(%arg0: i32) -> (i32, i32) {
    %c0_i32 = arith.constant 0 : i32
    %c0_i32_0 = arith.constant 0 : i32
    %c0_i32_1 = arith.constant 0 : i32
    return %c0_i32, %c0_i32_0 : i32, i32
  }
  func.func @transform_13(%arg0: i32) -> (i32, i32) {
    %c0_i32 = arith.constant 0 : i32
    %c0_i32_0 = arith.constant 0 : i32
    %c0_i32_1 = arith.constant 0 : i32
    return %c0_i32, %c0_i32_0 : i32, i32
  }
  func.func @transform_14(%arg0: i32) -> (i32, i32) {
    %c0_i32 = arith.constant 0 : i32
    %c0_i32_0 = arith.constant 0 : i32
    %c0_i32_1 = arith.constant 0 : i32
    return %c0_i32, %c0_i32_0 : i32, i32
  }
  func.func @transform_15(%arg0: i32) -> (i32, i32) {
    %c0_i32 = arith.constant 0 : i32
    %c0_i32_0 = arith.constant 0 : i32
    %c0_i32_1 = arith.constant 0 : i32
    return %c0_i32, %c0_i32_0 : i32, i32
  }
  func.func @transform_16(%arg0: i32) -> (i32, i32) {
    %c0_i32 = arith.constant 0 : i32
    %c0_i32_0 = arith.constant 0 : i32
    %c0_i32_1 = arith.constant 0 : i32
    return %c0_i32, %c0_i32_0 : i32, i32
  }
  func.func @transform_17(%arg0: i32) -> (i32, i32) {
    %c0_i32 = arith.constant 0 : i32
    %c0_i32_0 = arith.constant 0 : i32
    %c0_i32_1 = arith.constant 0 : i32
    return %c0_i32, %c0_i32_0 : i32, i32
  }
  func.func @transform_18(%arg0: i32) -> (i32, i32) {
    %c0_i32 = arith.constant 0 : i32
    %c0_i32_0 = arith.constant 0 : i32
    %c0_i32_1 = arith.constant 0 : i32
    return %c0_i32, %c0_i32_0 : i32, i32
  }
  func.func @transform_19(%arg0: i32) -> (i32, i32) {
    %c0_i32 = arith.constant 0 : i32
    %c0_i32_0 = arith.constant 0 : i32
    %c0_i32_1 = arith.constant 0 : i32
    return %c0_i32, %c0_i32_0 : i32, i32
  }
  func.func @transform_20(%arg0: i32) -> (i32, i32) {
    %c0_i32 = arith.constant 0 : i32
    %c0_i32_0 = arith.constant 0 : i32
    %c0_i32_1 = arith.constant 0 : i32
    return %c0_i32, %c0_i32_0 : i32, i32
  }
  func.func @transform_21(%arg0: i32) -> (i32, i32) {
    %c0_i32 = arith.constant 0 : i32
    %c0_i32_0 = arith.constant 0 : i32
    %c0_i32_1 = arith.constant 0 : i32
    return %c0_i32, %c0_i32_0 : i32, i32
  }
  func.func @transform_22(%arg0: i32) -> (i32, i32) {
    %c0_i32 = arith.constant 0 : i32
    %c0_i32_0 = arith.constant 0 : i32
    %c0_i32_1 = arith.constant 0 : i32
    return %c0_i32, %c0_i32_0 : i32, i32
  }
  func.func @transform_23(%arg0: i32) -> (i32, i32) {
    %c0_i32 = arith.constant 0 : i32
    %c0_i32_0 = arith.constant 0 : i32
    %c0_i32_1 = arith.constant 0 : i32
    return %c0_i32, %c0_i32_0 : i32, i32
  }
  func.func @transform_24(%arg0: i32) -> (i32, i32) {
    %c0_i32 = arith.constant 0 : i32
    %c0_i32_0 = arith.constant 0 : i32
    %c0_i32_1 = arith.constant 0 : i32
    return %c0_i32, %c0_i32_0 : i32, i32
  }
  func.func @transform_25(%arg0: i32) -> (i32, i32) {
    %c0_i32 = arith.constant 0 : i32
    %c0_i32_0 = arith.constant 0 : i32
    %c0_i32_1 = arith.constant 0 : i32
    return %c0_i32, %c0_i32_0 : i32, i32
  }
  func.func @transform_26(%arg0: i32) -> (i32, i32) {
    %c0_i32 = arith.constant 0 : i32
    %c0_i32_0 = arith.constant 0 : i32
    %c0_i32_1 = arith.constant 0 : i32
    return %c0_i32, %c0_i32_0 : i32, i32
  }
  func.func @transform_27(%arg0: i32) -> (i32, i32) {
    %c0_i32 = arith.constant 0 : i32
    %c0_i32_0 = arith.constant 0 : i32
    %c0_i32_1 = arith.constant 0 : i32
    return %c0_i32, %c0_i32_0 : i32, i32
  }
  func.func @transform_28(%arg0: i32) -> (i32, i32) {
    %c0_i32 = arith.constant 0 : i32
    %c0_i32_0 = arith.constant 0 : i32
    %c0_i32_1 = arith.constant 0 : i32
    return %c0_i32, %c0_i32_0 : i32, i32
  }
  func.func @transform_29(%arg0: i32) -> (i32, i32) {
    %c0_i32 = arith.constant 0 : i32
    %c0_i32_0 = arith.constant 0 : i32
    %c0_i32_1 = arith.constant 0 : i32
    return %c0_i32, %c0_i32_0 : i32, i32
  }
  func.func @transform_30(%arg0: i32) -> (i32, i32) {
    %c0_i32 = arith.constant 0 : i32
    %c0_i32_0 = arith.constant 0 : i32
    %c0_i32_1 = arith.constant 0 : i32
    return %c0_i32, %c0_i32_0 : i32, i32
  }
  func.func @transform_31(%arg0: i32) -> (i32, i32) {
    %c0_i32 = arith.constant 0 : i32
    %c0_i32_0 = arith.constant 0 : i32
    %c0_i32_1 = arith.constant 0 : i32
    return %c0_i32, %c0_i32_0 : i32, i32
  }
  func.func @transform_32(%arg0: i32) -> (i32, i32) {
    %c0_i32 = arith.constant 0 : i32
    %c0_i32_0 = arith.constant 0 : i32
    %c0_i32_1 = arith.constant 0 : i32
    return %c0_i32, %c0_i32_0 : i32, i32
  }
  func.func @transform_33(%arg0: i32) -> (i32, i32) {
    %c0_i32 = arith.constant 0 : i32
    %c0_i32_0 = arith.constant 0 : i32
    %c0_i32_1 = arith.constant 0 : i32
    return %c0_i32, %c0_i32_0 : i32, i32
  }
  func.func @transform_34(%arg0: i32) -> (i32, i32) {
    %c0_i32 = arith.constant 0 : i32
    %c0_i32_0 = arith.constant 0 : i32
    %c0_i32_1 = arith.constant 0 : i32
    return %c0_i32, %c0_i32_0 : i32, i32
  }
  func.func @transform_35(%arg0: i32) -> (i32, i32) {
    %c0_i32 = arith.constant 0 : i32
    %c0_i32_0 = arith.constant 0 : i32
    %c0_i32_1 = arith.constant 0 : i32
    return %c0_i32, %c0_i32_0 : i32, i32
  }
  func.func @transform_36(%arg0: i32) -> (i32, i32, i32) {
    %c0_i32 = arith.constant 0 : i32
    %c0_i32_0 = arith.constant 0 : i32
    %c0_i32_1 = arith.constant 0 : i32
    return %arg0, %c0_i32, %c0_i32_0 : i32, i32, i32
  }
  func.func @transform_37(%arg0: i32) -> (i32, i32, i32) {
    %c0_i32 = arith.constant 0 : i32
    %c0_i32_0 = arith.constant 0 : i32
    %c0_i32_1 = arith.constant 0 : i32
    return %arg0, %c0_i32, %c0_i32_0 : i32, i32, i32
  }
}

</mosaic_0001>

<bundles_post_ra>
// kernel: tpu_custom_call.1
= control target key start
LH: loop header
LB: loop body
LE: loop exit
PB: predicated region body
PF: predicated region fallthrough
CT: control target
= control target key end

     0   :  { %s7363_s6 = smov 1   ;;  %s7364_s10 = smov 2   ;;  %s8553_s0 = inlined_call_operand.smem [shape: u32[38], index: -1, kind: input, shape index: {}] }
   0x1   :  { %s7435_s5 = sld [smem:[%s8553_s0]]   ;;  %s7365_s14 = smov 3  }
   0x2   :  { %s7440_s9 = sld [smem:[%s8553_s0 + %s7363_s6]]   ;;  %s7366_s18 = smov 4  }
   0x3   :  { %s7445_s13 = sld [smem:[%s8553_s0 + %s7364_s10]]   ;;  %s7367_s22 = smov 5  }
   0x4   :  { %s7450_s17 = sld [smem:[%s8553_s0 + %s7365_s14]]   ;;  %s7368_s26 = smov 6  }
   0x5   :  { %s7455_s21 = sld [smem:[%s8553_s0 + %s7366_s18]]   ;;  %s7369_s30 = smov 7  }
   0x6   :  { %s7460_s25 = sld [smem:[%s8553_s0 + %s7367_s22]]   ;;  %s7370_s4 = smov 8  }
   0x7   :  { %8583 = sst [smem:[#allocation47_spill]] %s7435_s5  ;;  %s7371_s10 = smov 9  }
   0x8   :  { %8584 = sst [smem:[#allocation48_spill]] %s7440_s9  ;;  %s7372_s15 = smov 10  }
   0x9   :  { %8585 = sst [smem:[#allocation49_spill]] %s7445_s13  ;;  %s7373_s20 = smov 11  }
   0xa   :  { %8586 = sst [smem:[#allocation50_spill]] %s7450_s17  ;;  %s7375_s1 = smov 13  }
   0xb   :  { %8587 = sst [smem:[#allocation51_spill]] %s7455_s21  ;;  %s7376_s7 = smov 14  }
   0xc   :  { %8588 = sst [smem:[#allocation52_spill]] %s7460_s25  ;;  %s7378_s22 = smov 16  }
   0xd   :  { %s7465_s29 = sld [smem:[%s8553_s0 + %s7368_s26]]   ;;  %s7374_s26 = smov 12  }
   0xe   :  { %s7470_s3 = sld [smem:[%s8553_s0 + %s7369_s30]]   ;;  %s7379_s28 = smov 17  }
   0xf   :  { %s7475_s8 = sld [smem:[%s8553_s0 + %s7370_s4]]  }
  0x10   :  { %s7480_s14 = sld [smem:[%s8553_s0 + %s7371_s10]]  }
  0x11   :  { %s7485_s19 = sld [smem:[%s8553_s0 + %s7372_s15]]   ;;  %s7377_s15 = smov 15  }
  0x12   :  { %s7490_s24 = sld [smem:[%s8553_s0 + %s7373_s20]]  }
  0x13   :  { %8589 = sst [smem:[#allocation53_spill]] %s7465_s29 }
  0x14   :  { %8590 = sst [smem:[#allocation54_spill]] %s7470_s3 }
  0x15   :  { %8591 = sst [smem:[#allocation55_spill]] %s7475_s8 }
  0x16   :  { %8592 = sst [smem:[#allocation56_spill]] %s7480_s14 }
  0x17   :  { %8593 = sst [smem:[#allocation57_spill]] %s7485_s19 }
  0x18   :  { %8594 = sst [smem:[#allocation58_spill]] %s7490_s24 }
  0x19   :  { %s7495_s30 = sld [smem:[%s8553_s0 + %s7374_s26]]  }
  0x1a   :  { %s7500_s6 = sld [smem:[%s8553_s0 + %s7375_s1]]  }
  0x1b   :  { %s7505_s12 = sld [smem:[%s8553_s0 + %s7376_s7]]   ;;  %s7380_s7 = smov 18  }
  0x1c   :  { %s7510_s20 = sld [smem:[%s8553_s0 + %s7377_s15]]   ;;  %s7381_s15 = smov 19  }
  0x1d   :  { %s7515_s27 = sld [smem:[%s8553_s0 + %s7378_s22]]   ;;  %s7382_s22 = smov 20  }
  0x1e   :  { %s7520_s4 = sld [smem:[%s8553_s0 + %s7379_s28]]   ;;  %s7383_s28 = smov 21  }
  0x1f   :  { %s7525_s24 = sld [smem:[%s8553_s0 + %s7380_s7]]   ;;  %s7384_s7 = smov 22  }
  0x20   :  { %8595 = sst [smem:[#allocation59_spill]] %s7500_s6 }
  0x21   :  { %8596 = sst [smem:[#allocation60_spill]] %s7505_s12 }
  0x22   :  { %8597 = sst [smem:[#allocation61_spill]] %s7510_s20 }
  0x23   :  { %s7530_s14 = sld [smem:[%s8553_s0 + %s7381_s15]]   ;;  %s7385_s15 = smov 23  }
  0x24   :  { %8598 = sst [smem:[#allocation62_spill]] %s7520_s4 }
  0x25   :  { %s7535_s29 = sld [smem:[%s8553_s0 + %s7382_s22]]   ;;  %s7386_s22 = smov 24  }
  0x26   :  { %s7540_s13 = sld [smem:[%s8553_s0 + %s7383_s28]]   ;;  %s7387_s28 = smov 25  }
  0x27   :  { %s7545_s25 = sld [smem:[%s8553_s0 + %s7384_s7]]   ;;  %s7388_s7 = smov 26  }
  0x28   :  { %s7550_s17 = sld [smem:[%s8553_s0 + %s7385_s15]]   ;;  %s7389_s15 = smov 27  }
  0x29   :  { %8599 = sst [smem:[#allocation63_spill]] %s7530_s14 }
  0x2a   :  { %s7560_s21 = sld [smem:[%s8553_s0 + %s7387_s28]]   ;;  %s7391_s28 = smov 29  }
  0x2b   :  { %8600 = sst [smem:[#allocation64_spill]] %s7535_s29 }
  0x2c   :  { %8601 = sst [smem:[#allocation65_spill]] %s7540_s13 }
  0x2d   :  { %8602 = sst [smem:[#allocation66_spill]] %s7545_s25 }
  0x2e   :  { %8603 = sst [smem:[#allocation67_spill]] %s7550_s17 }
  0x2f   :  { %s7555_s29 = sld [smem:[%s8553_s0 + %s7386_s22]]   ;;  %s7390_s22 = smov 28  }
  0x30   :  { %s7565_s25 = sld [smem:[%s8553_s0 + %s7388_s7]]   ;;  %s7392_s7 = smov 30  }
  0x31   :  { %s7570_s17 = sld [smem:[%s8553_s0 + %s7389_s15]]   ;;  %s7393_s15 = smov 31  }
  0x32   :  { %s7580_s5 = sld [smem:[%s8553_s0 + %s7391_s28]]   ;;  %s7395_s28 = smov 33  }
  0x33   :  { %s7585_s9 = sld [smem:[%s8553_s0 + %s7392_s7]]   ;;  %s7396_s7 = smov 34  }
  0x35   :  { %8604 = sst [smem:[#allocation68_spill]] %s7555_s29 }
  0x36   :  { %8605 = sst [smem:[#allocation69_spill]] %s7565_s25 }
  0x37   :  { %8606 = sst [smem:[#allocation70_spill]] %s7570_s17 }
  0x38   :  { %s7575_s29 = sld [smem:[%s8553_s0 + %s7390_s22]]   ;;  %s7394_s22 = smov 32  }
  0x39   :  { %8608 = sst [smem:[#allocation72_spill]] %s7580_s5 }
  0x3a   :  { %8609 = sst [smem:[#allocation73_spill]] %s7585_s9 }
  0x3b   :  { %s7590_s25 = sld [smem:[%s8553_s0 + %s7393_s15]]   ;;  %s7397_s15 = smov 35  }
  0x3c   :  { %s7600_s5 = sld [smem:[%s8553_s0 + %s7395_s28]]   ;;  %s7399_s28 = smov 37  }
  0x3d   :  { %s7605_s9 = sld [smem:[%s8553_s0 + %s7396_s7]]  }
  0x3e   :  { %8607 = sst [smem:[#allocation71_spill]] %s7575_s29 }
  0x3f   :  { %s7595_s29 = sld [smem:[%s8553_s0 + %s7394_s22]]   ;;  %s7398_s22 = smov 36  }
  0x40   :  { %s7610_s13 = sld [smem:[%s8553_s0 + %s7397_s15]]  }
  0x42   :  { %8611 = sst [smem:[#allocation75_spill]] %s7600_s5 }
  0x43   :  { %8612 = sst [smem:[#allocation76_spill]] %s7605_s9 }
  0x44   :  { %s7620_s5 = sld [smem:[%s8553_s0 + %s7399_s28]]  }
  0x45   :  { %8610 = sst [smem:[#allocation74_spill]] %s7595_s29 }
  0x46   :  { %8613 = sst [smem:[#allocation77_spill]] %s7610_s13 }
  0x47   :  { %s7615_s29 = sld [smem:[%s8553_s0 + %s7398_s22]]  }
  0x4a   :  { %8614 = sst [smem:[#allocation78_spill]] %s7620_s5 }
  0x4b   :  { %81 = vsyncpa [#allocation3], 0 }
  0x4c   :  { %83 = vsyncpa [#allocation3 + $0x1], 0 }
  0x4d   :  { %84 = vsyncpa [#allocation6], 0 }
  0x4e   :  { %85 = vsyncpa [#allocation9], 0 }
  0x4f   :  { %86 = vsyncpa [#allocation12], 0 }
  0x50   :  { %87 = vsyncpa [#allocation15], 0 }
  0x51   :  { %88 = vsyncpa [#allocation18], 0 }
  0x52   :  { %89 = vsyncpa [#allocation21], 0 }
  0x53   :  { %90 = vsyncpa [#allocation24], 0 }
  0x54   :  { %91 = vsyncpa [#allocation27], 0 }
  0x55   :  { %92 = vsyncpa [#allocation30], 0 }
  0x56   :  { %93 = vsyncpa [#allocation4], 0 }
  0x57   :  { %95 = vsyncpa [#allocation4 + $0x1], 0 }
  0x58   :  { %96 = vsyncpa [#allocation34], 0 }
  0x59   :  { %98 = vsyncpa [#allocation34 + $0x1], 0  ;;  %s7622_s7 = smov 0   ;;  %s7624_s10 = smov 0  }
  0x5a   :  { %s7626_s0 = smov 0   ;;  %s7628_s11 = smov 0  }
  0x5b LB: > { %s7400_s15 = smov [#allocation5]   ;;  %s7643_s18 = sadd.s32 4294967295, %s7361_s11   ;;  %s7361_s11 = sphi %s7628_s11, %s8686_s11   ;;  %s7357_s0 = sphi %s7626_s0, %s8685_s0   ;;  %s7353_s10 = sphi %s7624_s10, %s8684_s10   ;;  %s7349_s7 = sphi %s7622_s7, %s8683_s7  }
  0x5c   : > { %s955_s16 = sshll.u32 %s7400_s15, 4  ;;  %p5557_p0 = scmp.ge.s32.totalorder %s7361_s11, 1  ;;  %s956_s16 = int_to_ptr.vmem [resolvable:$true] %s955_s16 }
  0x5d   : > { %p8566_p1 = scmp.eq.s32.totalorder %s7643_s18, 0  ;;  %p927_p2 = scmp.lt.s32.totalorder %s7361_s11, 3 }
  0x5e   : > { %s7401_s23 = smov [#allocation8]   ;;  %s7402_s1 = smov [#allocation11]  }
  0x5f   : > { %p7648_p3 = pnand %p5557_p0, %p927_p2  ;;  %s979_s26 = sshll.u32 %s7401_s23, 4  ;;  %s7655_s26 = int_to_ptr.vmem [resolvable:$true] %s979_s26 }
  0x60   : > { %s1007_s2 = sshll.u32 %s7402_s1, 4  ;;  %s6746_s5 = scalar_lea.vmem %s956_s16, 16  ;;  %s7663_s2 = int_to_ptr.vmem [resolvable:$true] %s1007_s2 }
  0x61   : > { %s8615_s22 = scalar_select %p7648_p3, 1, 0 }
  0x62   : > { %p6472_p5 = pneg %p7648_p3  ;;  %p6747_p8 = scmp.ne.s32.totalorder %s956_s16, %s6746_s5 }
  0x63   : > { %s6753_s23 = scalar_lea.vmem %s956_s16, 32  ;;  %p6754_p11 = scmp.lt.s32.totalorder %s956_s16, %s956_s16 }
  0x64   : > { %p7659_p6 = pnand %p6472_p5, %p8566_p1  ;;  %p6755_p12 = scmp.lt.s32.totalorder %s6753_s23, %s6746_s5 }
  0x66   : > { %p7667_p7 = pneg %p7659_p6  ;;  %p6756_p13 = por %p6755_p12, %p6754_p11 }
  0x68   : > { %p6749_p9 = pnand %p6747_p8, %p7667_p7 }
  0x6a   : > { %p6750_p10 = pneg %p6749_p9 }
  0x6c   : > { %p6757_p0 = pnand %p6756_p13, %p6750_p10 }
  0x6e   : > { %6760 = shalt.err (!%p6757_p0)
}
  0x6f   : > { %s8618_s3 = sld [smem:[#allocation54_spill]]  ;;  %s6772_s1 = scalar_lea.vmem %s7655_s26, 512 }
  0x70   : > { %p6773_p2 = scmp.ne.s32.totalorder %s7655_s26, %s6772_s1  ;;  %p6780_p9 = scmp.lt.s32.totalorder %s7655_s26, %s7655_s26 }
  0x71   : > { %p6781_p4 = scmp.lt.s32.totalorder %s6772_s1, %s6772_s1 }
  0x72   : > { %p6775_p5 = pnand %p6773_p2, %p7667_p7 }
  0x73   : > { %p6782_p1 = por %p6781_p4, %p6780_p9 }
  0x74   : > { %p6776_p8 = pneg %p6775_p5 }
  0x75   : > { %6475 = dma.hbm_to_vmem [thread:$0]  (!%p7659_p6), %s8618_s3, 16, %s956_s16, [#allocation6]  }
  0x76   : > { %p6783_p11 = pnand %p6782_p1, %p6776_p8 }
  0x78   : > { %6786 = shalt.err (!%p6783_p11)
}
  0x79   : > { %s8567_s5 = smov 128   ;;  %s8619_s19 = sld [smem:[#allocation57_spill]] }
  0x7a   : > { %s8569_s16 = smov 8   ;;  %s6798_s23 = scalar_lea.vmem %s7663_s2, 16 }
  0x7b   : > { %p6799_p10 = scmp.ne.s32.totalorder %s7663_s2, %s6798_s23  ;;  %s6805_s1 = scalar_lea.vmem %s7663_s2, 32 }
  0x7c   : > { %p6806_p12 = scmp.lt.s32.totalorder %s7663_s2, %s7663_s2  ;;  %p6807_p13 = scmp.lt.s32.totalorder %s6805_s1, %s6798_s23 }
  0x7d   : > { %p6801_p1 = pnand %p6799_p10, %p7667_p7 }
  0x7e   : > { %p6808_p0 = por %p6807_p13, %p6806_p12 }
  0x7f   : > { %6481 = dma.hbm_to_vmem [thread:$0]  (!%p7659_p6), %s8619_s19, 512, %s7655_s26, [#allocation9], %s8567_s5, %s8567_s5, %s8569_s16  }
  0x80   : > { %p6802_p4 = pneg %p6801_p1 }
  0x82   : > { %p6809_p2 = pnand %p6808_p0, %p6802_p4 }
  0x84   : > { %6812 = shalt.err (!%p6809_p2)
}
  0x85   : > { %s8620_s6 = sld [smem:[#allocation59_spill]]  ;;  %s7405_s3 = smov [#allocation14]  }
  0x86   : > { %s1030_s26 = sshll.u32 %s7405_s3, 4  ;;  %s7406_s5 = smov [#allocation17]   ;;  %s1031_s26 = int_to_ptr.vmem [resolvable:$true] %s1030_s26 }
  0x87   : > { %s1056_s16 = sshll.u32 %s7406_s5, 4  ;;  %s6824_s19 = scalar_lea.vmem %s1031_s26, 512  ;;  %s1057_s16 = int_to_ptr.vmem [resolvable:$true] %s1056_s16 }
  0x88   : > { %p6825_p5 = scmp.ne.s32.totalorder %s1031_s26, %s6824_s19  ;;  %p6832_p11 = scmp.lt.s32.totalorder %s1031_s26, %s1031_s26 }
  0x89   : > { %p6833_p10 = scmp.lt.s32.totalorder %s6824_s19, %s6824_s19 }
  0x8a   : > { %p6827_p8 = pnand %p6825_p5, %p7667_p7 }
  0x8b   : > { %6487 = dma.hbm_to_vmem [thread:$0]  (!%p7659_p6), %s8620_s6, 16, %s7663_s2, [#allocation12]  }
  0x8c   : > { %p6828_p9 = pneg %p6827_p8  ;;  %p6834_p1 = por %p6833_p10, %p6832_p11 }
  0x8e   : > { %p6835_p4 = pnand %p6834_p1, %p6828_p9 }
  0x90   : > { %6838 = shalt.err (!%p6835_p4)
}
  0x91   : > { %s8621_s23 = smov 8   ;;  %s8622_s1 = smov 128  }
  0x92   : > { %s8623_s20 = sld [smem:[#allocation61_spill]]  ;;  %s6850_s3 = scalar_lea.vmem %s1057_s16, 512 }
  0x93   : > { %p6851_p12 = scmp.ne.s32.totalorder %s1057_s16, %s6850_s3  ;;  %p6858_p2 = scmp.lt.s32.totalorder %s1057_s16, %s1057_s16 }
  0x94   : > { %p6859_p5 = scmp.lt.s32.totalorder %s6850_s3, %s6850_s3 }
  0x95   : > { %p6853_p13 = pnand %p6851_p12, %p7667_p7 }
  0x96   : > { %p6860_p8 = por %p6859_p5, %p6858_p2 }
  0x97   : > { %p6854_p0 = pneg %p6853_p13 }
  0x98   : > { %6493 = dma.hbm_to_vmem [thread:$0]  (!%p7659_p6), %s8623_s20, 512, %s1031_s26, [#allocation15], %s8622_s1, %s8622_s1, %s8621_s23  }
  0x99   : > { %p6861_p11 = pnand %p6860_p8, %p6854_p0 }
  0x9b   : > { %6864 = shalt.err (!%p6861_p11)
}
  0x9c   : > { %s8624_s4 = sld [smem:[#allocation62_spill]]  ;;  %s7407_s19 = smov [#allocation20]  }
  0x9d   : > { %s1081_s2 = sshll.u32 %s7407_s19, 4  ;;  %s7408_s5 = smov [#allocation23]   ;;  %s1082_s2 = int_to_ptr.vmem [resolvable:$true] %s1081_s2 }
  0x9e   : > { %s1116_s26 = sshll.u32 %s7408_s5, 4  ;;  %s6876_s6 = scalar_lea.vmem %s1082_s2, 16  ;;  %s1117_s26 = int_to_ptr.vmem [resolvable:$true] %s1116_s26 }
  0x9f   : > { %p6877_p9 = scmp.ne.s32.totalorder %s1082_s2, %s6876_s6  ;;  %s6883_s3 = scalar_lea.vmem %s1082_s2, 32 }
  0xa0   : > { %p6884_p4 = scmp.lt.s32.totalorder %s1082_s2, %s1082_s2  ;;  %p6885_p12 = scmp.lt.s32.totalorder %s6883_s3, %s6876_s6 }
  0xa1   : > { %p6879_p10 = pnand %p6877_p9, %p7667_p7 }
  0xa2   : > { %6499 = dma.hbm_to_vmem [thread:$0]  (!%p7659_p6), %s8624_s4, 512, %s1057_s16, [#allocation18], %s8622_s1, %s8622_s1, %s8621_s23  }
  0xa3   : > { %p6880_p1 = pneg %p6879_p10  ;;  %p6886_p13 = por %p6885_p12, %p6884_p4 }
  0xa5   : > { %p6887_p0 = pnand %p6886_p13, %p6880_p1 }
  0xa7   : > { %6890 = shalt.err (!%p6887_p0)
}
  0xa8   : > { %s8625_s14 = sld [smem:[#allocation63_spill]]  ;;  %s6902_s16 = scalar_lea.vmem %s1117_s26, 512 }
  0xa9   : > { %p6903_p2 = scmp.ne.s32.totalorder %s1117_s26, %s6902_s16  ;;  %p6910_p11 = scmp.lt.s32.totalorder %s1117_s26, %s1117_s26 }
  0xaa   : > { %p6911_p9 = scmp.lt.s32.totalorder %s6902_s16, %s6902_s16 }
  0xab   : > { %p6905_p5 = pnand %p6903_p2, %p7667_p7 }
  0xac   : > { %p6912_p10 = por %p6911_p9, %p6910_p11 }
  0xad   : > { %p6906_p8 = pneg %p6905_p5 }
  0xae   : > { %6505 = dma.hbm_to_vmem [thread:$0]  (!%p7659_p6), %s8625_s14, 16, %s1082_s2, [#allocation21]  }
  0xaf   : > { %p6913_p3 = pnand %p6912_p10, %p6906_p8 }
  0xb1   : > { %6916 = shalt.err (!%p6913_p3)
}
  0xb2   : > { %6511 = dma.hbm_to_vmem [thread:$0]  (!%p7659_p6), %s7560_s21, 512, %s1117_s26, [#allocation24], %s8622_s1, %s8622_s1, %s8621_s23  }
  0xb3   : > { %s7409_s6 = smov [#allocation26]   ;;  %s7410_s2 = smov [#allocation29]  }
  0xb4   : > { %s1142_s19 = sshll.u32 %s7409_s6, 4  ;;  %s1174_s5 = sshll.u32 %s7410_s2, 4  ;;  %s1143_s19 = int_to_ptr.vmem [resolvable:$true] %s1142_s19  ;;  %s1175_s5 = int_to_ptr.vmem [resolvable:$true] %s1174_s5 }
  0xb5   : > { %s6928_s3 = scalar_lea.vmem %s1143_s19, 512  ;;  %p6936_p13 = scmp.lt.s32.totalorder %s1143_s19, %s1143_s19 }
  0xb6   : > { %p6929_p1 = scmp.ne.s32.totalorder %s1143_s19, %s6928_s3  ;;  %p6937_p3 = scmp.lt.s32.totalorder %s6928_s3, %s6928_s3 }
  0xb8   : > { %p6931_p4 = pnand %p6929_p1, %p7667_p7  ;;  %p6938_p0 = por %p6937_p3, %p6936_p13 }
  0xba   : > { %p6932_p12 = pneg %p6931_p4 }
  0xbc   : > { %p6939_p2 = pnand %p6938_p0, %p6932_p12 }
  0xbe   : > { %6942 = shalt.err (!%p6939_p2)
}
  0xbf   : > { %s8626_s17 = sld [smem:[#allocation70_spill]]  ;;  %s6954_s26 = scalar_lea.vmem %s1175_s5, 512 }
  0xc0   : > { %p6955_p5 = scmp.ne.s32.totalorder %s1175_s5, %s6954_s26  ;;  %p6962_p9 = scmp.lt.s32.totalorder %s1175_s5, %s1175_s5 }
  0xc1   : > { %p6963_p10 = scmp.lt.s32.totalorder %s6954_s26, %s6954_s26 }
  0xc2   : > { %p6957_p8 = pnand %p6955_p5, %p7667_p7 }
  0xc3   : > { %p6964_p1 = por %p6963_p10, %p6962_p9 }
  0xc4   : > { %p6958_p11 = pneg %p6957_p8 }
  0xc5   : > { %6517 = dma.hbm_to_vmem [thread:$0]  (!%p7659_p6), %s8626_s17, 512, %s1143_s19, [#allocation27], %s8622_s1, %s8622_s1, %s8621_s23  }
  0xc6   : > { %p6965_p4 = pnand %p6964_p1, %p6958_p11 }
  0xc8   : > { %6968 = shalt.err (!%p6965_p4)
}
  0xc9   : > { %6523 = dma.hbm_to_vmem [thread:$0]  (!%p7659_p6), %s7590_s25, 512, %s1175_s5, [#allocation30], %s8622_s1, %s8622_s1, %s8621_s23  }
  0xca   : > { %s7411_s16 = smov [#allocation7]   ;;  %s7412_s19 = smov [#allocation10]  }
  0xcb   : > { %s966_s6 = sshll.u32 %s7411_s16, 4  ;;  %s996_s2 = sshll.u32 %s7412_s19, 4  ;;  %s967_s6 = int_to_ptr.vmem [resolvable:$true] %s966_s6  ;;  %s997_s2 = int_to_ptr.vmem [resolvable:$true] %s996_s2 }
  0xcc   : > { %s6980_s3 = scalar_lea.vmem %s967_s6, 16  ;;  %s6987_s26 = scalar_lea.vmem %s967_s6, 32 }
  0xcd   : > { %p6981_p12 = scmp.ne.s32.totalorder %s967_s6, %s6980_s3  ;;  %p6988_p0 = scmp.lt.s32.totalorder %s967_s6, %s967_s6 }
  0xce   : > { %p6989_p2 = scmp.lt.s32.totalorder %s6987_s26, %s6980_s3 }
  0xcf   : > { %p6983_p13 = pnand %p6981_p12, %p7667_p7 }
  0xd0   : > { %p6990_p5 = por %p6989_p2, %p6988_p0 }
  0xd1   : > { %p6984_p3 = pneg %p6983_p13 }
  0xd3   : > { %p6991_p8 = pnand %p6990_p5, %p6984_p3 }
  0xd5   : > { %6994 = shalt.err (!%p6991_p8)
}
  0xd6   : > { %s8627_s8 = sld [smem:[#allocation55_spill]]  ;;  %s7006_s5 = scalar_lea.vmem %s997_s2, 16 }
  0xd7   : > { %p7007_p11 = scmp.ne.s32.totalorder %s997_s2, %s7006_s5  ;;  %s7013_s16 = scalar_lea.vmem %s997_s2, 32 }
  0xd8   : > { %p7014_p1 = scmp.lt.s32.totalorder %s997_s2, %s997_s2  ;;  %p7015_p4 = scmp.lt.s32.totalorder %s7013_s16, %s7006_s5 }
  0xd9   : > { %p7009_p9 = pnand %p7007_p11, %p7667_p7 }
  0xda   : > { %p7016_p12 = por %p7015_p4, %p7014_p1 }
  0xdb   : > { %p7010_p10 = pneg %p7009_p9 }
  0xdc   : > { %6478 = dma.hbm_to_vmem [thread:$0]  (!%p7659_p6), %s8627_s8, 16, %s967_s6, [#allocation6]  }
  0xdd   : > { %p7017_p13 = pnand %p7016_p12, %p7010_p10 }
  0xdf   : > { %7020 = shalt.err (!%p7017_p13)
}
  0xe0   : > { %6484 = dma.hbm_to_vmem [thread:$0]  (!%p7659_p6), %s7495_s30, 16, %s997_s2, [#allocation9]  }
  0xe1   : > { %s7413_s19 = smov [#allocation13]   ;;  %s7414_s6 = smov [#allocation16]  }
  0xe2   : > { %s1017_s3 = sshll.u32 %s7413_s19, 4  ;;  %s1043_s26 = sshll.u32 %s7414_s6, 4  ;;  %s1018_s3 = int_to_ptr.vmem [resolvable:$true] %s1017_s3  ;;  %s1044_s26 = int_to_ptr.vmem [resolvable:$true] %s1043_s26 }
  0xe3   : > { %s7032_s4 = scalar_lea.vmem %s1018_s3, 512  ;;  %p7040_p5 = scmp.lt.s32.totalorder %s1018_s3, %s1018_s3 }
  0xe4   : > { %p7033_p3 = scmp.ne.s32.totalorder %s1018_s3, %s7032_s4  ;;  %p7041_p8 = scmp.lt.s32.totalorder %s7032_s4, %s7032_s4 }
  0xe6   : > { %p7035_p0 = pnand %p7033_p3, %p7667_p7  ;;  %p7042_p11 = por %p7041_p8, %p7040_p5 }
  0xe8   : > { %p7036_p2 = pneg %p7035_p0 }
  0xea   : > { %p7043_p9 = pnand %p7042_p11, %p7036_p2 }
  0xec   : > { %7046 = shalt.err (!%p7043_p9)
}
  0xed   : > { %s8628_s12 = sld [smem:[#allocation60_spill]]  ;;  %s7058_s2 = scalar_lea.vmem %s1044_s26, 512 }
  0xee   : > { %p7059_p10 = scmp.ne.s32.totalorder %s1044_s26, %s7058_s2  ;;  %p7066_p12 = scmp.lt.s32.totalorder %s1044_s26, %s1044_s26 }
  0xef   : > { %p7067_p13 = scmp.lt.s32.totalorder %s7058_s2, %s7058_s2 }
  0xf0   : > { %p7061_p1 = pnand %p7059_p10, %p7667_p7 }
  0xf1   : > { %p7068_p3 = por %p7067_p13, %p7066_p12 }
  0xf2   : > { %p7062_p4 = pneg %p7061_p1 }
  0xf3   : > { %6490 = dma.hbm_to_vmem [thread:$0]  (!%p7659_p6), %s8628_s12, 512, %s1018_s3, [#allocation12], %s8622_s1, %s8622_s1, %s8621_s23  }
  0xf4   : > { %p7069_p0 = pnand %p7068_p3, %p7062_p4 }
  0xf6   : > { %7072 = shalt.err (!%p7069_p0)
}
  0xf7   : > { %6496 = dma.hbm_to_vmem [thread:$0]  (!%p7659_p6), %s7515_s27, 512, %s1044_s26, [#allocation15], %s8622_s1, %s8622_s1, %s8621_s23  }
  0xf8   : > { %s7415_s4 = smov [#allocation19]   ;;  %s7416_s16 = smov [#allocation22]  }
  0xf9   : > { %s1070_s5 = sshll.u32 %s7415_s4, 4  ;;  %s1094_s19 = sshll.u32 %s7416_s16, 4  ;;  %s1071_s5 = int_to_ptr.vmem [resolvable:$true] %s1070_s5  ;;  %s1095_s19 = int_to_ptr.vmem [resolvable:$true] %s1094_s19 }
  0xfa   : > { %s7084_s3 = scalar_lea.vmem %s1071_s5, 16  ;;  %s7091_s6 = scalar_lea.vmem %s1071_s5, 32 }
  0xfb   : > { %p7085_p2 = scmp.ne.s32.totalorder %s1071_s5, %s7084_s3  ;;  %p7092_p11 = scmp.lt.s32.totalorder %s1071_s5, %s1071_s5 }
  0xfc   : > { %p7093_p9 = scmp.lt.s32.totalorder %s7091_s6, %s7084_s3 }
  0xfd   : > { %p7087_p5 = pnand %p7085_p2, %p7667_p7 }
  0xfe   : > { %p7094_p10 = por %p7093_p9, %p7092_p11 }
  0xff   : > { %p7088_p8 = pneg %p7087_p5 }
 0x101   : > { %p7095_p1 = pnand %p7094_p10, %p7088_p8 }
 0x103   : > { %7098 = shalt.err (!%p7095_p1)
}
 0x104   : > { %6502 = dma.hbm_to_vmem [thread:$0]  (!%p7659_p6), %s7525_s24, 16, %s1071_s5, [#allocation18]  }
 0x105   : > { %s7110_s26 = scalar_lea.vmem %s1095_s19, 512  ;;  %p7118_p3 = scmp.lt.s32.totalorder %s1095_s19, %s1095_s19 }
 0x106   : > { %p7111_p4 = scmp.ne.s32.totalorder %s1095_s19, %s7110_s26  ;;  %p7119_p0 = scmp.lt.s32.totalorder %s7110_s26, %s7110_s26 }
 0x108   : > { %p7113_p12 = pnand %p7111_p4, %p7667_p7  ;;  %p7120_p2 = por %p7119_p0, %p7118_p3 }
 0x10a   : > { %p7114_p13 = pneg %p7113_p12 }
 0x10c   : > { %p7121_p5 = pnand %p7120_p2, %p7114_p13 }
 0x10e   : > { %7124 = shalt.err (!%p7121_p5)
}
 0x10f   : > { %s8629_s2 = sld [smem:[#allocation65_spill]]  ;;  %s7417_s4 = smov [#allocation25]  }
 0x110   : > { %s1129_s5 = sshll.u32 %s7417_s4, 4  ;;  %s7418_s16 = smov [#allocation28]   ;;  %s1130_s5 = int_to_ptr.vmem [resolvable:$true] %s1129_s5 }
 0x111   : > { %s1155_s3 = sshll.u32 %s7418_s16, 4  ;;  %s7136_s6 = scalar_lea.vmem %s1130_s5, 512  ;;  %s1156_s3 = int_to_ptr.vmem [resolvable:$true] %s1155_s3 }
 0x112   : > { %p7137_p8 = scmp.ne.s32.totalorder %s1130_s5, %s7136_s6  ;;  %p7144_p10 = scmp.lt.s32.totalorder %s1130_s5, %s1130_s5 }
 0x113   : > { %p7145_p1 = scmp.lt.s32.totalorder %s7136_s6, %s7136_s6 }
 0x114   : > { %p7139_p11 = pnand %p7137_p8, %p7667_p7 }
 0x115   : > { %6508 = dma.hbm_to_vmem [thread:$0]  (!%p7659_p6), %s8629_s2, 512, %s1095_s19, [#allocation21], %s8622_s1, %s8622_s1, %s8621_s23  }
 0x116   : > { %p7140_p9 = pneg %p7139_p11  ;;  %p7146_p4 = por %p7145_p1, %p7144_p10 }
 0x118   : > { %p7147_p12 = pnand %p7146_p4, %p7140_p9 }
 0x11a   : > { %7150 = shalt.err (!%p7147_p12)
}
 0x11b   : > { %s8630_s19 = sld [smem:[#allocation69_spill]]  ;;  %s7162_s26 = scalar_lea.vmem %s1156_s3, 512 }
 0x11c   : > { %p7163_p13 = scmp.ne.s32.totalorder %s1156_s3, %s7162_s26  ;;  %p7170_p2 = scmp.lt.s32.totalorder %s1156_s3, %s1156_s3 }
 0x11d   : > { %p7171_p5 = scmp.lt.s32.totalorder %s7162_s26, %s7162_s26 }
 0x11e   : > { %p7165_p3 = pnand %p7163_p13, %p7667_p7 }
 0x11f   : > { %p7172_p8 = por %p7171_p5, %p7170_p2 }
 0x120   : > { %p7166_p0 = pneg %p7165_p3 }
 0x121   : > { %6514 = dma.hbm_to_vmem [thread:$0]  (!%p7659_p6), %s8630_s19, 512, %s1130_s5, [#allocation24], %s8622_s1, %s8622_s1, %s8621_s23  }
 0x122   : > { %p7173_p11 = pnand %p7172_p8, %p7166_p0 }
 0x124   : > { %7176 = shalt.err (!%p7173_p11)
}
 0x125   : > { %s8631_s2 = sld [smem:[#allocation71_spill]]  ;;  %s7419_s4 = smov [#allocation31]  }
 0x126   : > { %s1187_s5 = sshll.u32 %s7419_s4, 4  ;;  %s1188_s5 = int_to_ptr.vmem [resolvable:$true] %s1187_s5 }
 0x127   : > { %s7188_s16 = scalar_lea.vmem %s1188_s5, 512  ;;  %p7196_p4 = scmp.lt.s32.totalorder %s1188_s5, %s1188_s5 }
 0x128   : > { %p7189_p9 = scmp.ne.s32.totalorder %s1188_s5, %s7188_s16  ;;  %p7197_p12 = scmp.lt.s32.totalorder %s7188_s16, %s7188_s16 }
 0x12a   : > { %p7191_p10 = pnand %p7189_p9, %p7667_p7  ;;  %p7198_p13 = por %p7197_p12, %p7196_p4 }
 0x12b   : > { %6520 = dma.hbm_to_vmem [thread:$0]  (!%p7659_p6), %s8631_s2, 512, %s1156_s3, [#allocation27], %s8622_s1, %s8622_s1, %s8621_s23  }
 0x12c   : > { %p7192_p1 = pneg %p7191_p10 }
 0x12e   : > { %p7199_p3 = pnand %p7198_p13, %p7192_p1 }
 0x130   : > { %7202 = shalt.err (!%p7199_p3)
}
 0x131   : > { %s8632_s6 = sld [smem:[#allocation74_spill]]  ;;  %s5556_s28 = sadd.s32 4294967294, %s7361_s11  }
 0x132   : > { %s7810_s15 = sadd.s32 1, %s7361_s11   ;;  %s137_s19 = sadd.s32 1, %s7357_s0 }
 0x133   : > { %s134_s3 = ssub.s32 %s7361_s11, %s7810_s15  ;;  %s8633_s26 = sld [smem:[#allocation48_spill]] }
 0x134   : > { %p135_p7 = scmp.eq.s32.totalorder %s134_s3, 0  ;;  %p144_p0 = scmp.ne.s32.totalorder %s7357_s0, %s7353_s10 }
 0x135   : > { %p145_p2 = scmp.eq.s32.totalorder %s7361_s11, 0  ;;  %p150_p5 = scmp.ne.s32.totalorder %s7353_s10, %s7349_s7 }
 0x136   : > { %s7821_s2 = scalar_select %p135_p7, %s7357_s0, %s137_s19  }
 0x137   : > { %6526 = dma.hbm_to_vmem [thread:$0]  (!%p7659_p6), %s8632_s6, 512, %s1188_s5, [#allocation30], %s8622_s1, %s8622_s1, %s8621_s23  }
 0x138   : > { %p7823_p8 = por %p145_p2, %p144_p0  ;;  %p8635_p11 = scmp.eq.s32.totalorder %s7643_s18, 0 }
 0x139   : > { %p888_p9 = scmp.eq.s32.totalorder %s7643_s18, 1  ;;  %p894_p10 = scmp.eq.s32.totalorder %s5556_s28, 1 }
 0x13a   : > { %p7829_p6 = por %p8635_p11, %p150_p5  ;;  %p6556_p1 = scmp.lt.s32.totalorder %s7361_s11, 2 }
 0x13b   : > { %s1218_s1 = sand.u32 1, %s7357_s0   ;;  %p7836_p4 = por %p888_p9, %p144_p0 }
 0x13c   : > { %s8636_s23 = scalar_select %p7829_p6, 1, 0 }
 0x13d   : > { %s8637_s5 = scalar_select %p7836_p4, 1, 0 }
 0x13e   : > { %p7840_p12 = por %p894_p10, %p150_p5  ;;  %s5577_s6 = sshll.u32 %s1218_s1, 3 }
 0x13f   : > { %s5578_s3 = sshll.u32 %s7361_s11, 7  ;;  %s1222_s28 = scalar_lea.vmem [#allocation2], %s5577_s6 }
 0x140   : > { %s8638_s16 = scalar_select %p7840_p12, 1, 0 }
 0x141   : > { %s7846_s19 = scalar_lea.hbm %s8633_s26, %s5578_s3  ;;  %s1229_s8 = sshll.u32 %s1222_s28, 4  ;;  %s1230_s8 = int_to_ptr.vmem [resolvable:$true] %s1229_s8 }
 0x142   : > { %p7850_p13 = pnand %p6556_p1, %p7823_p8  ;;  %s1219_s14 = scalar_lea.sflag [#allocation3], %s1218_s1 }
 0x143   : > { %s7203_s17 = scalar_lea.hbm %s7846_s19, 128  ;;  %s7208_s3 = scalar_lea.hbm %s8633_s26, 256 }
 0x144   : > { %s8639_s12 = scalar_select %p7850_p13, 1, 0 }
 0x145   : > { %p7204_p3 = scmp.ne.s32.totalorder %s7846_s19, %s7203_s17  ;;  %p7205_p7 = pneg %p7850_p13 }
 0x146   : > { %p7209_p5 = scmp.lt.s32.totalorder %s7846_s19, %s8633_s26  ;;  %p7210_p11 = scmp.lt.s32.totalorder %s7208_s3, %s7203_s17 }
 0x147   : > { %p7206_p0 = pnand %p7205_p7, %p7204_p3 }
 0x148   : > { %p7211_p9 = por %p7210_p11, %p7209_p5 }
 0x149   : > { %p7207_p2 = pneg %p7206_p0 }
 0x14b   : > { %p7212_p10 = pnand %p7211_p9, %p7207_p2 }
 0x14d   : > { %7215 = shalt.err (!%p7212_p10)
}
 0x14e   : > { %s7216_s6 = scalar_lea.vmem %s1230_s8, 128  ;;  %s7420_s4 = smov [#allocation2]  }
 0x14f   : > { %p7217_p12 = scmp.ne.s32.totalorder %s1230_s8, %s7216_s6  ;;  %s7221_s28 = sshll.u32 %s7420_s4, 4  ;;  %s7222_s28 = int_to_ptr.vmem [resolvable:$false] %s7221_s28 }
 0x150   : > { %s7223_s1 = scalar_lea.vmem %s7222_s28, 256  ;;  %p7224_p4 = scmp.lt.s32.totalorder %s1230_s8, %s7222_s28 }
 0x151   : > { %p7219_p8 = pnand %p7217_p12, %p7205_p7  ;;  %p7225_p6 = scmp.lt.s32.totalorder %s7223_s1, %s7216_s6 }
 0x153   : > { %p7220_p1 = pneg %p7219_p8  ;;  %p7226_p13 = por %p7225_p6, %p7224_p4 }
 0x155   : > { %p7227_p3 = pnand %p7226_p13, %p7220_p1 }
 0x157   : > { %7230 = shalt.err (!%p7227_p3)
}
 0x158   : > { %p8640_p0 = scmp.ne.s32.totalorder %s8639_s12, 0  ;;  %p8641_p2 = scmp.ne.s32.totalorder %s8615_s22, 0 }
 0x159   : > { %s7867_s17 = sand.u32 (!%p8641_p2), 1, %s7353_s10   ;;  %p8642_p6 = scmp.ne.s32.totalorder (!%p8641_p2), %s8636_s23, 0 }
 0x15a   : > { %6530 = dma.hbm_to_vmem [thread:$0]  (!%p8640_p0), %s7846_s19, 128, %s1230_s8, %s1219_s14  }
 0x15b   : > { %1238 = sbr.rel (%p8641_p2) target bundleno = 7593 (0x1da9), region = 164  ;;  %s8575_s3 = sshll.u32 (!%p8641_p2), %s7867_s17, 3 }
 0x15c   : > { %s1241_s4 = scalar_lea.sflag (!%p8641_p2), [#allocation3], %s7867_s17  ;;  %s7873_s6 = scalar_lea.vmem (!%p8641_p2), [#allocation2], %s8575_s3 }
 0x160   : > { %7300 = dma.done.wait (%p8642_p6), %s1241_s4, 128  }
 0x161   : > { %7302 = vsyncadd (%p8642_p6), %s1241_s4, 4294967168  ;;  %p8643_p4 = scmp.eq.s32.totalorder %s7643_s18, 0 }
 0x163   : > { %7304 = dma.done.wait (%p8643_p4), [#allocation6], 32   ;;  %p8644_p12 = pmov %p8643_p4 }
 0x164   : > { %p8645_p13 = pmov %p8643_p4 }
 0x165   : > { %7306 = vsyncadd (%p8644_p12), [#allocation6], 4294967264 }
 0x166   : > { %7308 = dma.done.wait (%p8645_p13), [#allocation9], 528   ;;  %p8646_p7 = pmov %p8643_p4 }
 0x167   : > { %p8647_p5 = pmov %p8643_p4 }
 0x168   : > { %7310 = vsyncadd (%p8646_p7), [#allocation9], 4294966768 }
 0x169   : > { %7312 = dma.done.wait (%p8647_p5), [#allocation12], 528   ;;  %p8648_p11 = pmov %p8643_p4 }
 0x16a   : > { %p8649_p9 = pmov %p8643_p4 }
 0x16b   : > { %7314 = vsyncadd (%p8648_p11), [#allocation12], 4294966768 }
 0x16c   : > { %7316 = dma.done.wait (%p8649_p9), [#allocation15], 1024   ;;  %p8650_p10 = pmov %p8643_p4 }
 0x16d   : > { %p8651_p8 = pmov %p8643_p4 }
 0x16e   : > { %7318 = vsyncadd (%p8650_p10), [#allocation15], 4294966272 }
 0x16f   : > { %7320 = dma.done.wait (%p8651_p8), [#allocation18], 528   ;;  %p8652_p1 = pmov %p8643_p4 }
 0x171   : > { %7322 = vsyncadd (%p8652_p1), [#allocation18], 4294966768  ;;  %p8653_p3 = pmov %p8652_p1 }
 0x172   : > { %p8654_p0 = pmov %p8652_p1 }
 0x173   : > { %7324 = dma.done.wait (%p8653_p3), [#allocation21], 528  }
 0x174   : > { %7326 = vsyncadd (%p8654_p0), [#allocation21], 4294966768  ;;  %p8655_p2 = pmov %p8654_p0 }
 0x175   : > { %p8656_p6 = pmov %p8654_p0 }
 0x176   : > { %7328 = dma.done.wait (%p8655_p2), [#allocation24], 1024  }
 0x177   : > { %7330 = vsyncadd (%p8656_p6), [#allocation24], 4294966272  ;;  %p8657_p4 = pmov %p8654_p0 }
 0x178   : > { %p8658_p12 = pmov %p8654_p0 }
 0x179   : > { %7332 = dma.done.wait (%p8657_p4), [#allocation27], 1024  }
 0x17a   : > { %7334 = vsyncadd (%p8658_p12), [#allocation27], 4294966272  ;;  %p8659_p13 = pmov %p8654_p0 }
 0x17b   : > { %p8660_p7 = pmov %p8654_p0 }
 0x17c   : > { %7336 = dma.done.wait (%p8659_p13), [#allocation30], 1024  }
 0x17d   : > { %7338 = vsyncadd (%p8660_p7), [#allocation30], 4294966272  ;;  %s8661_s8 = sld [smem:[#allocation47_spill]]  ;;  %p1417_p5 = scmp.lt.s32.totalorder %s7643_s18, 1  ;;  %vm1501_vm0 = vcmask 261120   ;;  %vm1787_vm5 = vcmask 130048  }
 0x17e   : > { %s8662_s14 = sld [smem:[#allocation51_spill]]  ;;  %vm7422_vm6 = vmmov 0   ;;  %vm2354_vm7 = vcmask 523264   ;;  %vm2736_vm10 = vcmask 64512   ;;  %p8678_p9 = scmp.ne.s32.totalorder %s8637_s5, 0 }
 0x17f   : > { %s8663_s12 = sld [smem:[#allocation50_spill]] }
 0x180   : > { %s1418_s22 = scalar_select %p1417_p5, %s7643_s18, 1 }
 0x181   : > { %s8664_s28 = sld [smem:[#allocation52_spill]] }
 0x182   : > { %s5692_s23 = sshll.u32 %s1418_s22, 4  ;;  %s8665_s1 = sld [smem:[#allocation49_spill]] }
 0x183   : > { %s7918_s19 = scalar_lea.vmem %s8661_s8, %s5692_s23  ;;  %s8666_s4 = sld [smem:[#allocation53_spill]] }
 0x184   : > { %v1436_v0 = vld [vmem:[%s8662_s14 + $0x18] sm:$0xff]  ;;  %v1435_v1 = vld [vmem:[%s8662_s14 + $0x10] sm:$0xff]  ;;  %v7923_v2 = vld [vmem:[%s7918_s19] sm:$0xff]  ;;  %s8667_s8 = sld [smem:[#allocation56_spill]] }
 0x185   : > { %5941 = vmatprep.subr.mxu1 %v1436_v0  ;;  %v1434_v3 = vld [vmem:[%s8662_s14 + $0x8] sm:$0xff]  ;;  %5949 = vmatprep.mubr.msk.f32.mxu1 %vm1501_vm0, %v7923_v2  ;;  %v1432_v4 = vld [vmem:[%s8663_s12 + $0x18] sm:$0xff]  ;;  %v1431_v5 = vld [vmem:[%s8663_s12 + $0x10] sm:$0xff]  ;;  %s8668_s22 = sld [smem:[#allocation58_spill]] }
 0x186   : > { %5942 = vmatpush3.msra.mxu1 %v1436_v0  ;;  %5930 = vmatprep.subr.mxu0 %v1432_v4  ;;  %v1433_v6 = vld [vmem:[%s8662_s14] sm:$0xff]  ;;  %v1430_v7 = vld [vmem:[%s8663_s12 + $0x8] sm:$0xff]  ;;  %s8670_s23 = sld [smem:[#allocation66_spill]] }
 0x187   : > { %5943 = vmatprep.subr.mxu1 %v1435_v1  ;;  %5931 = vmatpush3.msra.mxu0 %v1432_v4  ;;  %v7933_v8 = vld [vmem:[%s7918_s19 + $0x8] sm:$0xff]  ;;  %v1429_v9 = vld [vmem:[%s8663_s12] sm:$0xff]  ;;  %v1440_v10 = vld [vmem:[%s8664_s28 + $0x18] sm:$0xff]  ;;  %s8672_s3 = sld [smem:[#allocation68_spill]] }
 0x188   : > { %5944 = vmatpush3.msra.mxu1 %v1435_v1  ;;  %5932 = vmatprep.subr.mxu0 %v1431_v5  ;;  %v1439_v11 = vld [vmem:[%s8664_s28 + $0x10] sm:$0xff]  ;;  %v1438_v12 = vld [vmem:[%s8664_s28 + $0x8] sm:$0xff]  ;;  %v1437_v13 = vld [vmem:[%s8664_s28] sm:$0xff]  ;;  %s8676_s9 = sld [smem:[#allocation76_spill]] }
 0x189   : > { %5945 = vmatprep.subr.mxu1 %v1434_v3  ;;  %5933 = vmatpush3.msra.mxu0 %v1431_v5  ;;  %v7951_v14 = vld [vmem:[%s8665_s1 + $0x18] sm:$0xff]  ;;  %v7956_v15 = vld [vmem:[%s8665_s1 + $0x10] sm:$0xff]  ;;  %v7961_v16 = vld [vmem:[%s8665_s1 + $0x8] sm:$0xff]  ;;  %s8677_s13 = sld [smem:[#allocation77_spill]] }
 0x18a   : > { %5946 = vmatpush3.msra.mxu1 %v1434_v3  ;;  %5934 = vmatprep.subr.mxu0 %v1430_v7  ;;  %v7965_v17 = vld [vmem:[%s8665_s1] sm:$0xff]  ;;  %v1444_v1 = vld [vmem:[%s8666_s4 + $0x18] sm:$0xff]  ;;  %v1443_v3 = vld [vmem:[%s8666_s4 + $0x10] sm:$0xff] }
 0x18b   : > { %5947 = vmatprep.subr.mxu1 %v1433_v6  ;;  %5935 = vmatpush3.msra.mxu0 %v1430_v7  ;;  %v1442_v4 = vld [vmem:[%s8666_s4 + $0x8] sm:$0xff]  ;;  %v1441_v5 = vld [vmem:[%s8666_s4] sm:$0xff] }
 0x18c   : > { %5948 = vmatpush3.msra.mxu1 %v1433_v6  ;;  %5936 = vmatprep.subr.mxu0 %v1429_v9 }
 0x18d   : > { %5950 = vmatmul.mubr.msk.f32.vlgmr.msra.gmra.mxu1 %vm1501_vm0, %v7933_v8  ;;  %5937 = vmatpush3.msra.mxu0 %v1429_v9 }
 0x18e   : > { %5938 = vmatprep.mubr.msk.f32.mxu0 %vm1501_vm0, %v7923_v2  ;;  %5952 = vmatprep.subr.mxu0 %v1440_v10 }
 0x18f   : > { %5939 = vmatmul.mubr.msk.f32.vlgmr.msra.gmra.mxu0 %vm1501_vm0, %v7933_v8  ;;  %5973 = vmatprep.subr.mxu1 %v7951_v14 }
 0x190   : > { %5953 = vmatpush3.msra.mxu0 %v1440_v10  ;;  %5960 = vmatprep.mubr.msk.f32.mxu0 %vm1501_vm0, %v7923_v2 }
 0x191   : > { %5954 = vmatprep.subr.mxu0 %v1439_v11  ;;  %5974 = vmatpush3.msra.mxu1 %v7951_v14 }
 0x192   : > { %5955 = vmatpush3.msra.mxu0 %v1439_v11  ;;  %5975 = vmatprep.subr.mxu1 %v7956_v15 }
 0x193   : > { %5956 = vmatprep.subr.mxu0 %v1438_v12  ;;  %5976 = vmatpush3.msra.mxu1 %v7956_v15 }
 0x194   : > { %5957 = vmatpush3.msra.mxu0 %v1438_v12  ;;  %5977 = vmatprep.subr.mxu1 %v7961_v16 }
 0x195   : > { %5958 = vmatprep.subr.mxu0 %v1437_v13  ;;  %5978 = vmatpush3.msra.mxu1 %v7961_v16 }
 0x196   : > { %5959 = vmatpush3.msra.mxu0 %v1437_v13  ;;  %5979 = vmatprep.subr.mxu1 %v7965_v17 }
 0x197   : > { %5961 = vmatmul.mubr.msk.f32.vlgmr.msra.gmra.mxu0 %vm1501_vm0, %v7933_v8  ;;  %5980 = vmatpush3.msra.mxu1 %v7965_v17 }
 0x198   : > { %5995 = vmatprep.subr.mxu1 %v1444_v1 }
 0x24d   : > { %v5951_v18 = vpop.f32.mrf.mxu1 }
 0x24e   : > { %v1749_v19 = vmul.f32 1.442695, %v5951_v18  ;;  %v1746_v28 = vadd.f32 1.0, %v5951_v18  ;;  %vm1744_vm1 = vcmp.gt.f32.partialorder %v5951_v18, 0.0 }
 0x24f   : > { %v1649_v20 = vpop.f32.mrf.mxu1  ;;  %v5940_v22 = vpop.f32.mrf.mxu0 }
 0x250   : > { %6669 = vpow2.f32 %v1749_v19  ;;  %v1747_v21 = vmul.f32 1.442695, %v1649_v20  ;;  %v1739_v25 = vmul.f32 1.442695, %v5940_v22  ;;  %v1745_v31 = vadd.f32 1.0, %v1649_v20 }
 0x251   : > { %v1574_v23 = vpop.f32.mrf.mxu0  ;;  %vm1743_vm2 = vcmp.gt.f32.partialorder %v1649_v20, 0.0  ;;  %v1736_v43 = vadd.f32 1.0, %v5940_v22  ;;  %vm1734_vm3 = vcmp.gt.f32.partialorder %v5940_v22, 0.0 }
 0x252   : > { %6671 = vpow2.f32 %v1747_v21  ;;  %v1737_v27 = vmul.f32 1.442695, %v1574_v23  ;;  %v1735_v44 = vadd.f32 1.0, %v1574_v23  ;;  %vm1733_vm4 = vcmp.gt.f32.partialorder %v1574_v23, 0.0 }
 0x253   : > { %6673 = vpow2.f32 %v1739_v25 }
 0x254   : > { %6675 = vpow2.f32 %v1737_v27 }
 0x257   : > { %v5962_v24 = vpop.f32.mrf.mxu0 }
 0x258   : > { %v1754_v26 = vmul.f32 0.0625, %v5962_v24 }
 0x259   : > { %v1724_v30 = vpop.f32.mrf.mxu0 }
 0x25a   : > { %5963 = vmatprep.subr.mxu0 %v1754_v26  ;;  %v1753_v33 = vmul.f32 0.0625, %v1724_v30 }
 0x25b   : > { %5964 = vmatpush3.msra.mxu0 %v1754_v26 }
 0x25c   : > { %5965 = vmatprep.subr.mxu0 %v1753_v33 }
 0x25d   : > { %v6670_v29 = vpop.eup %6669  ;;  %5966 = vmatpush3.msra.mxu0 %v1753_v33 }
 0x25e   : > { %v1752_v32 = vsel %vm1744_vm1, %v1746_v28, %v6670_v29 }
 0x25f   : > { %v6672_v34 = vpop.eup %6671  ;;  %v1890_v37 = vsel %vm1501_vm0, %v1752_v32, 0.0 }
 0x260   : > { %v1751_v35 = vsel %vm1743_vm2, %v1745_v31, %v6672_v34  ;;  %v6674_v42 = vpop.eup %6673 }
 0x261   : > { %1755 = vxpose.xlu0.b32.start [1/2] (short) (narrow) %v1751_v35, 32  ;;  %v1889_v36 = vsel %vm1501_vm0, %v1751_v35, 0.0  ;;  %v6676_v45 = vpop.eup %6675  ;;  %v1742_v48 = vsel %vm1734_vm3, %v1736_v43, %v6674_v42  ;;  %v1447_v42 = vld [vmem:[%s8667_s8] sm:$0xff]  ;;  %v1451_v43 = vld [vmem:[#allocation8] sm:$0xff] }
 0x262   : > { %v1891_v38 = vadd.f32 %v1890_v37, %v1889_v36  ;;  %v1741_v49 = vsel %vm1733_vm4, %v1735_v44, %v6676_v45  ;;  %v1450_v36 = vld [vmem:[%s8667_s8 + $0x18] sm:$0xff]  ;;  %v1449_v37 = vld [vmem:[%s8667_s8 + $0x10] sm:$0xff]  ;;  %v7421_v44 = vmov 0.0  }
 0x263   : > { %v1462_v45 = vld [vmem:[%s8668_s22 + $0x38] sm:$0xff] }
 0x264   : > { %v1892_v39 = vrot.slane %v1891_v38, 4 }
 0x265   : > { %1756 = vxpose.xlu0.b32.end [2/2] (short) (narrow) %v1752_v32, 32 }
 0x266   : > { %v1893_v40 = vadd.f32 %v1892_v39, %v1891_v38  ;;  %v1454_v38 = vld [vmem:[#allocation8 + $0x18] sm:$0xff]  ;;  %v1453_v39 = vld [vmem:[#allocation8 + $0x10] sm:$0xff] }
 0x268   : > { %v1894_v41 = vrot.slane %v1893_v40, 2 }
 0x26a   : > { %v1895_v46 = vadd.f32 %v1894_v41, %v1893_v40  ;;  %v1448_v40 = vld [vmem:[%s8667_s8 + $0x8] sm:$0xff]  ;;  %v1452_v41 = vld [vmem:[#allocation8 + $0x8] sm:$0xff] }
 0x26c   : > { %v1896_v47 = vrot.slane %v1895_v46, 1 }
 0x26e   : > { %v1897_v50 = vadd.f32 %v1896_v47, %v1895_v46  ;;  %v1461_v46 = vld [vmem:[%s8668_s22 + $0x30] sm:$0xff]  ;;  %v1460_v47 = vld [vmem:[%s8668_s22 + $0x28] sm:$0xff] }
 0x270   : > { %v1899_v51 = vmul.f32 %v1897_v50, %v1742_v48  ;;  %v1898_v52 = vmul.f32 %v1897_v50, %v1741_v49 }
 0x272   : > { %5981 = vmatprep.mubr.msk.f32.mxu1 %vm1501_vm0, %v1898_v52 }
 0x273   : > { %5982 = vmatmul.mubr.msk.f32.vlgmr.msra.gmra.mxu1 %vm1501_vm0, %v1899_v51 }
 0x274   : > { %5996 = vmatpush3.msra.mxu1 %v1444_v1  ;;  %v1468_v1 = vld [vmem:[#allocation13 + $0x18] sm:$0xff] }
 0x275   : > { %5997 = vmatprep.subr.mxu1 %v1443_v3 }
 0x276   : > { %5998 = vmatpush3.msra.mxu1 %v1443_v3  ;;  %v1467_v3 = vld [vmem:[#allocation13 + $0x10] sm:$0xff] }
 0x277   : > { %5999 = vmatprep.subr.mxu1 %v1442_v4 }
 0x278   : > { %6000 = vmatpush3.msra.mxu1 %v1442_v4  ;;  %v1466_v4 = vld [vmem:[#allocation13 + $0x8] sm:$0xff] }
 0x279   : > { %6001 = vmatprep.subr.mxu1 %v1441_v5 }
 0x27a   : > { %6002 = vmatpush3.msra.mxu1 %v1441_v5  ;;  %v1465_v5 = vld [vmem:[#allocation13] sm:$0xff] }
 0x27b   : > { %6017 = vmatprep.subr.mxu1 %v1454_v38 }
 0x2dd   : > { %v1771_v53 = vpop.trf.xlu0 }
 0x2de   : > { %5967 = vmatprep.mubr.msk.f32.mxu0 %vm1787_vm5, %v1771_v53 }
 0x2e1   : > { %v1772_v54 = vpop.trf.xlu0 }
 0x2e2   : > { %5968 = vmatmul.mubr.msk.f32.vlgmr.msra.gmra.mxu0 %vm1787_vm5, %v1772_v54 }
 0x2e5   : > { %v1773_v55 = vpop.trf.xlu0 }
 0x2e6   : > { %5970 = vmatprep.mubr.msk.f32.mxu0 %vm1787_vm5, %v1773_v55 }
 0x2e9   : > { %v1774_v56 = vpop.trf.xlu0 }
 0x2ea   : > { %5971 = vmatmul.mubr.msk.f32.gmra.mxu0 %vm1787_vm5, %v1774_v56  ;;  %v5619_v56 = vld [vmem:[#allocation5] ss:$0 sm:$0xff] }
 0x2eb   : > { %5992 = vmatprep.mubr.msk.f32.mxu0 %vm1501_vm0, %v1741_v49 }
 0x333   : > { %v5983_v6 = vpop.f32.mrf.mxu1 }
 0x334   : > { %v1982_v9 = vadd.f32 1e-06, %v5983_v6  ;;  %v8015_v6 = vld [vmem:[%s7873_s6] sm:$0xff]  ;;  %s8669_s6 = sld [smem:[#allocation64_spill]] }
 0x335   : > { %v1972_v7 = vpop.f32.mrf.mxu1 }
 0x336   : > { %v1981_v10 = vadd.f32 1e-06, %v1972_v7  ;;  %6677 = vrcp.f32 %v1982_v9  ;;  %v1472_v7 = vld [vmem:[#allocation14 + $0x18] sm:$0xff]  ;;  %v1471_v9 = vld [vmem:[#allocation14 + $0x10] sm:$0xff] }
 0x338   : > { %6679 = vrcp.f32 %v1981_v10  ;;  %v1470_v10 = vld [vmem:[#allocation14 + $0x8] sm:$0xff] }
 0x3a2   : > { %v5969_v57 = vpop.f32.mrf.mxu0 }
 0x3a3   : > { %v1886_v63 = vmul.f32 %v5969_v57, %v7961_v16 }
 0x3a4   : > { %v1866_v58 = vpop.f32.mrf.mxu0 }
 0x3a5   : > { %v1885_v0 = vmul.f32 %v1866_v58, %v7965_v17  ;;  %v5620_v58 = vld [vmem:[#allocation7] ss:$0 sm:$0xff] }
 0x3aa   : > { %v5972_v59 = vpop.f32.mrf.mxu0 }
 0x3ab   : > { %v1888_v60 = vmul.f32 %v5972_v59, %v7951_v14 }
 0x3ac   : > { %v1876_v61 = vpop.f32.mrf.mxu0 }
 0x3ad   : > { %v1887_v62 = vmul.f32 %v1876_v61, %v7956_v15  ;;  %5984 = vmatprep.subr.mxu0 %v1888_v60 }
 0x3ae   : > { %5985 = vmatpush3.msra.mxu0 %v1888_v60 }
 0x3af   : > { %5986 = vmatprep.subr.mxu0 %v1887_v62 }
 0x3b0   : > { %5987 = vmatpush3.msra.mxu0 %v1887_v62 }
 0x3b1   : > { %5988 = vmatprep.subr.mxu0 %v1886_v63 }
 0x3b2   : > { %5989 = vmatpush3.msra.mxu0 %v1886_v63 }
 0x3b3   : > { %5990 = vmatprep.subr.mxu0 %v1885_v0 }
 0x3b4   : > { %5991 = vmatpush3.msra.mxu0 %v1885_v0 }
 0x3b5   : > { %5993 = vmatmul.mubr.msk.f32.vlgmr.msra.gmra.mxu0 %vm1501_vm0, %v1742_v48  ;;  %6006 = vmatprep.subr.mxu0 %v1450_v36  ;;  %v1459_v48 = vld [vmem:[%s8668_s22 + $0x20] sm:$0xff] }
 0x3b6   : > { %6014 = vmatprep.mubr.msk.f32.mxu0 %vm1501_vm0, %v7923_v2  ;;  %v6678_v2 = vpop.eup %6677  ;;  %6007 = vmatpush3.msra.mxu0 %v1450_v36 }
 0x3b7   : > { %v6680_v12 = vpop.eup %6679  ;;  %6008 = vmatprep.subr.mxu0 %v1449_v37 }
 0x3b8   : > { %6009 = vmatpush3.msra.mxu0 %v1449_v37 }
 0x3b9   : > { %6010 = vmatprep.subr.mxu0 %v1448_v40 }
 0x3ba   : > { %6011 = vmatpush3.msra.mxu0 %v1448_v40 }
 0x3bb   : > { %6012 = vmatprep.subr.mxu0 %v1447_v42 }
 0x3bc   : > { %6013 = vmatpush3.msra.mxu0 %v1447_v42 }
 0x3bd   : > { %6015 = vmatmul.mubr.msk.f32.vlgmr.msra.gmra.mxu0 %vm1501_vm0, %v7933_v8  ;;  %6028 = vmatprep.subr.mxu0 %v1462_v45  ;;  %v1458_v8 = vld [vmem:[%s8668_s22 + $0x18] sm:$0xff] }
 0x3be   : > { %6029 = vmatpush3.msra.mxu0 %v1462_v45 }
 0x3bf   : > { %6030 = vmatprep.subr.mxu0 %v1461_v46 }
 0x3c0   : > { %6031 = vmatpush3.msra.mxu0 %v1461_v46 }
 0x3c1   : > { %6032 = vmatprep.subr.mxu0 %v1460_v47 }
 0x3c2   : > { %6033 = vmatpush3.msra.mxu0 %v1460_v47 }
 0x3c3   : > { %6034 = vmatprep.subr.mxu0 %v1459_v48 }
 0x3c4   : > { %6035 = vmatpush3.msra.mxu0 %v1459_v48 }
 0x3c5   : > { %6036 = vmatprep.subr.mxu0 %v1458_v8 }
 0x3c6   : > { %6037 = vmatpush3.msra.mxu0 %v1458_v8 }
 0x475   : > { %v5994_v11 = vpop.f32.mrf.mxu0 }
 0x476   : > { %v2067_v13 = vmul.f32 %v6678_v2, %v5994_v11  ;;  %v1469_v11 = vld [vmem:[#allocation14] sm:$0xff]  ;;  %v1457_v2 = vld [vmem:[%s8668_s22 + $0x10] sm:$0xff] }
 0x477   : > { %v2057_v18 = vpop.f32.mrf.mxu0  ;;  %6038 = vmatprep.subr.mxu0 %v1457_v2 }
 0x478   : > { %v2066_v19 = vmul.f32 %v6680_v12, %v2057_v18  ;;  %v2069_v21 = vmul.f32 16.0, %v2067_v13  ;;  %6039 = vmatpush3.msra.mxu0 %v1457_v2  ;;  %v1456_v12 = vld [vmem:[%s8668_s22 + $0x8] sm:$0xff]  ;;  %v1455_v13 = vld [vmem:[%s8668_s22] sm:$0xff] }
 0x479   : > { %6040 = vmatprep.subr.mxu0 %v1456_v12 }
 0x47a   : > { %v2068_v20 = vmul.f32 16.0, %v2066_v19  ;;  %6041 = vmatpush3.msra.mxu0 %v1456_v12 }
 0x47b   : > { %6042 = vmatprep.subr.mxu0 %v1455_v13 }
 0x47c   : > { %6003 = vmatprep.mubr.msk.f32.mxu1 %vm1501_vm0, %v2068_v20  ;;  %6043 = vmatpush3.msra.mxu0 %v1455_v13 }
 0x47d   : > { %6004 = vmatmul.mubr.msk.f32.vlgmr.msra.gmra.mxu1 %vm1501_vm0, %v2069_v21  ;;  %6069 = vmatprep.subr.mxu0 %v7421_v44  ;;  %v6016_v18 = vpop.f32.mrf.mxu0 }
 0x47e   : > { %6018 = vmatpush3.msra.mxu1 %v1454_v38 }
 0x47f   : > { %6019 = vmatprep.subr.mxu1 %v1453_v39  ;;  %v2260_v20 = vpop.f32.mrf.mxu0 }
 0x480   : > { %6020 = vmatpush3.msra.mxu1 %v1453_v39 }
 0x481   : > { %6021 = vmatprep.subr.mxu1 %v1452_v41 }
 0x482   : > { %6022 = vmatpush3.msra.mxu1 %v1452_v41 }
 0x483   : > { %6023 = vmatprep.subr.mxu1 %v1451_v43 }
 0x484   : > { %6024 = vmatpush3.msra.mxu1 %v1451_v43 }
 0x485   : > { %6047 = vmatprep.subr.mxu1 %v7421_v44 }
 0x53d   : > { %v6005_v22 = vpop.f32.mrf.mxu1 }
 0x53e   : > { %v2154_v25 = vsel %vm1501_vm0, %v6005_v22, 0.0 }
 0x53f   : > { %v2142_v23 = vpop.f32.mrf.mxu1 }
 0x540   : > { %v2151_v24 = vsel %vm1501_vm0, %v2142_v23, 0.0 }
 0x541   : > { %2152 = vadd.xlane.f32.xlu1 %v2151_v24 }
 0x545   : > { %2155 = vadd.xlane.f32.xlu1 %v2154_v25 }
 0x5ca   : > { %v2153_v26 = vpop.xlane.xlu1 %2152 }
 0x5cb   : > { %v2158_v27 = vmul.f32 0.03125, %v2153_v26  ;;  %v1476_v26 = vld [vmem:[#allocation16 + $0x18] sm:$0xff] }
 0x5cd   : > { %v2160_v28 = vsub.f32 %v2142_v23, %v2158_v27  ;;  %v1475_v27 = vld [vmem:[#allocation16 + $0x10] sm:$0xff] }
 0x5ce   : > { %v2156_v29 = vpop.xlane.xlu1 %2155 }
 0x5cf   : > { %v2159_v30 = vmul.f32 0.03125, %v2156_v29  ;;  %v2162_v31 = vmul.f32 %v2160_v28, %v2160_v28  ;;  %v1474_v29 = vld [vmem:[#allocation16 + $0x8] sm:$0xff] }
 0x5d1   : > { %v2161_v32 = vsub.f32 %v6005_v22, %v2159_v30  ;;  %v2164_v33 = vsel %vm1501_vm0, %v2162_v31, 0.0  ;;  %v1473_v31 = vld [vmem:[#allocation16] sm:$0xff] }
 0x5d2   : > { %2165 = vadd.xlane.f32.xlu0 %v2164_v33 }
 0x5d3   : > { %v2163_v34 = vmul.f32 %v2161_v32, %v2161_v32 }
 0x5d5   : > { %v2167_v35 = vsel %vm1501_vm0, %v2163_v34, 0.0 }
 0x5d6   : > { %2168 = vadd.xlane.f32.xlu1 %v2167_v35 }
 0x65b   : > { %v2166_v49 = vpop.xlane.xlu0 %2165 }
 0x65c   : > { %v2170_v50 = vmul.f32 0.03125, %v2166_v49 }
 0x65e   : > { %v2172_v51 = vadd.f32 1e-05, %v2170_v50 }
 0x65f   : > { %v2169_v52 = vpop.xlane.xlu1 %2168 }
 0x660   : > { %6681 = vrsqrt.f32 %v2172_v51  ;;  %v2171_v53 = vmul.f32 0.03125, %v2169_v52 }
 0x662   : > { %v2173_v54 = vadd.f32 1e-05, %v2171_v53 }
 0x664   : > { %6683 = vrsqrt.f32 %v2173_v54 }
 0x66d   : > { %v6682_v55 = vpop.eup %6681 }
 0x66e   : > { %v2176_v57 = vmul.f32 %v6682_v55, %v2160_v28 }
 0x670   : > { %v2184_v59 = vmul.f32 %v5619_v56, %v2176_v57 }
 0x671   : > { %v6684_v60 = vpop.eup %6683 }
 0x672   : > { %v2177_v61 = vmul.f32 %v6684_v60, %v2161_v32  ;;  %v2192_v62 = vadd.f32 %v5620_v58, %v2184_v59 }
 0x674   : > { %v2185_v63 = vmul.f32 %v5619_v56, %v2177_v61  ;;  %6025 = vmatprep.mubr.msk.f32.mxu1 %vm1501_vm0, %v2192_v62  ;;  %v1480_v61 = vld [vmem:[#allocation17 + $0x18] sm:$0xff] }
 0x676   : > { %v2193_v0 = vadd.f32 %v5620_v58, %v2185_v63 }
 0x678   : > { %6026 = vmatmul.mubr.msk.f32.vlgmr.msra.gmra.mxu1 %vm1501_vm0, %v2193_v0 }
 0x679   : > { %6048 = vmatpush3.msra.mxu1 %v1468_v1  ;;  %6055 = vmatprep.mubr.msk.f32.mxu1 %vm7422_vm6, %v7421_v44 }
 0x67a   : > { %6049 = vmatprep.subr.mxu1 %v7421_v44 }
 0x67b   : > { %6050 = vmatpush3.msra.mxu1 %v1467_v3 }
 0x67c   : > { %6051 = vmatprep.subr.mxu1 %v7421_v44 }
 0x67d   : > { %6052 = vmatpush3.msra.mxu1 %v1466_v4 }
 0x67e   : > { %6053 = vmatprep.subr.mxu1 %v7421_v44 }
 0x67f   : > { %6054 = vmatpush3.msra.mxu1 %v1465_v5 }
 0x680   : > { %6058 = vmatprep.subr.mxu1 %v7421_v44  ;;  %6056 = vmatmul.mubr.msk.f32.vlgmr.msra.gmra.mxu1 %vm1501_vm0, %v8015_v6 }
 0x681   : > { %6059 = vmatpush3.msra.mxu1 %v1472_v7  ;;  %6066 = vmatprep.mubr.msk.f32.mxu1 %vm7422_vm6, %v7421_v44 }
 0x682   : > { %6060 = vmatprep.subr.mxu1 %v7421_v44 }
 0x683   : > { %6061 = vmatpush3.msra.mxu1 %v1471_v9 }
 0x684   : > { %6062 = vmatprep.subr.mxu1 %v7421_v44 }
 0x685   : > { %6063 = vmatpush3.msra.mxu1 %v1470_v10 }
 0x686   : > { %6064 = vmatprep.subr.mxu1 %v7421_v44 }
 0x687   : > { %6065 = vmatpush3.msra.mxu1 %v1469_v11 }
 0x688   : > { %6067 = vmatmul.mubr.msk.f32.vlgmr.msra.gmra.mxu1 %vm1501_vm0, %v8015_v6 }
 0x738   : > { %v6027_v19 = vpop.f32.mrf.mxu1 }
 0x739   : > { %v2351_v21 = vadd.f32 %v6027_v19, %v6016_v18 }
 0x73a   : > { %v2341_v22 = vpop.f32.mrf.mxu1 }
 0x73b   : > { %v2350_v23 = vadd.f32 %v2341_v22, %v2260_v20  ;;  %v2353_v25 = vmax.f32 %v2351_v21, 0.0 }
 0x73d   : > { %v2352_v24 = vmax.f32 %v2350_v23, 0.0 }
 0x73f   : > { %6044 = vmatprep.mubr.msk.f32.mxu0 %vm2354_vm7, %v2352_v24 }
 0x740   : > { %6045 = vmatmul.mubr.msk.f32.vlgmr.msra.gmra.mxu0 %vm2354_vm7, %v2353_v25  ;;  %v2549_v28 = vpop.f32.mrf.mxu1 }
 0x741   : > { %6070 = vmatpush3.msra.mxu0 %v1476_v26  ;;  %6077 = vmatprep.mubr.msk.f32.mxu0 %vm7422_vm6, %v7421_v44  ;;  %v2695_v35 = vmul.f32 1.442695, %v2549_v28  ;;  %v2694_v43 = vadd.f32 1.0, %v2549_v28  ;;  %vm2693_vm9 = vcmp.gt.f32.partialorder %v2549_v28, 0.0  ;;  %v1490_v28 = vld [vmem:[#allocation22 + $0x18] sm:$0xff] }
 0x742   : > { %6071 = vmatprep.subr.mxu0 %v7421_v44  ;;  %v6057_v30 = vpop.f32.mrf.mxu1 }
 0x743   : > { %6072 = vmatpush3.msra.mxu0 %v1475_v27  ;;  %v1486_v27 = vld [vmem:[%s8669_s6 + $0x18] sm:$0xff]  ;;  %v1489_v30 = vld [vmem:[#allocation22 + $0x10] sm:$0xff] }
 0x744   : > { %6073 = vmatprep.subr.mxu0 %v7421_v44 }
 0x745   : > { %6074 = vmatpush3.msra.mxu0 %v1474_v29  ;;  %v1485_v29 = vld [vmem:[%s8669_s6 + $0x10] sm:$0xff] }
 0x746   : > { %6075 = vmatprep.subr.mxu0 %v7421_v44 }
 0x747   : > { %6076 = vmatpush3.msra.mxu0 %v1473_v31  ;;  %v1484_v31 = vld [vmem:[%s8669_s6 + $0x8] sm:$0xff] }
 0x748   : > { %6078 = vmatmul.mubr.msk.f32.vlgmr.msra.gmra.mxu0 %vm1501_vm0, %v8015_v6  ;;  %v2619_v32 = vpop.f32.mrf.mxu1  ;;  %6088 = vmatprep.subr.mxu0 %v7421_v44 }
 0x749   : > { %v2700_v33 = vmul.f32 1.442695, %v2619_v32  ;;  %6089 = vmatpush3.msra.mxu0 %v7951_v14  ;;  %6096 = vmatprep.mubr.msk.f32.mxu0 %vm7422_vm6, %v7421_v44  ;;  %v2699_v36 = vadd.f32 1.0, %v2619_v32  ;;  %vm2698_vm8 = vcmp.gt.f32.partialorder %v2619_v32, 0.0  ;;  %v1488_v32 = vld [vmem:[#allocation22 + $0x8] sm:$0xff] }
 0x74a   : > { %6090 = vmatprep.subr.mxu0 %v7421_v44  ;;  %v6068_v34 = vpop.f32.mrf.mxu1 }
 0x74b   : > { %6685 = vpow2.f32 %v2700_v33  ;;  %6091 = vmatpush3.msra.mxu0 %v7956_v15  ;;  %v1483_v33 = vld [vmem:[%s8669_s6] sm:$0xff]  ;;  %s5200_s6 = scalar_lea.sflag [#allocation4], %s7867_s17 }
 0x74c   : > { %6092 = vmatprep.subr.mxu0 %v7421_v44  ;;  %6687 = vpow2.f32 %v2695_v35  ;;  %v1487_v34 = vld [vmem:[#allocation22] sm:$0xff] }
 0x74d   : > { %6093 = vmatpush3.msra.mxu0 %v7961_v16  ;;  %v1498_v35 = vld [vmem:[%s8670_s23 + $0x38] sm:$0xff] }
 0x74e   : > { %6094 = vmatprep.subr.mxu0 %v7421_v44 }
 0x74f   : > { %6095 = vmatpush3.msra.mxu0 %v7965_v17 }
 0x750   : > { %6110 = vmatprep.subr.mxu0 %v7421_v44 }
 0x758   : > { %v6686_v37 = vpop.eup %6685 }
 0x759   : > { %v2702_v38 = vsel %vm2698_vm8, %v2699_v36, %v6686_v37  ;;  %v6688_v45 = vpop.eup %6687  ;;  %v1497_v36 = vld [vmem:[%s8670_s23 + $0x30] sm:$0xff]  ;;  %v1496_v37 = vld [vmem:[%s8670_s23 + $0x28] sm:$0xff] }
 0x75a   : > { %v2838_v39 = vsel %vm1501_vm0, %v2702_v38, 0.0  ;;  %2704 = vxpose.xlu1.b32.start.end [1/1] (short) (narrow) %v2702_v38, 32  ;;  %v2697_v48 = vsel %vm2693_vm9, %v2694_v43, %v6688_v45  ;;  %v1495_v38 = vld [vmem:[%s8670_s23 + $0x20] sm:$0xff]  ;;  %v5639_v45 = vld [vmem:[#allocation19] ss:$0 sm:$0xff] }
 0x75b   : > { %v2839_v40 = vrot.slane %v2838_v39, 4 }
 0x75d   : > { %v2840_v41 = vadd.f32 %v2839_v40, %v2838_v39  ;;  %v1494_v39 = vld [vmem:[%s8670_s23 + $0x18] sm:$0xff] }
 0x75f   : > { %v2841_v42 = vrot.slane %v2840_v41, 2 }
 0x761   : > { %v2842_v46 = vadd.f32 %v2841_v42, %v2840_v41 }
 0x763   : > { %v2843_v47 = vrot.slane %v2842_v46, 1 }
 0x765   : > { %v2844_v8 = vadd.f32 %v2843_v47, %v2842_v46  ;;  %v5640_v47 = vld [vmem:[#allocation20] ss:$0 sm:$0xff] }
 0x767   : > { %v2845_v49 = vmul.f32 %v2844_v8, %v2697_v48 }
 0x769   : > { %6097 = vmatmul.mubr.msk.f32.vlgmr.msra.gmra.mxu0 %vm1501_vm0, %v2845_v49 }
 0x76a   : > { %6118 = vmatprep.mubr.msk.f32.mxu0 %vm7422_vm6, %v7421_v44  ;;  %6111 = vmatpush3.msra.mxu0 %v1480_v61 }
 0x76b   : > { %6112 = vmatprep.subr.mxu0 %v7421_v44 }
 0x7d6   : > { %v2720_v50 = vpop.trf.xlu1 }
 0x7d7   : > { %6082 = vmatprep.mubr.msk.f32.mxu1 %vm2736_vm10, %v2720_v50  ;;  %v1493_v50 = vld [vmem:[%s8670_s23 + $0x10] sm:$0xff] }
 0x7da   : > { %v2721_v52 = vpop.trf.xlu1 }
 0x7de   : > { %v2722_v55 = vpop.trf.xlu1 }
 0x7e2   : > { %v2723_v58 = vpop.trf.xlu1 }
 0x800   : > { %v8057_v51 = vpop.f32.mrf.mxu0 }
 0x801   : > { %v2439_v21 = vsel %vm1501_vm0, %v8057_v51, 0.0 }
 0x802   : > { %v8059_v53 = vpop.f32.mrf.mxu0 }
 0x803   : > { %v2436_v20 = vsel %vm1501_vm0, %v8059_v53, 0.0 }
 0x808   : > { %v2689_v54 = vpop.f32.mrf.mxu0 }
 0x809   : > { %v2703_v56 = vmul.f32 0.125, %v2689_v54  ;;  %v1492_v54 = vld [vmem:[%s8670_s23 + $0x8] sm:$0xff] }
 0x80a   : > { %v6079_v57 = vpop.f32.mrf.mxu0 }
 0x80b   : > { %6080 = vmatprep.subr.mxu1 %v2703_v56 }
 0x80c   : > { %6081 = vmatpush3.msra.mxu1 %v2703_v56 }
 0x80d   : > { %6083 = vmatmul.mubr.msk.f32.vlgmr.msra.gmra.mxu1 %vm2736_vm10, %v2721_v52  ;;  %6099 = vmatprep.subr.mxu1 %v7421_v44 }
 0x80e   : > { %6085 = vmatprep.mubr.msk.f32.mxu1 %vm2736_vm10, %v2722_v55  ;;  %v1491_v55 = vld [vmem:[%s8670_s23] sm:$0xff] }
 0x811   : > { %6086 = vmatmul.mubr.msk.f32.gmra.mxu1 %vm2736_vm10, %v2723_v58 }
 0x812   : > { %6107 = vmatprep.mubr.msk.f32.mxu1 %vm7422_vm6, %v7421_v44 }
 0x829   : > { %v2915_v59 = vpop.f32.mrf.mxu0 }
 0x82b   : > { %v6098_v60 = vpop.f32.mrf.mxu0 }
 0x8cd   : > { %v6084_v62 = vpop.f32.mrf.mxu1 }
 0x8ce   : > { %v2835_v5 = vmul.f32 %v6084_v62, %v7961_v16  ;;  %v1477_v16 = vld [vmem:[#allocation17] sm:$0xff] }
 0x8cf   : > { %v2815_v63 = vpop.f32.mrf.mxu1 }
 0x8d0   : > { %v2834_v7 = vmul.f32 %v2815_v63, %v7965_v17  ;;  %v2919_v17 = vadd.f32 1e-06, %v2915_v59 }
 0x8d1   : > { %v6087_v0 = vpop.f32.mrf.mxu1 }
 0x8d2   : > { %v2837_v1 = vmul.f32 %v6087_v0, %v7951_v14  ;;  %v1479_v14 = vld [vmem:[#allocation17 + $0x10] sm:$0xff]  ;;  %6689 = vrcp.f32 %v2919_v17  ;;  %v8131_v17 = vld [vmem:[#allocation23 + $0x18] sm:$0xff] }
 0x8d3   : > { %v2825_v3 = vpop.f32.mrf.mxu1  ;;  %6113 = vmatpush3.msra.mxu0 %v1479_v14 }
 0x8d4   : > { %v2836_v4 = vmul.f32 %v2825_v3, %v7956_v15  ;;  %6100 = vmatpush3.msra.mxu1 %v2837_v1  ;;  %6114 = vmatprep.subr.mxu0 %v7421_v44  ;;  %v1478_v15 = vld [vmem:[#allocation17 + $0x8] sm:$0xff] }
 0x8d5   : > { %6101 = vmatprep.subr.mxu1 %v7421_v44  ;;  %6115 = vmatpush3.msra.mxu0 %v1478_v15 }
 0x8d6   : > { %6102 = vmatpush3.msra.mxu1 %v2836_v4  ;;  %6116 = vmatprep.subr.mxu0 %v7421_v44 }
 0x8d7   : > { %6103 = vmatprep.subr.mxu1 %v7421_v44  ;;  %6117 = vmatpush3.msra.mxu0 %v1477_v16 }
 0x8d8   : > { %6104 = vmatpush3.msra.mxu1 %v2835_v5  ;;  %6132 = vmatprep.subr.mxu0 %v7421_v44 }
 0x8d9   : > { %6105 = vmatprep.subr.mxu1 %v7421_v44 }
 0x8da   : > { %6106 = vmatpush3.msra.mxu1 %v2834_v7 }
 0x8db   : > { %6108 = vmatmul.mubr.msk.f32.vlgmr.msra.gmra.mxu1 %vm1501_vm0, %v2697_v48  ;;  %6121 = vmatprep.subr.mxu1 %v7421_v44 }
 0x8dc   : > { %6129 = vmatprep.mubr.msk.f32.mxu1 %vm7422_vm6, %v7421_v44  ;;  %6122 = vmatpush3.msra.mxu1 %v1486_v27  ;;  %v5628_v27 = vld [vmem:[#allocation11] ss:$0 sm:$0xff] }
 0x8dd   : > { %6123 = vmatprep.subr.mxu1 %v7421_v44 }
 0x8de   : > { %6124 = vmatpush3.msra.mxu1 %v1485_v29 }
 0x8df   : > { %v6690_v9 = vpop.eup %6689  ;;  %6125 = vmatprep.subr.mxu1 %v7421_v44 }
 0x8e0   : > { %6126 = vmatpush3.msra.mxu1 %v1484_v31 }
 0x8e1   : > { %6127 = vmatprep.subr.mxu1 %v7421_v44 }
 0x8e2   : > { %6128 = vmatpush3.msra.mxu1 %v1483_v33  ;;  %v6729_v33 = vld [vmem:[%s7918_s19] sm:$0xff] }
 0x8e3   : > { %6130 = vmatmul.mubr.msk.f32.vlgmr.msra.gmra.mxu1 %vm1501_vm0, %v8015_v6  ;;  %6143 = vmatprep.subr.mxu1 %v7421_v44 }
 0x8e4   : > { %6159 = vmatprep.mubr.msk.f32.mxu1 %vm7422_vm6, %v7421_v44  ;;  %6144 = vmatpush3.msra.mxu1 %v1498_v35 }
 0x8e5   : > { %6145 = vmatprep.subr.mxu1 %v7421_v44 }
 0x8e6   : > { %6146 = vmatpush3.msra.mxu1 %v1497_v36  ;;  %v6730_v36 = vld [vmem:[%s7918_s19 + $0x8] sm:$0xff]  ;;  %s8671_s19 = sld [smem:[#allocation67_spill]] }
 0x8e7   : > { %6147 = vmatprep.subr.mxu1 %v7421_v44 }
 0x8e8   : > { %6148 = vmatpush3.msra.mxu1 %v1496_v37 }
 0x8e9   : > { %6149 = vmatprep.subr.mxu1 %v7421_v44 }
 0x8ea   : > { %6150 = vmatpush3.msra.mxu1 %v1495_v38  ;;  %v8159_v38 = vld [vmem:[#allocation25 + $0x18] sm:$0xff] }
 0x8eb   : > { %6151 = vmatprep.subr.mxu1 %v7421_v44 }
 0x8ec   : > { %6152 = vmatpush3.msra.mxu1 %v1494_v39  ;;  %v8161_v39 = vld [vmem:[#allocation26 + $0x18] sm:$0xff] }
 0x8ed   : > { %6153 = vmatprep.subr.mxu1 %v7421_v44 }
 0x8ee   : > { %6154 = vmatpush3.msra.mxu1 %v1493_v50 }
 0x8ef   : > { %6155 = vmatprep.subr.mxu1 %v7421_v44 }
 0x8f0   : > { %6156 = vmatpush3.msra.mxu1 %v1492_v54 }
 0x8f1   : > { %6157 = vmatprep.subr.mxu1 %v7421_v44 }
 0x8f2   : > { %6158 = vmatpush3.msra.mxu1 %v1491_v55  ;;  %v5645_v55 = vld [vmem:[%s8672_s3] ss:$0 sm:$0xff]  ;;  %s8673_s3 = sld [smem:[#allocation75_spill]] }
 0x8f3   : > { %6184 = vmatprep.subr.mxu1 %v7421_v44 }
 0x99b   : > { %v2990_v10 = vpop.f32.mrf.mxu1 }
 0x99c   : > { %v2994_v11 = vmul.f32 %v6690_v9, %v2990_v10  ;;  %v8133_v9 = vld [vmem:[#allocation23 + $0x10] sm:$0xff] }
 0x99d   : > { %v6109_v2 = vpop.f32.mrf.mxu1 }
 0x99e   : > { %v2995_v12 = vmul.f32 8.0, %v2994_v11 }
 0x9a0   : > { %6119 = vmatmul.mubr.msk.f32.vlgmr.msra.gmra.mxu0 %vm1501_vm0, %v2995_v12 }
 0x9a1   : > { %6140 = vmatprep.mubr.msk.f32.mxu0 %vm7422_vm6, %v7421_v44  ;;  %6133 = vmatpush3.msra.mxu0 %v1490_v28 }
 0x9a2   : > { %6134 = vmatprep.subr.mxu0 %v7421_v44 }
 0x9a3   : > { %6135 = vmatpush3.msra.mxu0 %v1489_v30  ;;  %v3162_v49 = vpop.f32.mrf.mxu1 }
 0x9a4   : > { %6136 = vmatprep.subr.mxu0 %v7421_v44 }
 0x9a5   : > { %6137 = vmatpush3.msra.mxu0 %v1488_v32  ;;  %v6131_v52 = vpop.f32.mrf.mxu1 }
 0x9a6   : > { %6138 = vmatprep.subr.mxu0 %v7421_v44  ;;  %v5644_v52 = vld [vmem:[%s8671_s19] ss:$0 sm:$0xff]  ;;  %s8674_s19 = sld [smem:[#allocation72_spill]] }
 0x9a7   : > { %6139 = vmatpush3.msra.mxu0 %v1487_v34 }
 0x9a8   : > { %6162 = vmatprep.subr.mxu0 %v8131_v17 }
 0xa60   : > { %v3065_v13 = vpop.f32.mrf.mxu0 }
 0xa61   : > { %v3069_v18 = vsel %vm1501_vm0, %v3065_v13, 0.0 }
 0xa62   : > { %3070 = vadd.xlane.f32.xlu0 %v3069_v18  ;;  %v6120_v19 = vpop.f32.mrf.mxu0 }
 0xa66   : > { %2437 = vadd.xlane.f32.xlu0 %v2436_v20 }
 0xa6a   : > { %2440 = vadd.xlane.f32.xlu0 %v2439_v21 }
 0xaeb   : > { %v3071_v22 = vpop.xlane.xlu0 %3070 }
 0xaec   : > { %v3072_v23 = vmul.f32 0.03125, %v3071_v22 }
 0xaee   : > { %v3073_v24 = vsub.f32 %v3065_v13, %v3072_v23 }
 0xaef   : > { %v2438_v60 = vpop.xlane.xlu0 %2437 }
 0xaf0   : > { %v3074_v25 = vmul.f32 %v3073_v24, %v3073_v24  ;;  %v2442_v61 = vmul.f32 0.03125, %v2438_v60  ;;  %v8211_v60 = vld [vmem:[%s8665_s1 + $0x8] sm:$0xff] }
 0xaf2   : > { %v3075_v26 = vsel %vm1501_vm0, %v3074_v25, 0.0  ;;  %v2444_v63 = vsub.f32 %v8059_v53, %v2442_v61  ;;  %v8143_v53 = vld [vmem:[#allocation23] sm:$0xff]  ;;  %v5627_v25 = vld [vmem:[#allocation10] ss:$0 sm:$0xff] }
 0xaf3   : > { %3076 = vadd.xlane.f32.xlu1 %v3075_v26  ;;  %v2441_v62 = vpop.xlane.xlu0 %2440 }
 0xaf4   : > { %v2443_v0 = vmul.f32 0.03125, %v2441_v62  ;;  %v2446_v5 = vmul.f32 %v2444_v63, %v2444_v63 }
 0xaf6   : > { %v2445_v3 = vsub.f32 %v8057_v51, %v2443_v0  ;;  %v2448_v14 = vsel %vm1501_vm0, %v2446_v5, 0.0  ;;  %v8137_v51 = vld [vmem:[#allocation23 + $0x8] sm:$0xff] }
 0xaf8   : > { %v2447_v15 = vmul.f32 %v2445_v3, %v2445_v3 }
 0xafa   : > { %v2451_v16 = vsel %vm1501_vm0, %v2447_v15, 0.0 }
 0xb7c   : > { %v3077_v40 = vpop.xlane.xlu1 %3076 }
 0xb7d   : > { %v3078_v41 = vmul.f32 0.03125, %v3077_v40  ;;  %v8163_v40 = vld [vmem:[#allocation25 + $0x10] sm:$0xff] }
 0xb7f   : > { %v3079_v42 = vadd.f32 1e-05, %v3078_v41  ;;  %v8169_v41 = vld [vmem:[#allocation26 + $0x10] sm:$0xff] }
 0xb81   : > { %6691 = vrsqrt.f32 %v3079_v42  ;;  %v8173_v42 = vld [vmem:[#allocation25 + $0x8] sm:$0xff] }
 0xb8e   : > { %v6692_v43 = vpop.eup %6691 }
 0xb8f   : > { %v3081_v46 = vmul.f32 %v6692_v43, %v3073_v24  ;;  %v8175_v43 = vld [vmem:[#allocation26 + $0x8] sm:$0xff] }
 0xb91   : > { %v3088_v48 = vmul.f32 %v5639_v45, %v3081_v46  ;;  %v8181_v45 = vld [vmem:[#allocation25] sm:$0xff] }
 0xb92   : > { %v8183_v46 = vld [vmem:[#allocation26] sm:$0xff] }
 0xb93   : > { %v3095_v8 = vadd.f32 %v5640_v47, %v3088_v48  ;;  %v8192_v47 = vld [vmem:[%s8665_s1 + $0x18] sm:$0xff] }
 0xb95   : > { %6141 = vmatmul.mubr.msk.f32.vlgmr.msra.gmra.mxu0 %vm1501_vm0, %v3095_v8 }
 0xb96   : > { %6163 = vmatpush3.msra.mxu0 %v8131_v17 }
 0xb97   : > { %6164 = vmatprep.subr.mxu0 %v8133_v9 }
 0xb98   : > { %6165 = vmatpush3.msra.mxu0 %v8133_v9 }
 0xb99   : > { %6166 = vmatprep.subr.mxu0 %v8137_v51 }
 0xb9a   : > { %6167 = vmatpush3.msra.mxu0 %v8137_v51 }
 0xb9b   : > { %6168 = vmatprep.subr.mxu0 %v8143_v53 }
 0xb9c   : > { %6169 = vmatpush3.msra.mxu0 %v8143_v53 }
 0xb9d   : > { %6173 = vmatprep.subr.mxu0 %v7421_v44 }
 0xc55   : > { %v3235_v56 = vpop.f32.mrf.mxu0 }
 0xc56   : > { %v3239_v57 = vadd.f32 %v3235_v56, %v3162_v49 }
 0xc57   : > { %v6142_v58 = vpop.f32.mrf.mxu0 }
 0xc58   : > { %v3240_v59 = vmax.f32 %v3239_v57, 0.0 }
 0xc5a   : > { %6160 = vmatmul.mubr.msk.f32.vlgmr.msra.gmra.mxu1 %vm2354_vm7, %v3240_v59  ;;  %v8206_v59 = vld [vmem:[%s8665_s1 + $0x10] sm:$0xff] }
 0xc5b   : > { %6192 = vmatprep.mubr.msk.f32.mxu1 %vm7422_vm6, %v7421_v44  ;;  %6185 = vmatpush3.msra.mxu1 %v8161_v39 }
 0xc5c   : > { %6186 = vmatprep.subr.mxu1 %v7421_v44 }
 0xc5d   : > { %6187 = vmatpush3.msra.mxu1 %v8169_v41 }
 0xc5e   : > { %6188 = vmatprep.subr.mxu1 %v7421_v44 }
 0xc5f   : > { %6189 = vmatpush3.msra.mxu1 %v8175_v43 }
 0xc60   : > { %6190 = vmatprep.subr.mxu1 %v7421_v44 }
 0xc61   : > { %6191 = vmatpush3.msra.mxu1 %v8183_v46 }
 0xc62   : > { %6203 = vmatprep.subr.mxu1 %v8192_v47 }
 0xd1a   : > { %v3310_v1 = vpop.f32.mrf.mxu1 }
 0xd1b   : > { %v3314_v4 = vsel %vm1501_vm0, %v3310_v1, 0.0 }
 0xd1c   : > { %v6161_v7 = vpop.f32.mrf.mxu1  ;;  %3315 = vadd.xlane.f32.xlu0 %v3314_v4 }
 0xd20   : > { %2449 = vadd.xlane.f32.xlu0 %v2448_v14 }
 0xd24   : > { %2452 = vadd.xlane.f32.xlu0 %v2451_v16 }
 0xda5   : > { %v3316_v10 = vpop.xlane.xlu0 %3315 }
 0xda6   : > { %v3317_v11 = vmul.f32 0.03125, %v3316_v10 }
 0xda8   : > { %v3318_v2 = vsub.f32 %v3310_v1, %v3317_v11 }
 0xda9   : > { %v2450_v12 = vpop.xlane.xlu0 %2449 }
 0xdaa   : > { %v2454_v13 = vmul.f32 0.03125, %v2450_v12  ;;  %v3319_v18 = vmul.f32 %v3318_v2, %v3318_v2 }
 0xdac   : > { %v2456_v19 = vadd.f32 1e-05, %v2454_v13  ;;  %v3320_v20 = vsel %vm1501_vm0, %v3319_v18, 0.0 }
 0xdad   : > { %3321 = vadd.xlane.f32.xlu0 %v3320_v20  ;;  %v2453_v21 = vpop.xlane.xlu0 %2452 }
 0xdae   : > { %6693 = vrsqrt.f32 %v2456_v19  ;;  %v2455_v22 = vmul.f32 0.03125, %v2453_v21 }
 0xdb0   : > { %v2457_v23 = vadd.f32 1e-05, %v2455_v22 }
 0xdb2   : > { %6695 = vrsqrt.f32 %v2457_v23 }
 0xdbb   : > { %v6694_v24 = vpop.eup %6693 }
 0xdbc   : > { %v2460_v26 = vmul.f32 %v6694_v24, %v2444_v63 }
 0xdbe   : > { %v2468_v28 = vmul.f32 %v5627_v25, %v2460_v26 }
 0xdbf   : > { %v6696_v29 = vpop.eup %6695 }
 0xdc0   : > { %v2461_v30 = vmul.f32 %v6696_v29, %v2445_v3  ;;  %v2476_v31 = vadd.f32 %v5628_v27, %v2468_v28 }
 0xdc2   : > { %v2469_v32 = vmul.f32 %v5627_v25, %v2461_v30  ;;  %v8150_v34 = vadd.f32 %v6729_v33, %v2476_v31 }
 0xdc4   : > { %v2477_v35 = vadd.f32 %v5628_v27, %v2469_v32  ;;  %6170 = vmatprep.mubr.msk.f32.mxu0 %vm1501_vm0, %v8150_v34 }
 0xdc6   : > { %v8155_v37 = vadd.f32 %v6730_v36, %v2477_v35 }
 0xdc8   : > { %6171 = vmatmul.mubr.msk.f32.vlgmr.msra.gmra.mxu0 %vm1501_vm0, %v8155_v37 }
 0xdc9   : > { %6181 = vmatprep.mubr.msk.f32.mxu0 %vm7422_vm6, %v7421_v44  ;;  %6174 = vmatpush3.msra.mxu0 %v8159_v38 }
 0xdca   : > { %6175 = vmatprep.subr.mxu0 %v7421_v44 }
 0xdcb   : > { %6176 = vmatpush3.msra.mxu0 %v8163_v40 }
 0xdcc   : > { %6177 = vmatprep.subr.mxu0 %v7421_v44 }
 0xdcd   : > { %6178 = vmatpush3.msra.mxu0 %v8173_v42 }
 0xdce   : > { %6179 = vmatprep.subr.mxu0 %v7421_v44 }
 0xdcf   : > { %6180 = vmatpush3.msra.mxu0 %v8181_v45 }
 0xe36   : > { %v3322_v48 = vpop.xlane.xlu0 %3321 }
 0xe37   : > { %v3323_v8 = vmul.f32 0.03125, %v3322_v48 }
 0xe39   : > { %v3324_v49 = vadd.f32 1e-05, %v3323_v8 }
 0xe3b   : > { %6697 = vrsqrt.f32 %v3324_v49 }
 0xe48   : > { %v6698_v50 = vpop.eup %6697 }
 0xe49   : > { %v3326_v54 = vmul.f32 %v6698_v50, %v3318_v2 }
 0xe4b   : > { %v3333_v56 = vmul.f32 %v5644_v52, %v3326_v54  ;;  %v8232_v54 = vld [vmem:[#allocation29 + $0x18] sm:$0xff] }
 0xe4d   : > { %v3340_v57 = vadd.f32 %v5645_v55, %v3333_v56  ;;  %v8234_v55 = vld [vmem:[#allocation29 + $0x10] sm:$0xff]  ;;  %v8241_v56 = vld [vmem:[#allocation29 + $0x8] sm:$0xff] }
 0xe4f   : > { %v8198_v58 = vadd.f32 %v3340_v57, %v8015_v6  ;;  %v8216_v6 = vld [vmem:[%s8665_s1] sm:$0xff]  ;;  %s8675_s1 = sld [smem:[#allocation73_spill]] }
 0xe50   : > { %v8245_v57 = vld [vmem:[#allocation29] sm:$0xff] }
 0xe51   : > { %6182 = vmatmul.mubr.msk.f32.vlgmr.msra.gmra.mxu0 %vm1501_vm0, %v8198_v58  ;;  %6193 = vmatmul.mubr.msk.f32.vlgmr.msra.gmra.mxu1 %vm1501_vm0, %v8198_v58 }
 0xe52   : > { %6204 = vmatpush3.msra.mxu1 %v8192_v47 }
 0xe53   : > { %6205 = vmatprep.subr.mxu1 %v8206_v59 }
 0xe54   : > { %6206 = vmatpush3.msra.mxu1 %v8206_v59 }
 0xe55   : > { %6207 = vmatprep.subr.mxu1 %v8211_v60 }
 0xe56   : > { %6208 = vmatpush3.msra.mxu1 %v8211_v60 }
 0xe57   : > { %6209 = vmatprep.subr.mxu1 %v8216_v6 }
 0xe58   : > { %6210 = vmatpush3.msra.mxu1 %v8216_v6 }
 0xe88   : > { %v6172_v61 = vpop.f32.mrf.mxu0 }
 0xe89   : > { %v3608_v7 = vmul.f32 1.442695, %v6172_v61  ;;  %v3605_v22 = vadd.f32 1.0, %v6172_v61  ;;  %vm3603_vm12 = vcmp.gt.f32.partialorder %v6172_v61, 0.0  ;;  %v8253_v61 = vld [vmem:[#allocation28 + $0x18] sm:$0xff] }
 0xe8a   : > { %v3450_v62 = vpop.f32.mrf.mxu0  ;;  %6225 = vmatprep.subr.mxu1 %v8253_v61 }
 0xe8b   : > { %v3606_v14 = vmul.f32 1.442695, %v3450_v62  ;;  %v3604_v23 = vadd.f32 1.0, %v3450_v62  ;;  %vm3602_vm13 = vcmp.gt.f32.partialorder %v3450_v62, 0.0  ;;  %v8257_v62 = vld [vmem:[#allocation28 + $0x10] sm:$0xff] }
 0xf11   : > { %v3528_v63 = vpop.f32.mrf.mxu0  ;;  %v3598_v0 = vpop.f32.mrf.mxu1 }
 0xf12   : > { %v3614_v1 = vmul.f32 1.442695, %v3528_v63  ;;  %v3617_v3 = vmul.f32 0.125, %v3598_v0  ;;  %v3613_v15 = vadd.f32 1.0, %v3528_v63  ;;  %vm3612_vm11 = vcmp.gt.f32.partialorder %v3528_v63, 0.0  ;;  %v8261_v63 = vld [vmem:[#allocation28 + $0x8] sm:$0xff] }
 0xf13   : > { %v6183_v4 = vpop.f32.mrf.mxu0  ;;  %v6194_v5 = vpop.f32.mrf.mxu1  ;;  %v8265_v0 = vld [vmem:[#allocation28] sm:$0xff] }
 0xf14   : > { %6699 = vpow2.f32 %v3614_v1  ;;  %6195 = vmatprep.subr.mxu0 %v3617_v3 }
 0xf15   : > { %6196 = vmatpush3.msra.mxu0 %v3617_v3  ;;  %6701 = vpow2.f32 %v3608_v7 }
 0xf16   : > { %6703 = vpow2.f32 %v3606_v14 }
 0xf21   : > { %v6700_v16 = vpop.eup %6699 }
 0xf22   : > { %v3616_v10 = vsel %vm3612_vm11, %v3613_v15, %v6700_v16  ;;  %v6702_v19 = vpop.eup %6701 }
 0xf23   : > { %3618 = vxpose.xlu0.b32.start.end [1/1] (short) (narrow) %v3616_v10, 32  ;;  %v3751_v11 = vsel %vm1501_vm0, %v3616_v10, 0.0  ;;  %v6704_v20 = vpop.eup %6703  ;;  %v3611_v25 = vsel %vm3603_vm12, %v3605_v22, %v6702_v19 }
 0xf24   : > { %v3752_v2 = vrot.slane %v3751_v11, 4  ;;  %v3610_v26 = vsel %vm3602_vm13, %v3604_v23, %v6704_v20 }
 0xf26   : > { %v3753_v12 = vadd.f32 %v3752_v2, %v3751_v11 }
 0xf28   : > { %v3754_v13 = vrot.slane %v3753_v12, 2 }
 0xf2a   : > { %v3755_v18 = vadd.f32 %v3754_v13, %v3753_v12 }
 0xf2c   : > { %v3756_v21 = vrot.slane %v3755_v18, 1 }
 0xf2e   : > { %v3757_v24 = vadd.f32 %v3756_v21, %v3755_v18 }
 0xf30   : > { %v3759_v27 = vmul.f32 %v3757_v24, %v3611_v25  ;;  %v3758_v28 = vmul.f32 %v3757_v24, %v3610_v26 }
 0xf32   : > { %6211 = vmatprep.mubr.msk.f32.mxu1 %vm1501_vm0, %v3758_v28 }
 0xf33   : > { %6212 = vmatmul.mubr.msk.f32.vlgmr.msra.gmra.mxu1 %vm1501_vm0, %v3759_v27 }
 0xf34   : > { %6226 = vmatpush3.msra.mxu1 %v8253_v61 }
 0xf35   : > { %6227 = vmatprep.subr.mxu1 %v8257_v62 }
 0xf36   : > { %6228 = vmatpush3.msra.mxu1 %v8257_v62 }
 0xf37   : > { %6229 = vmatprep.subr.mxu1 %v8261_v63 }
 0xf38   : > { %6230 = vmatpush3.msra.mxu1 %v8261_v63 }
 0xf39   : > { %6231 = vmatprep.subr.mxu1 %v8265_v0 }
 0xf3a   : > { %6232 = vmatpush3.msra.mxu1 %v8265_v0 }
 0xf9f   : > { %v3634_v29 = vpop.trf.xlu0 }
 0xfa0   : > { %6197 = vmatprep.mubr.msk.f32.mxu0 %vm2736_vm10, %v3634_v29 }
 0xfa3   : > { %v3635_v30 = vpop.trf.xlu0 }
 0xfa4   : > { %6198 = vmatmul.mubr.msk.f32.vlgmr.msra.gmra.mxu0 %vm2736_vm10, %v3635_v30 }
 0xfa7   : > { %v3636_v31 = vpop.trf.xlu0 }
 0xfa8   : > { %6200 = vmatprep.mubr.msk.f32.mxu0 %vm2736_vm10, %v3636_v31  ;;  %v8275_v31 = vld [vmem:[#allocation31 + $0x18] sm:$0xff] }
 0xfa9   : > { %6247 = vmatprep.subr.mxu1 %v8275_v31 }
 0xfab   : > { %v3637_v32 = vpop.trf.xlu0 }
 0xfac   : > { %6201 = vmatmul.mubr.msk.f32.gmra.mxu0 %vm2736_vm10, %v3637_v32  ;;  %v8279_v32 = vld [vmem:[#allocation31 + $0x10] sm:$0xff] }
 0xfad   : > { %6222 = vmatprep.mubr.msk.f32.mxu0 %vm1501_vm0, %v3610_v26 }
 0xff3   : > { %v6213_v1 = vpop.f32.mrf.mxu1 }
 0xff4   : > { %v3842_v4 = vadd.f32 1e-06, %v6213_v1 }
 0xff5   : > { %v3832_v3 = vpop.f32.mrf.mxu1 }
 0xff6   : > { %v3841_v5 = vadd.f32 1e-06, %v3832_v3  ;;  %6705 = vrcp.f32 %v3842_v4 }
 0xff8   : > { %6707 = vrcp.f32 %v3841_v5 }
0x1003   : > { %v6706_v14 = vpop.eup %6705 }
0x1005   : > { %v6708_v15 = vpop.eup %6707 }
0x1064   : > { %v6199_v33 = vpop.f32.mrf.mxu0 }
0x1065   : > { %v3748_v50 = vmul.f32 %v8211_v60, %v6199_v33  ;;  %v8283_v33 = vld [vmem:[#allocation31 + $0x8] sm:$0xff] }
0x1066   : > { %v3728_v35 = vpop.f32.mrf.mxu0 }
0x1067   : > { %v3747_v52 = vmul.f32 %v8216_v6, %v3728_v35  ;;  %v8287_v35 = vld [vmem:[#allocation31] sm:$0xff] }
0x106c   : > { %v6202_v36 = vpop.f32.mrf.mxu0 }
0x106d   : > { %v3750_v48 = vmul.f32 %v8192_v47, %v6202_v36  ;;  %v8293_v36 = vld [vmem:[%s8673_s3 + $0x38] sm:$0xff] }
0x106e   : > { %v3738_v8 = vpop.f32.mrf.mxu0 }
0x106f   : > { %v3749_v49 = vmul.f32 %v8206_v59, %v3738_v8  ;;  %6214 = vmatprep.subr.mxu0 %v3750_v48  ;;  %v8301_v8 = vld [vmem:[%s8673_s3 + $0x28] sm:$0xff] }
0x1070   : > { %6215 = vmatpush3.msra.mxu0 %v3750_v48  ;;  %v8296_v48 = vld [vmem:[%s8673_s3 + $0x30] sm:$0xff] }
0x1071   : > { %6216 = vmatprep.subr.mxu0 %v3749_v49 }
0x1072   : > { %6217 = vmatpush3.msra.mxu0 %v3749_v49  ;;  %v8306_v49 = vld [vmem:[%s8673_s3 + $0x20] sm:$0xff] }
0x1073   : > { %6218 = vmatprep.subr.mxu0 %v3748_v50 }
0x1074   : > { %6219 = vmatpush3.msra.mxu0 %v3748_v50 }
0x1075   : > { %6220 = vmatprep.subr.mxu0 %v3747_v52 }
0x1076   : > { %6221 = vmatpush3.msra.mxu0 %v3747_v52 }
0x1077   : > { %6223 = vmatmul.mubr.msk.f32.vlgmr.msra.gmra.mxu0 %vm1501_vm0, %v3611_v25  ;;  %6236 = vmatprep.subr.mxu0 %v8232_v54 }
0x1078   : > { %6237 = vmatpush3.msra.mxu0 %v8232_v54  ;;  %6244 = vmatprep.mubr.msk.f32.mxu0 %vm1501_vm0, %v8150_v34 }
0x1079   : > { %6238 = vmatprep.subr.mxu0 %v8234_v55 }
0x107a   : > { %6239 = vmatpush3.msra.mxu0 %v8234_v55 }
0x107b   : > { %6240 = vmatprep.subr.mxu0 %v8241_v56 }
0x107c   : > { %6241 = vmatpush3.msra.mxu0 %v8241_v56 }
0x107d   : > { %6242 = vmatprep.subr.mxu0 %v8245_v57 }
0x107e   : > { %6243 = vmatpush3.msra.mxu0 %v8245_v57 }
0x107f   : > { %6245 = vmatmul.mubr.msk.f32.vlgmr.msra.gmra.mxu0 %vm1501_vm0, %v8155_v37  ;;  %6258 = vmatprep.subr.mxu0 %v8293_v36 }
0x1080   : > { %6259 = vmatpush3.msra.mxu0 %v8293_v36 }
0x1081   : > { %6260 = vmatprep.subr.mxu0 %v8296_v48 }
0x1082   : > { %6261 = vmatpush3.msra.mxu0 %v8296_v48 }
0x1083   : > { %6262 = vmatprep.subr.mxu0 %v8301_v8 }
0x1084   : > { %6263 = vmatpush3.msra.mxu0 %v8301_v8 }
0x1085   : > { %6264 = vmatprep.subr.mxu0 %v8306_v49 }
0x1086   : > { %6265 = vmatpush3.msra.mxu0 %v8306_v49 }
0x1137   : > { %v6224_v7 = vpop.f32.mrf.mxu0 }
0x1138   : > { %v3927_v16 = vmul.f32 %v6706_v14, %v6224_v7  ;;  %v8313_v14 = vld [vmem:[%s8674_s19] ss:$0 sm:$0xff] }
0x1139   : > { %v3917_v10 = vpop.f32.mrf.mxu0 }
0x113a   : > { %v3926_v11 = vmul.f32 %v6708_v15, %v3917_v10  ;;  %v3929_v12 = vmul.f32 8.0, %v3927_v16  ;;  %v8316_v16 = vld [vmem:[%s8675_s1] ss:$0 sm:$0xff]  ;;  %s5599_s1 = sshll.u32 %s7867_s17, 4 }
0x113b   : > { %s8394_s19 = scalar_lea.vmem [#allocation32], %s5599_s1  ;;  %s5693_s1 = sshll.u32 %s7643_s18, 8 }
0x113c   : > { %v3928_v2 = vmul.f32 8.0, %v3926_v11  ;;  %s5218_s4 = sshll.u32 %s8394_s19, 4  ;;  %s8497_s4 = int_to_ptr.vmem [resolvable:$true] %s5218_s4 }
0x113d   : > { %s7231_s8 = scalar_lea.vmem %s8497_s4, 256 }
0x113e   : > { %6233 = vmatprep.mubr.msk.f32.mxu1 %vm1501_vm0, %v3928_v2  ;;  %p7232_p11 = scmp.ne.s32.totalorder %s8497_s4, %s7231_s8 }
0x113f   : > { %6234 = vmatmul.mubr.msk.f32.vlgmr.msra.gmra.mxu1 %vm1501_vm0, %v3929_v12 }
0x1140   : > { %6248 = vmatpush3.msra.mxu1 %v8275_v31  ;;  %p7233_p10 = pnand %p7232_p11, %p8678_p9 }
0x1141   : > { %6249 = vmatprep.subr.mxu1 %v8279_v32 }
0x1142   : > { %6250 = vmatpush3.msra.mxu1 %v8279_v32  ;;  %p7234_p8 = pneg %p7233_p10 }
0x1143   : > { %6251 = vmatprep.subr.mxu1 %v8283_v33 }
0x1144   : > { %6252 = vmatpush3.msra.mxu1 %v8283_v33 }
0x1145   : > { %6253 = vmatprep.subr.mxu1 %v8287_v35 }
0x1146   : > { %6254 = vmatpush3.msra.mxu1 %v8287_v35 }
0x1147   : > { %6277 = vmatprep.subr.mxu1 %v7421_v44 }
0x11ff   : > { %v6235_v13 = vpop.f32.mrf.mxu1 }
0x1200   : > { %v4014_v20 = vsel %vm1501_vm0, %v6235_v13, 0.0 }
0x1201   : > { %v4002_v18 = vpop.f32.mrf.mxu1 }
0x1202   : > { %v4011_v19 = vsel %vm1501_vm0, %v4002_v18, 0.0 }
0x1203   : > { %4012 = vadd.xlane.f32.xlu1 %v4011_v19 }
0x1207   : > { %4015 = vadd.xlane.f32.xlu1 %v4014_v20 }
0x128c   : > { %v4013_v21 = vpop.xlane.xlu1 %4012 }
0x128d   : > { %v4017_v22 = vmul.f32 0.03125, %v4013_v21 }
0x128f   : > { %v4019_v23 = vsub.f32 %v4002_v18, %v4017_v22 }
0x1290   : > { %v4016_v24 = vpop.xlane.xlu1 %4015 }
0x1291   : > { %v4018_v25 = vmul.f32 0.03125, %v4016_v24  ;;  %v4021_v26 = vmul.f32 %v4019_v23, %v4019_v23 }
0x1293   : > { %v4020_v27 = vsub.f32 %v6235_v13, %v4018_v25  ;;  %v4023_v28 = vsel %vm1501_vm0, %v4021_v26, 0.0 }
0x1294   : > { %4024 = vadd.xlane.f32.xlu1 %v4023_v28 }
0x1295   : > { %v4022_v29 = vmul.f32 %v4020_v27, %v4020_v27 }
0x1297   : > { %v4026_v30 = vsel %vm1501_vm0, %v4022_v29, 0.0 }
0x1298   : > { %4027 = vadd.xlane.f32.xlu1 %v4026_v30 }
0x131d   : > { %v4025_v50 = vpop.xlane.xlu1 %4024 }
0x131e   : > { %v4029_v52 = vmul.f32 0.03125, %v4025_v50 }
0x1320   : > { %v4031_v1 = vadd.f32 1e-05, %v4029_v52 }
0x1321   : > { %v4028_v3 = vpop.xlane.xlu1 %4027 }
0x1322   : > { %6709 = vrsqrt.f32 %v4031_v1  ;;  %v4030_v4 = vmul.f32 0.03125, %v4028_v3 }
0x1324   : > { %v4032_v5 = vadd.f32 1e-05, %v4030_v4 }
0x1326   : > { %6711 = vrsqrt.f32 %v4032_v5 }
0x132f   : > { %v6710_v7 = vpop.eup %6709 }
0x1330   : > { %v4035_v15 = vmul.f32 %v6710_v7, %v4019_v23 }
0x1332   : > { %v4043_v10 = vmul.f32 %v8313_v14, %v4035_v15 }
0x1333   : > { %v6712_v11 = vpop.eup %6711 }
0x1334   : > { %v4036_v2 = vmul.f32 %v6712_v11, %v4020_v27  ;;  %v4051_v12 = vadd.f32 %v8316_v16, %v4043_v10 }
0x1336   : > { %6255 = vmatprep.mubr.msk.f32.mxu1 %vm1501_vm0, %v4051_v12  ;;  %v4044_v13 = vmul.f32 %v8313_v14, %v4036_v2  ;;  %v8381_v12 = vld [vmem:[%s8676_s9] ss:$0 sm:$0xff]  ;;  %s7423_s9 = smov [#allocation32]  }
0x1337   : > { %s7235_s12 = sshll.u32 %s7423_s9, 4  ;;  %s7236_s12 = int_to_ptr.vmem [resolvable:$false] %s7235_s12 }
0x1338   : > { %v4052_v18 = vadd.f32 %v8316_v16, %v4044_v13  ;;  %p7238_p1 = scmp.lt.s32.totalorder %s8497_s4, %s7236_s12 }
0x133a   : > { %6256 = vmatmul.mubr.msk.f32.vlgmr.msra.gmra.mxu1 %vm1501_vm0, %v4052_v18  ;;  %v8384_v18 = vld [vmem:[%s8677_s13] ss:$0 sm:$0xff]  ;;  %s7237_s13 = scalar_lea.vmem %s7236_s12, 512 }
0x133b   : > { %6278 = vmatpush3.msra.mxu1 %v8131_v17  ;;  %6285 = vmatprep.mubr.msk.f32.mxu1 %vm7422_vm6, %v7421_v44  ;;  %v8344_v17 = vld [vmem:[%s8673_s3 + $0x18] sm:$0xff]  ;;  %p7239_p3 = scmp.lt.s32.totalorder %s7237_s13, %s7231_s8 }
0x133c   : > { %6279 = vmatprep.subr.mxu1 %v7421_v44  ;;  %6266 = vmatprep.subr.mxu0 %v8344_v17 }
0x133d   : > { %6280 = vmatpush3.msra.mxu1 %v8133_v9  ;;  %6267 = vmatpush3.msra.mxu0 %v8344_v17  ;;  %v8349_v9 = vld [vmem:[%s8673_s3 + $0x10] sm:$0xff]  ;;  %p7240_p0 = por %p7239_p3, %p7238_p1 }
0x133e   : > { %6281 = vmatprep.subr.mxu1 %v7421_v44  ;;  %6268 = vmatprep.subr.mxu0 %v8349_v9 }
0x133f   : > { %6282 = vmatpush3.msra.mxu1 %v8137_v51  ;;  %6269 = vmatpush3.msra.mxu0 %v8349_v9  ;;  %v8354_v51 = vld [vmem:[%s8673_s3 + $0x8] sm:$0xff]  ;;  %p7241_p2 = pnand %p7240_p0, %p7234_p8 }
0x1340   : > { %6283 = vmatprep.subr.mxu1 %v7421_v44  ;;  %6270 = vmatprep.subr.mxu0 %v8354_v51 }
0x1341   : > { %6284 = vmatpush3.msra.mxu1 %v8143_v53  ;;  %v8358_v53 = vld [vmem:[%s8673_s3] sm:$0xff]  ;;  %6271 = vmatpush3.msra.mxu0 %v8354_v51  ;;  %s8494_s3 = scalar_lea.hbm %s7615_s29, %s5693_s1 }
0x1342   : > { %6286 = vmatmul.mubr.msk.f32.vlgmr.msra.gmra.mxu1 %vm1501_vm0, %v8198_v58  ;;  %6288 = vmatprep.subr.mxu1 %v8159_v38 }
0x1343   : > { %6289 = vmatpush3.msra.mxu1 %v8159_v38  ;;  %6272 = vmatprep.subr.mxu0 %v8358_v53  ;;  %v6246_v38 = vpop.f32.mrf.mxu0 }
0x1344   : > { %6290 = vmatprep.subr.mxu1 %v8163_v40  ;;  %6273 = vmatpush3.msra.mxu0 %v8358_v53 }
0x1345   : > { %6291 = vmatpush3.msra.mxu1 %v8163_v40  ;;  %6299 = vmatprep.subr.mxu0 %v8161_v39 }
0x1346   : > { %6292 = vmatprep.subr.mxu1 %v8173_v42 }
0x1347   : > { %6293 = vmatpush3.msra.mxu1 %v8173_v42  ;;  %v4119_v42 = vpop.f32.mrf.mxu0 }
0x1348   : > { %6294 = vmatprep.subr.mxu1 %v8181_v45 }
0x1349   : > { %6295 = vmatpush3.msra.mxu1 %v8181_v45 }
0x13fa   : > { %v6257_v40 = vpop.f32.mrf.mxu1 }
0x13fb   : > { %v4210_v45 = vadd.f32 %v6257_v40, %v6246_v38 }
0x13fc   : > { %v4200_v19 = vpop.f32.mrf.mxu1 }
0x13fd   : > { %v4209_v20 = vadd.f32 %v4200_v19, %v4119_v42  ;;  %v4212_v22 = vmax.f32 %v4210_v45, 0.0 }
0x13ff   : > { %v4211_v21 = vmax.f32 %v4209_v20, 0.0 }
0x1401   : > { %6274 = vmatprep.mubr.msk.f32.mxu0 %vm2354_vm7, %v4211_v21 }
0x1402   : > { %v8365_v23 = vpop.f32.mrf.mxu1  ;;  %6275 = vmatmul.mubr.msk.f32.vlgmr.msra.gmra.mxu0 %vm2354_vm7, %v4212_v22 }
0x1403   : > { %6300 = vmatpush3.msra.mxu0 %v8161_v39  ;;  %vm4564_vm1 = vcmp.gt.f32.partialorder %v8365_v23, 0.0 }
0x1404   : > { %v6287_v24 = vpop.f32.mrf.mxu1  ;;  %6301 = vmatprep.subr.mxu0 %v8169_v41 }
0x1405   : > { %6302 = vmatpush3.msra.mxu0 %v8169_v41 }
0x1406   : > { %6303 = vmatprep.subr.mxu0 %v8175_v43 }
0x1407   : > { %6304 = vmatpush3.msra.mxu0 %v8175_v43 }
0x1408   : > { %6305 = vmatprep.subr.mxu0 %v8183_v46 }
0x1409   : > { %6306 = vmatpush3.msra.mxu0 %v8183_v46 }
0x140a   : > { %6320 = vmatprep.subr.mxu0 %v7421_v44 }
0x14c2   : > { %v6276_v25 = vpop.f32.mrf.mxu0 }
0x14c3   : > { %v4297_v26 = vsel %vm1501_vm0, %v6276_v25, 0.0 }
0x14c4   : > { %4298 = vadd.xlane.f32.xlu0 %v4297_v26  ;;  %v4285_v39 = vpop.f32.mrf.mxu0 }
0x14c5   : > { %v4294_v27 = vsel %vm1501_vm0, %v4285_v39, 0.0 }
0x14c6   : > { %4295 = vadd.xlane.f32.xlu1 %v4294_v27 }
0x154d   : > { %v4299_v28 = vpop.xlane.xlu0 %4298 }
0x154e   : > { %v4301_v41 = vmul.f32 0.03125, %v4299_v28 }
0x154f   : > { %v4296_v29 = vpop.xlane.xlu1 %4295 }
0x1550   : > { %v4300_v30 = vmul.f32 0.03125, %v4296_v29  ;;  %v4303_v50 = vsub.f32 %v6276_v25, %v4301_v41  ;;  %v4566_v41 = vmul.f32 1.442695, %v8365_v23 }
0x1552   : > { %v4302_v43 = vsub.f32 %v4285_v39, %v4300_v30  ;;  %v4305_v1 = vmul.f32 %v4303_v50, %v4303_v50 }
0x1554   : > { %v4304_v52 = vmul.f32 %v4302_v43, %v4302_v43  ;;  %v4309_v3 = vsel %vm1501_vm0, %v4305_v1, 0.0 }
0x1556   : > { %v4306_v46 = vsel %vm1501_vm0, %v4304_v52, 0.0 }
0x1557   : > { %4307 = vadd.xlane.f32.xlu1 %v4306_v46 }
0x155b   : > { %4310 = vadd.xlane.f32.xlu1 %v4309_v3 }
0x15e0   : > { %v4308_v4 = vpop.xlane.xlu1 %4307 }
0x15e1   : > { %v4312_v5 = vmul.f32 0.03125, %v4308_v4 }
0x15e3   : > { %v4314_v7 = vadd.f32 1e-05, %v4312_v5 }
0x15e4   : > { %v4311_v15 = vpop.xlane.xlu1 %4310 }
0x15e5   : > { %6713 = vrsqrt.f32 %v4314_v7  ;;  %v4313_v10 = vmul.f32 0.03125, %v4311_v15 }
0x15e7   : > { %v4315_v11 = vadd.f32 1e-05, %v4313_v10 }
0x15e9   : > { %6715 = vrsqrt.f32 %v4315_v11 }
0x15f2   : > { %v6714_v2 = vpop.eup %6713 }
0x15f3   : > { %v4318_v13 = vmul.f32 %v6714_v2, %v4302_v43 }
0x15f5   : > { %v4326_v38 = vmul.f32 %v8381_v12, %v4318_v13  ;;  %v4565_v13 = vadd.f32 1.0, %v8365_v23 }
0x15f6   : > { %v6716_v40 = vpop.eup %6715 }
0x15f7   : > { %v4319_v42 = vmul.f32 %v6716_v40, %v4303_v50  ;;  %v4334_v45 = vadd.f32 %v8384_v18, %v4326_v38 }
0x15f9   : > { %v4336_v19 = vadd.f32 %v4334_v45, %v8150_v34  ;;  %v4327_v20 = vmul.f32 %v8381_v12, %v4319_v42 }
0x15fb   : > { %6296 = vmatprep.mubr.msk.f32.mxu1 %vm1501_vm0, %v4336_v19  ;;  %6307 = vmatprep.mubr.msk.f32.mxu0 %vm1501_vm0, %v4336_v19  ;;  %v4335_v21 = vadd.f32 %v8384_v18, %v4327_v20  ;;  %5196 = vst.msk [vmem:[%s8394_s19] sm:$0xff] %vm1501_vm0, %v4336_v19 }
0x15fd   : > { %v4337_v22 = vadd.f32 %v4335_v21, %v8155_v37 }
0x15ff   : > { %6297 = vmatmul.mubr.msk.f32.vlgmr.msra.gmra.mxu1 %vm1501_vm0, %v4337_v22  ;;  %6308 = vmatmul.mubr.msk.f32.vlgmr.msra.gmra.mxu0 %vm1501_vm0, %v4337_v22  ;;  %5197 = vst.msk [vmem:[%s8394_s19 + $0x8] sm:$0xff] %vm1501_vm0, %v4337_v22 }
0x1600   : > { %6321 = vmatpush3.msra.mxu0 %v8192_v47  ;;  %6328 = vmatprep.mubr.msk.f32.mxu0 %vm7422_vm6, %v7421_v44 }
0x1601   : > { %6322 = vmatprep.subr.mxu0 %v7421_v44 }
0x1602   : > { %6323 = vmatpush3.msra.mxu0 %v8206_v59 }
0x1603   : > { %6324 = vmatprep.subr.mxu0 %v7421_v44 }
0x1604   : > { %6325 = vmatpush3.msra.mxu0 %v8211_v60 }
0x1605   : > { %6326 = vmatprep.subr.mxu0 %v7421_v44 }
0x1606   : > { %6327 = vmatpush3.msra.mxu0 %v8216_v6 }
0x1607   : > { %6342 = vmatprep.subr.mxu0 %v7421_v44 }
0x16bf   : > { %v6298_v34 = vpop.f32.mrf.mxu1  ;;  %v6309_v37 = vpop.f32.mrf.mxu0 }
0x16c0   : > { %v4575_v24 = vmul.f32 1.442695, %v6298_v34  ;;  %v4580_v25 = vmul.f32 0.0625, %v6309_v37  ;;  %v4572_v29 = vadd.f32 1.0, %v6298_v34  ;;  %vm4570_vm14 = vcmp.gt.f32.partialorder %v6298_v34, 0.0 }
0x16c1   : > { %v4480_v26 = vpop.f32.mrf.mxu1  ;;  %v4555_v39 = vpop.f32.mrf.mxu0 }
0x16c2   : > { %6717 = vpow2.f32 %v4575_v24  ;;  %v4573_v27 = vmul.f32 1.442695, %v4480_v26  ;;  %6310 = vmatprep.subr.mxu1 %v4580_v25  ;;  %v4579_v28 = vmul.f32 0.0625, %v4555_v39  ;;  %v4571_v50 = vadd.f32 1.0, %v4480_v26 }
0x16c3   : > { %6311 = vmatpush3.msra.mxu1 %v4580_v25  ;;  %vm4569_vm15 = vcmp.gt.f32.partialorder %v4480_v26, 0.0 }
0x16c4   : > { %6719 = vpow2.f32 %v4573_v27  ;;  %6312 = vmatprep.subr.mxu1 %v4579_v28 }
0x16c5   : > { %6313 = vmatpush3.msra.mxu1 %v4579_v28  ;;  %6721 = vpow2.f32 %v4566_v41 }
0x16c6   : > { %6331 = vmatprep.subr.mxu1 %v7421_v44 }
0x16cf   : > { %v6718_v30 = vpop.eup %6717 }
0x16d0   : > { %v4578_v43 = vsel %vm4570_vm14, %v4572_v29, %v6718_v30 }
0x16d1   : > { %v6720_v52 = vpop.eup %6719  ;;  %v4715_v3 = vsel %vm1501_vm0, %v4578_v43, 0.0 }
0x16d2   : > { %v4577_v46 = vsel %vm4569_vm15, %v4571_v50, %v6720_v52  ;;  %v6722_v11 = vpop.eup %6721 }
0x16d3   : > { %4581 = vxpose.xlu1.b32.start [1/2] (short) (narrow) %v4577_v46, 32  ;;  %v4714_v1 = vsel %vm1501_vm0, %v4577_v46, 0.0  ;;  %v4568_v40 = vsel %vm4564_vm1, %v4565_v13, %v6722_v11 }
0x16d4   : > { %v4716_v4 = vadd.f32 %v4715_v3, %v4714_v1 }
0x16d6   : > { %v4717_v5 = vrot.slane %v4716_v4, 4 }
0x16d7   : > { %4582 = vxpose.xlu1.b32.end [2/2] (short) (narrow) %v4578_v43, 32 }
0x16d8   : > { %v4718_v7 = vadd.f32 %v4717_v5, %v4716_v4 }
0x16da   : > { %v4719_v15 = vrot.slane %v4718_v7, 2 }
0x16dc   : > { %v4720_v10 = vadd.f32 %v4719_v15, %v4718_v7 }
0x16de   : > { %v4721_v2 = vrot.slane %v4720_v10, 1 }
0x16e0   : > { %v4722_v38 = vadd.f32 %v4721_v2, %v4720_v10 }
0x16e2   : > { %v4723_v42 = vmul.f32 %v4722_v38, %v4568_v40 }
0x16e4   : > { %6329 = vmatmul.mubr.msk.f32.vlgmr.msra.gmra.mxu0 %vm1501_vm0, %v4723_v42 }
0x16e5   : > { %6343 = vmatpush3.msra.mxu0 %v8253_v61  ;;  %6350 = vmatprep.mubr.msk.f32.mxu0 %vm7422_vm6, %v7421_v44 }
0x16e6   : > { %6344 = vmatprep.subr.mxu0 %v7421_v44 }
0x16e7   : > { %6345 = vmatpush3.msra.mxu0 %v8257_v62 }
0x16e8   : > { %6346 = vmatprep.subr.mxu0 %v7421_v44 }
0x16e9   : > { %6347 = vmatpush3.msra.mxu0 %v8261_v63 }
0x16ea   : > { %6348 = vmatprep.subr.mxu0 %v7421_v44 }
0x16eb   : > { %6349 = vmatpush3.msra.mxu0 %v8265_v0 }
0x16ec   : > { %6364 = vmatprep.subr.mxu0 %v7421_v44 }
0x174f   : > { %v4597_v23 = vpop.trf.xlu1 }
0x1750   : > { %6314 = vmatprep.mubr.msk.f32.mxu1 %vm1787_vm5, %v4597_v23 }
0x1753   : > { %v4598_v61 = vpop.trf.xlu1 }
0x1754   : > { %6315 = vmatmul.mubr.msk.f32.vlgmr.msra.gmra.mxu1 %vm1787_vm5, %v4598_v61 }
0x1757   : > { %v4599_v45 = vpop.trf.xlu1 }
0x1758   : > { %6317 = vmatprep.mubr.msk.f32.mxu1 %vm1787_vm5, %v4599_v45 }
0x175b   : > { %v4600_v62 = vpop.trf.xlu1 }
0x175c   : > { %6318 = vmatmul.mubr.msk.f32.gmra.mxu1 %vm1787_vm5, %v4600_v62 }
0x175d   : > { %6339 = vmatprep.mubr.msk.f32.mxu1 %vm7422_vm6, %v7421_v44 }
0x17a4   : > { %v4793_v63 = vpop.f32.mrf.mxu0 }
0x17a6   : > { %v6330_v19 = vpop.f32.mrf.mxu0 }
0x1814   : > { %v6316_v0 = vpop.f32.mrf.mxu1 }
0x1815   : > { %v4711_v24 = vmul.f32 %v8211_v60, %v6316_v0 }
0x1816   : > { %v4691_v20 = vpop.f32.mrf.mxu1 }
0x1817   : > { %v4710_v25 = vmul.f32 %v8216_v6, %v4691_v20 }
0x181c   : > { %v6319_v21 = vpop.f32.mrf.mxu1 }
0x181d   : > { %v4713_v22 = vmul.f32 %v8192_v47, %v6319_v21  ;;  %v4797_v47 = vadd.f32 1e-06, %v4793_v63 }
0x181e   : > { %v4701_v34 = vpop.f32.mrf.mxu1 }
0x181f   : > { %v4712_v37 = vmul.f32 %v8206_v59, %v4701_v34  ;;  %6332 = vmatpush3.msra.mxu1 %v4713_v22  ;;  %6723 = vrcp.f32 %v4797_v47 }
0x1820   : > { %6333 = vmatprep.subr.mxu1 %v7421_v44 }
0x1821   : > { %6334 = vmatpush3.msra.mxu1 %v4712_v37 }
0x1822   : > { %6335 = vmatprep.subr.mxu1 %v7421_v44 }
0x1823   : > { %6336 = vmatpush3.msra.mxu1 %v4711_v24 }
0x1824   : > { %6337 = vmatprep.subr.mxu1 %v7421_v44 }
0x1825   : > { %6338 = vmatpush3.msra.mxu1 %v4710_v25 }
0x1826   : > { %6340 = vmatmul.mubr.msk.f32.vlgmr.msra.gmra.mxu1 %vm1501_vm0, %v4568_v40  ;;  %6353 = vmatprep.subr.mxu1 %v7421_v44 }
0x1827   : > { %6354 = vmatpush3.msra.mxu1 %v8232_v54  ;;  %6361 = vmatprep.mubr.msk.f32.mxu1 %vm7422_vm6, %v7421_v44 }
0x1828   : > { %6355 = vmatprep.subr.mxu1 %v7421_v44 }
0x1829   : > { %6356 = vmatpush3.msra.mxu1 %v8234_v55 }
0x182a   : > { %6357 = vmatprep.subr.mxu1 %v7421_v44 }
0x182b   : > { %6358 = vmatpush3.msra.mxu1 %v8241_v56 }
0x182c   : > { %6359 = vmatprep.subr.mxu1 %v7421_v44  ;;  %v6724_v59 = vpop.eup %6723 }
0x182d   : > { %6360 = vmatpush3.msra.mxu1 %v8245_v57 }
0x182e   : > { %6362 = vmatmul.mubr.msk.f32.vlgmr.msra.gmra.mxu1 %vm1501_vm0, %v8198_v58  ;;  %6375 = vmatprep.subr.mxu1 %v7421_v44 }
0x182f   : > { %6376 = vmatpush3.msra.mxu1 %v8293_v36  ;;  %6391 = vmatprep.mubr.msk.f32.mxu1 %vm7422_vm6, %v7421_v44 }
0x1830   : > { %6377 = vmatprep.subr.mxu1 %v7421_v44 }
0x1831   : > { %6378 = vmatpush3.msra.mxu1 %v8296_v48 }
0x1832   : > { %6379 = vmatprep.subr.mxu1 %v7421_v44 }
0x1833   : > { %6380 = vmatpush3.msra.mxu1 %v8301_v8 }
0x1834   : > { %6381 = vmatprep.subr.mxu1 %v7421_v44 }
0x1835   : > { %6382 = vmatpush3.msra.mxu1 %v8306_v49 }
0x1836   : > { %6383 = vmatprep.subr.mxu1 %v7421_v44 }
0x1837   : > { %6384 = vmatpush3.msra.mxu1 %v8344_v17 }
0x1838   : > { %6385 = vmatprep.subr.mxu1 %v7421_v44 }
0x1839   : > { %6386 = vmatpush3.msra.mxu1 %v8349_v9 }
0x183a   : > { %6387 = vmatprep.subr.mxu1 %v7421_v44 }
0x183b   : > { %6388 = vmatpush3.msra.mxu1 %v8354_v51 }
0x183c   : > { %6389 = vmatprep.subr.mxu1 %v7421_v44 }
0x183d   : > { %6390 = vmatpush3.msra.mxu1 %v8358_v53 }
0x18e6   : > { %v4868_v60 = vpop.f32.mrf.mxu1 }
0x18e7   : > { %v4872_v6 = vmul.f32 %v6724_v59, %v4868_v60 }
0x18e8   : > { %v6341_v54 = vpop.f32.mrf.mxu1 }
0x18e9   : > { %v4873_v55 = vmul.f32 16.0, %v4872_v6 }
0x18eb   : > { %6351 = vmatmul.mubr.msk.f32.vlgmr.msra.gmra.mxu0 %vm1501_vm0, %v4873_v55 }
0x18ec   : > { %6365 = vmatpush3.msra.mxu0 %v8275_v31  ;;  %6372 = vmatprep.mubr.msk.f32.mxu0 %vm7422_vm6, %v7421_v44 }
0x18ed   : > { %6366 = vmatprep.subr.mxu0 %v7421_v44 }
0x18ee   : > { %v5028_v56 = vpop.f32.mrf.mxu1  ;;  %6367 = vmatpush3.msra.mxu0 %v8279_v32 }
0x18ef   : > { %6368 = vmatprep.subr.mxu0 %v7421_v44 }
0x18f0   : > { %v6363_v57 = vpop.f32.mrf.mxu1  ;;  %6369 = vmatpush3.msra.mxu0 %v8283_v33 }
0x18f1   : > { %6370 = vmatprep.subr.mxu0 %v7421_v44 }
0x18f2   : > { %6371 = vmatpush3.msra.mxu0 %v8287_v35 }
0x19ab   : > { %v4943_v36 = vpop.f32.mrf.mxu0 }
0x19ac   : > { %v4947_v31 = vsel %vm1501_vm0, %v4943_v36, 0.0 }
0x19ad   : > { %4948 = vadd.xlane.f32.xlu0 %v4947_v31  ;;  %v6352_v48 = vpop.f32.mrf.mxu0 }
0x1a36   : > { %v4949_v8 = vpop.xlane.xlu0 %4948 }
0x1a37   : > { %v4950_v49 = vmul.f32 0.03125, %v4949_v8 }
0x1a39   : > { %v4951_v17 = vsub.f32 %v4943_v36, %v4950_v49 }
0x1a3b   : > { %v4952_v9 = vmul.f32 %v4951_v17, %v4951_v17 }
0x1a3d   : > { %v4953_v32 = vsel %vm1501_vm0, %v4952_v9, 0.0 }
0x1a3e   : > { %4954 = vadd.xlane.f32.xlu0 %v4953_v32 }
0x1ac7   : > { %v4955_v51 = vpop.xlane.xlu0 %4954 }
0x1ac8   : > { %v4956_v53 = vmul.f32 0.03125, %v4955_v51 }
0x1aca   : > { %v4957_v26 = vadd.f32 1e-05, %v4956_v53 }
0x1acc   : > { %6725 = vrsqrt.f32 %v4957_v26 }
0x1ad9   : > { %v6726_v33 = vpop.eup %6725 }
0x1ada   : > { %v4959_v44 = vmul.f32 %v6726_v33, %v4951_v17 }
0x1adc   : > { %v4960_v35 = vmul.f32 %v8313_v14, %v4959_v44 }
0x1ade   : > { %v4961_v39 = vadd.f32 %v8316_v16, %v4960_v35 }
0x1ae0   : > { %6373 = vmatmul.mubr.msk.f32.vlgmr.msra.gmra.mxu0 %vm1501_vm0, %v4961_v39 }
0x1ba0   : > { %v5101_v27 = vpop.f32.mrf.mxu0 }
0x1ba1   : > { %v5105_v28 = vadd.f32 %v5101_v27, %v5028_v56 }
0x1ba2   : > { %v6374_v41 = vpop.f32.mrf.mxu0 }
0x1ba3   : > { %v5106_v29 = vmax.f32 %v5105_v28, 0.0 }
0x1ba5   : > { %6392 = vmatmul.mubr.msk.f32.vlgmr.msra.gmra.mxu1 %vm2354_vm7, %v5106_v29 }
0x1c65   : > { %v5176_v30 = vpop.f32.mrf.mxu1 }
0x1c66   : > { %v5180_v50 = vsel %vm1501_vm0, %v5176_v30, 0.0 }
0x1c67   : > { %5181 = vadd.xlane.f32.xlu1 %v5180_v50  ;;  %v6393_v14 = vpop.f32.mrf.mxu1 }
0x1cf0   : > { %v5182_v43 = vpop.xlane.xlu1 %5181 }
0x1cf1   : > { %v5183_v16 = vmul.f32 0.03125, %v5182_v43 }
0x1cf3   : > { %v5184_v52 = vsub.f32 %v5176_v30, %v5183_v16 }
0x1cf5   : > { %v5185_v46 = vmul.f32 %v5184_v52, %v5184_v52 }
0x1cf7   : > { %v5186_v1 = vsel %vm1501_vm0, %v5185_v46, 0.0 }
0x1cf8   : > { %5187 = vadd.xlane.f32.xlu0 %v5186_v1 }
0x1cf9   : > { %7244 = shalt.err (!%p7241_p2)
}
0x1cfa   : > { %s7245_s19 = scalar_lea.hbm %s8494_s3, 256  ;;  %s7249_s1 = scalar_lea.hbm %s7615_s29, 512 }
0x1cfb   : > { %p7246_p6 = scmp.ne.s32.totalorder %s8494_s3, %s7245_s19  ;;  %p7250_p13 = scmp.lt.s32.totalorder %s8494_s3, %s7615_s29 }
0x1cfc   : > { %p7251_p7 = scmp.lt.s32.totalorder %s7249_s1, %s7245_s19 }
0x1cfd   : > { %p7247_p4 = pnand %p7246_p6, %p8678_p9 }
0x1cfe   : > { %p7252_p5 = por %p7251_p7, %p7250_p13 }
0x1cff   : > { %p7248_p12 = pneg %p7247_p4 }
0x1d01   : > { %p7253_p11 = pnand %p7252_p5, %p7248_p12 }
0x1d03   : > { %7256 = shalt.err (!%p7253_p11)
}
0x1d04   : > { %s7424_s9 = smov 128   ;;  %s8679_s13 = sld [smem:[#allocation78_spill]] }
0x1d05   : > { %s7425_s12 = smov 8   ;;  %s5689_s8 = sshll.u32 %s7643_s18, 7 }
0x1d06   : > { %6468 = dma.vmem_to_hbm [thread:$0]  (%p8678_p9), %s8497_s4, 256, %s8494_s3, %s5200_s6, %s7424_s9, %s7424_s9, %s7425_s12  }
0x1d07   : > { %s8680_s19 = sshll.u32 %s7867_s17, 3  ;;  %s5205_s4 = scalar_lea.sflag [#allocation34], %s7867_s17 }
0x1d08   : > { %s1416_s1 = scalar_lea.vmem [#allocation33], %s8680_s19  ;;  %s7426_s3 = smov [#allocation33]  }
0x1d09   : > { %s5234_s14 = sshll.u32 %s1416_s1, 4  ;;  %s7261_s9 = sshll.u32 %s7426_s3, 4  ;;  %s5235_s14 = int_to_ptr.vmem [resolvable:$true] %s5234_s14  ;;  %s7262_s9 = int_to_ptr.vmem [resolvable:$false] %s7261_s9 }
0x1d0a   : > { %s5232_s20 = scalar_lea.hbm %s8679_s13, %s5689_s8  ;;  %s7257_s6 = scalar_lea.vmem %s5235_s14, 128 }
0x1d0b   : > { %p7258_p10 = scmp.ne.s32.totalorder %s5235_s14, %s7257_s6  ;;  %s7263_s18 = scalar_lea.vmem %s7262_s9, 256 }
0x1d0c   : > { %p7264_p3 = scmp.lt.s32.totalorder %s5235_s14, %s7262_s9  ;;  %p7265_p0 = scmp.lt.s32.totalorder %s7263_s18, %s7257_s6 }
0x1d0d   : > { %p7259_p8 = pnand %p7258_p10, %p8678_p9 }
0x1d0e   : > { %p7266_p2 = por %p7265_p0, %p7264_p3 }
0x1d0f   : > { %p7260_p1 = pneg %p7259_p8 }
0x1d11   : > { %p7267_p6 = pnand %p7266_p2, %p7260_p1 }
0x1d81   : > { %v5188_v3 = vpop.xlane.xlu0 %5187 }
0x1d82   : > { %v5189_v4 = vmul.f32 0.03125, %v5188_v3 }
0x1d84   : > { %v5190_v5 = vadd.f32 1e-05, %v5189_v4 }
0x1d86   : > { %6727 = vrsqrt.f32 %v5190_v5 }
0x1d93   : > { %v6728_v7 = vpop.eup %6727 }
0x1d94   : > { %v5192_v15 = vmul.f32 %v6728_v7, %v5184_v52 }
0x1d96   : > { %v5193_v10 = vmul.f32 %v8381_v12, %v5192_v15 }
0x1d98   : > { %v5194_v11 = vadd.f32 %v8384_v18, %v5193_v10 }
0x1d9a   : > { %v5195_v2 = vadd.f32 %v5194_v11, %v8198_v58 }
0x1d9c   : > { %5198 = vst.msk [vmem:[%s1416_s1] sm:$0xff] %vm1501_vm0, %v5195_v2 }
0x1d9d   : > { %7270 = shalt.err (!%p7267_p6)
}
0x1d9e   : > { %s7271_s12 = scalar_lea.hbm %s5232_s20, 128  ;;  %s7275_s17 = scalar_lea.hbm %s8679_s13, 256 }
0x1d9f   : > { %p7272_p4 = scmp.ne.s32.totalorder %s5232_s20, %s7271_s12  ;;  %p7276_p7 = scmp.lt.s32.totalorder %s5232_s20, %s8679_s13 }
0x1da0   : > { %p7277_p5 = scmp.lt.s32.totalorder %s7275_s17, %s7271_s12 }
0x1da1   : > { %p7273_p12 = pnand %p7272_p4, %p8678_p9 }
0x1da2   : > { %p7278_p11 = por %p7277_p5, %p7276_p7 }
0x1da3   : > { %p7274_p13 = pneg %p7273_p12 }
0x1da5   : > { %p7279_p10 = pnand %p7278_p11, %p7274_p13 }
0x1da7   : > { %7282 = shalt.err (!%p7279_p10)
}
0x1da8   : > { %6469 = dma.vmem_to_hbm [thread:$0]  (%p8678_p9), %s5235_s14, 128, %s5232_s20, %s5205_s4  }
0x1da9 PF: > { %s5246_s8 = sand.u32 1, %s7349_s7   ;;  %p8681_p8 = scmp.ne.s32.totalorder %s8638_s16, 0 }
0x1daa   : > { %p8682_p1 = scmp.ge.s32.totalorder %s7361_s11, 2  ;;  %s5247_s19 = scalar_lea.sflag [#allocation4], %s5246_s8 }
0x1dac   : > { %p6532_p3 = pnand %p8682_p1, %p8681_p8 }
0x1dae   : > { %p6533_p0 = pneg %p6532_p3 }
0x1db0   : > { %7340 = dma.done.wait (%p6533_p0), %s5247_s19, 256  }
0x1db1   : > { %7342 = vsyncadd (%p6533_p0), %s5247_s19, 4294967040  ;;  %s5256_s1 = scalar_lea.sflag [#allocation34], %s5246_s8 }
0x1db2   : > { %7344 = dma.done.wait (%p6533_p0), %s5256_s1, 128  }
0x1db3   : > { %7346 = vsyncadd (%p6533_p0), %s5256_s1, 4294967168  ;;  %p101_p9 = scmp.ge.s32.totalorder %s7810_s15, 4   ;;  %s8683_s7 = smov %s7353_s10 }
0x1db4   : > { %s8684_s10 = smov %s7357_s0  ;;  %s8685_s0 = smov %s7821_s2 }
0x1db5   : > { %s8686_s11 = smov %s7810_s15  ;;  %103 = sbr.rel (!%p101_p9) target bundleno = 91 (0x5b), region = 338 }
0x1dba   :  { %5261 = vsyncpa [#allocation3], 1 }
0x1dbb   :  { %5263 = vsyncpa [#allocation3 + $0x1], 1 }
0x1dbc   :  { %5264 = vsyncpa [#allocation6], 1 }
0x1dbd   :  { %5265 = vsyncpa [#allocation9], 1 }
0x1dbe   :  { %5266 = vsyncpa [#allocation12], 1 }
0x1dbf   :  { %5267 = vsyncpa [#allocation15], 1 }
0x1dc0   :  { %5268 = vsyncpa [#allocation18], 1 }
0x1dc1   :  { %5269 = vsyncpa [#allocation21], 1 }
0x1dc2   :  { %5270 = vsyncpa [#allocation24], 1 }
0x1dc3   :  { %5271 = vsyncpa [#allocation27], 1 }
0x1dc4   :  { %5272 = vsyncpa [#allocation30], 1 }
0x1dc5   :  { %5273 = vsyncpa [#allocation4], 1 }
0x1dc6   :  { %5275 = vsyncpa [#allocation4 + $0x1], 1 }
0x1dc7   :  { %5276 = vsyncpa [#allocation34], 1 }
0x1dc8   :  { %5278 = vsyncpa [#allocation34 + $0x1], 1 }

</bundles_post_ra>
